<compile_context>
chip_gen: v5e
topology: v5e:2x2
jax: 0.10.0
libtpu: 0.0.40
codegen_flags: <defaults>
</compile_context>

<pallas_src>
import functools

import jax
import jax.numpy as jnp
from jax.experimental import pallas as pl
from jax.experimental.pallas import tpu as pltpu


MATMUL_DTYPE = jnp.bfloat16   # MXU-native operand dtype on v6e/v7x; f32 accum.


# ---------------------------------------------------------------------------
# Kernel
# ---------------------------------------------------------------------------
def _gru_pointer_kernel(
    # chunked per-step inputs, block (Bt, Tc, feat) -- batch-major
    embds_ref, mask_ref, extra_ref,
    # batch-blocked, time-invariant inputs
    init_h_ref, init_c_ref,
    att_keys_ref, att_values_ref, att_mask_ref, wid_ref,
    # small weights (VMEM blocked; matmul operands bf16, biases f32)
    w_dec_ref, b_dec_ref,
    w_ih_x_ref, w_ih_c_ref, w_ih_s_ref, b_ih_ref,
    w_hh_ref, b_hh_ref,
    wc_x_ref, wc_h_ref, wc_c_ref, b_copy_ref,
    # big pointer-generator weights kept in HBM (manually single-buffered)
    w_gen_h_hbm, w_gen_c_hbm, b_gen_hbm,
    # outputs
    word_probs_ref, copy_probs_ref, att_w_ref, last_h_ref, last_c_ref,
    # scratch
    h_s, c_s, h_all, c_all, wgh_s, wgc_s, bg_s, dma_sem,
    *, v_tile,
):
    f32 = jnp.float32
    mm = w_hh_ref.dtype

    tci = pl.program_id(1)                 # time-chunk index (sequential axis)

    # ---- once per batch block: stage big pointer-gen weights in VMEM -------
    # Single VMEM copy (no 2-deep pipeline buffering of the largest weights),
    # and (re)initialize the recurrent state for this batch block.
    @pl.when(tci == 0)
    def _():
        copies = (pltpu.make_async_copy(w_gen_h_hbm, wgh_s, dma_sem.at[0]),
                  pltpu.make_async_copy(w_gen_c_hbm, wgc_s, dma_sem.at[1]),
                  pltpu.make_async_copy(b_gen_hbm, bg_s, dma_sem.at[2]))
        for cp in copies:
            cp.start()
        for cp in copies:
            cp.wait()
        h_s[...] = init_h_ref[...]
        c_s[...] = init_c_ref[...]

    Bt, Tc, Din = embds_ref.shape
    H = h_s.shape[-1]
    C = c_s.shape[-1]
    S = att_mask_ref.shape[-1]
    Vp = word_probs_ref.shape[-1]
    TB = Bt * Tc
    Vt = v_tile
    NV = Vp // Vt

    # ---- chunk-batched precompute (independent of the recurrence) ----------
    x_flat = embds_ref[...].reshape(TB, Din)                      # bf16
    ef_flat = extra_ref[...].reshape(TB, extra_ref.shape[-1])     # bf16

    # transformer-decoder stand-in: one Linear over the whole chunk.
    # TODO(synk): a full BART-style transformer decoder has no clean
    # single-kernel Pallas equivalent; a Linear projection stands in.
    src_flat = (jnp.dot(ef_flat, w_dec_ref[...], preferred_element_type=f32)
                + b_dec_ref[...])                                  # (TB, Dd)

    # time-invariant part of the GRU input gates for every step of the chunk
    gi_static = (jnp.dot(x_flat, w_ih_x_ref[...], preferred_element_type=f32)
                 + jnp.dot(src_flat.astype(mm), w_ih_s_ref[...],
                           preferred_element_type=f32)
                 + b_ih_ref[...]).reshape(Bt, Tc, 3 * H)

    # hoisted per-chunk invariants (no per-step compare/select/broadcasts)
    keys = att_keys_ref[...].astype(f32)            # (Bt, S, H)
    vals = att_values_ref[...].astype(f32)          # (Bt, S, C)
    neg_mask = jnp.where(att_mask_ref[...] > 0.0, 0.0, -1e9)      # (Bt, S)

    # ---- sequential recurrence over the Tc steps of this chunk -------------
    # Tc is kept small by the wrapper (<= 16) so a static unroll is fine.
    # TODO(synk): for long chunks switch to lax.fori_loop + a gi scratch ref.
    prev_h = h_s[...]
    prev_c = c_s[...]
    for i in range(Tc):
        gi = gi_static[:, i, :] + jnp.dot(prev_c.astype(mm), w_ih_c_ref[...],
                                          preferred_element_type=f32)
        gh = jnp.dot(prev_h.astype(mm), w_hh_ref[...],
                     preferred_element_type=f32) + b_hh_ref[...]
        r = jax.nn.sigmoid(gi[:, 0:H] + gh[:, 0:H])
        z = jax.nn.sigmoid(gi[:, H:2 * H] + gh[:, H:2 * H])
        n = jnp.tanh(gi[:, 2 * H:3 * H] + r * gh[:, 2 * H:3 * H])
        curr_h = (1.0 - z) * n + z * prev_h                       # (Bt, H)

        # masked dot-product attention on the VPU/XLU: an M=1-per-batch MXU
        # dot_general would waste 255/256 MXU rows and serialize on the MXU
        # result FIFO every recurrence step.
        scores = jnp.sum(curr_h[:, None, :] * keys, axis=-1) + neg_mask
        smax = jnp.max(scores, axis=-1, keepdims=True)
        p = jnp.exp(scores - smax)
        # (all-masked rows degrade gracefully to uniform weights thanks to the
        #  max subtraction; no NaN guard needed.)
        att_wts = p * pl.reciprocal(jnp.sum(p, axis=-1, keepdims=True),
                                    approx=True)                  # (Bt, S)
        curr_c = jnp.sum(att_wts[:, :, None] * vals, axis=1)      # (Bt, C)

        m = mask_ref[:, i, :]                                     # (Bt, 1)
        new_h = m * curr_h + (1.0 - m) * prev_h
        new_c = m * curr_c + (1.0 - m) * prev_c

        h_all[:, i, :] = new_h
        c_all[:, i, :] = new_c
        att_w_ref[:, i, :] = att_wts
        prev_h, prev_c = new_h, new_c

    h_s[...] = prev_h
    c_s[...] = prev_c

    # ---- pointer-generator network: chunk-batched and VOCAB-TILED ----------
    h_flat32 = h_all[...].reshape(TB, H)
    c_flat32 = c_all[...].reshape(TB, C)
    h_flat = h_flat32.astype(mm)
    c_flat = c_flat32.astype(mm)

    # copy gate: three tiny N=1 projections as VPU reductions (an N=1 MXU
    # matmul wastes 255/256 output columns).
    copy_logit = (jnp.sum(h_flat32 * wc_h_ref[...], axis=-1, keepdims=True)
                  + jnp.sum(c_flat32 * wc_c_ref[...], axis=-1, keepdims=True)
                  + jnp.sum(x_flat.astype(f32) * wc_x_ref[...], axis=-1,
                            keepdims=True)
                  + b_copy_ref[...])                               # (TB, 1)
    copy_gate = jax.nn.sigmoid(copy_logit)                         # (TB, 1)
    gate3 = copy_gate.reshape(Bt, Tc, 1)
    one_minus_gate = 1.0 - copy_gate
    copy_probs_ref[...] = gate3

    wid = wid_ref[...]                                             # (Bt, S)
    att_mm = att_w_ref[...].astype(mm)                             # (Bt, Tc, S)

    def gen_logits_tile(v0):
        return (jnp.dot(h_flat, wgh_s[:, v0:v0 + Vt],
                        preferred_element_type=f32)
                + jnp.dot(c_flat, wgc_s[:, v0:v0 + Vt],
                          preferred_element_type=f32)
                + bg_s[:, v0:v0 + Vt])                             # (TB, Vt)

    # pass 1: online running max / sum-exp over vocab tiles.  Only (TB, Vt)
    # logits are ever live; padded columns carry a -1e9 bias so they add ~0.
    m_run = jnp.full((TB, 1), -1e30, f32)
    s_run = jnp.zeros((TB, 1), f32)
    for vt in range(NV):
        lg = gen_logits_tile(vt * Vt)
        m_new = jnp.maximum(m_run, jnp.max(lg, axis=-1, keepdims=True))
        s_run = (s_run * jnp.exp(m_run - m_new)
                 + jnp.sum(jnp.exp(lg - m_new), axis=-1, keepdims=True))
        m_run = m_new
    # exact divide for the vocabulary softmax (word_probs feed NLL downstream);
    # the approximate EUP reciprocal is reserved for the attention softmax.
    inv_s = 1.0 / s_run                                            # (TB, 1)

    # pass 2: per vocab tile, normalize, add the copy distribution, write out.
    for vt in range(NV):
        v0 = vt * Vt
        gen_p = jnp.exp(gen_logits_tile(v0) - m_run) * inv_s       # (TB, Vt)
        # copy distribution for this vocab tile: scatter the attention mass
        # through a bf16 one-hot MXU contraction (0/1 exact in bf16).
        # TODO(synk): at very large Bt*S switch to a compare-select accumulate
        # to avoid the (Bt, S, Vt) one-hot temporary.
        v_iota = jax.lax.broadcasted_iota(jnp.int32, (Bt, S, Vt), 2) + v0
        onehot = (wid[:, :, None] == v_iota).astype(mm)            # (Bt, S, Vt)
        copy_tile = jax.lax.dot_general(
            att_mm, onehot, (((2,), (1,)), ((0,), (0,))),
            preferred_element_type=f32)                            # (Bt, Tc, Vt)
        word_probs_ref[:, :, v0:v0 + Vt] = (
            (one_minus_gate * gen_p).reshape(Bt, Tc, Vt) + gate3 * copy_tile)

    @pl.when(tci == pl.num_programs(1) - 1)
    def _():                                # write the final state only once
        last_h_ref[...] = h_s[...]
        last_c_ref[...] = c_s[...]


# ---------------------------------------------------------------------------
# Wrapper
# ---------------------------------------------------------------------------
def gru_pointer_decoder(embds, mask, init_hidden, att_keys, att_values,
                        att_word_ids, att_mask, extra_feat, params, vocab_size,
                        *, time_chunk=None, batch_block=None, vocab_tile=512):
    """Batch-major GruPointerDecoder forward.

    Tiling guidance at realistic sizes: pick Bt*Tc >= 256 (fills MXU rows on
    v6e/v7x, >=128 on v5e), Bt as large as the VMEM budget allows, Tc a
    multiple of 16 and <= 16 (bounds the unrolled recurrence), vocab_tile
    512-4096, and B // Bt >= 2 on v7x so the "parallel" batch axis splits
    across the two TensorCores.
    """
    B, T, Din = embds.shape
    S = att_keys.shape[1]
    H = init_hidden.shape[1]
    C = att_values.shape[2]
    E = extra_feat.shape[2]
    V = vocab_size
    f32 = jnp.float32
    mm = MATMUL_DTYPE

    # ---- block sizing -------------------------------------------------------
    if time_chunk is None:
        Tc = 16 if (T % 16 == 0 and T > 16) else T
    else:
        Tc = time_chunk
    Bt = B if batch_block is None else batch_block
    assert T % Tc == 0 and B % Bt == 0
    assert Tc == T or Tc % 16 == 0, \
        "time chunk must be the full T or a multiple of 16 (bf16 sublane tile)"

    # vocab tile: multiple of 128 lanes; pad V up to a multiple of the tile.
    Vt = max(128, min(int(vocab_tile), pl.cdiv(V, 128) * 128))
    Vt = (Vt // 128) * 128
    Vp = pl.cdiv(V, Vt) * Vt
    padv = Vp - V

    # ---- operand preparation (batch-major; chunked activations in bf16) ----
    embds_b = embds.astype(mm)                         # (B, T, Din)
    extra_b = extra_feat.astype(mm)                    # (B, T, E)
    mask3 = mask.astype(f32)[..., None]                # (B, T, 1)
    keys_mm = att_keys.astype(mm)                      # (B, S, H)
    vals_mm = att_values.astype(mm)                    # (B, S, C)
    amask = att_mask.astype(f32)                       # (B, S)
    wid = att_word_ids.astype(jnp.int32)               # (B, S)
    init_h = init_hidden.astype(f32)
    init_c = params["init_cont"].astype(f32)           # init_cont=None -> zeros

    small_weights = [
        params["w_dec"].astype(mm), params["b_dec"].astype(f32),
        params["w_ih_x"].astype(mm), params["w_ih_c"].astype(mm),
        params["w_ih_s"].astype(mm), params["b_ih"].astype(f32),
        params["w_hh"].astype(mm), params["b_hh"].astype(f32),
        params["wc_x"].astype(f32), params["wc_h"].astype(f32),
        params["wc_c"].astype(f32), params["b_copy"].astype(f32),
    ]

    # big pointer-gen weights: pad vocab columns; padded bias = -1e9 so the
    # padded columns contribute ~0 probability mass.
    w_gen_h_p = jnp.pad(params["w_gen_h"], ((0, 0), (0, padv))).astype(mm)
    w_gen_c_p = jnp.pad(params["w_gen_c"], ((0, 0), (0, padv))).astype(mm)
    b_gen_p = jnp.pad(params["b_gen"], ((0, 0), (0, padv)),
                      constant_values=-1e9).astype(f32)

    # ---- specs --------------------------------------------------------------
    def tb_spec(feat):
        return pl.BlockSpec((Bt, Tc, feat), lambda b, t: (b, t, 0))

    def batch_spec(shape):
        nd = len(shape)
        return pl.BlockSpec((Bt,) + tuple(shape[1:]),
                            lambda b, t, nd=nd: (b,) + (0,) * (nd - 1))

    def full_spec(arr):
        nd = arr.ndim
        return pl.BlockSpec(arr.shape, lambda b, t, nd=nd: (0,) * nd)

    hbm_spec = pl.BlockSpec(memory_space=pl.ANY)

    in_specs = (
        [tb_spec(Din), tb_spec(1), tb_spec(E)]
        + [batch_spec(init_h.shape), batch_spec(init_c.shape),
           batch_spec(keys_mm.shape), batch_spec(vals_mm.shape),
           batch_spec(amask.shape), batch_spec(wid.shape)]
        + [full_spec(w) for w in small_weights]
        + [hbm_spec, hbm_spec, hbm_spec]
    )

    out_shape = (
        jax.ShapeDtypeStruct((B, T, Vp), f32),   # word_probs (padded vocab)
        jax.ShapeDtypeStruct((B, T, 1), f32),    # copy_probs
        jax.ShapeDtypeStruct((B, T, S), f32),    # att_weights
        jax.ShapeDtypeStruct((B, H), f32),       # prev_hidden
        jax.ShapeDtypeStruct((B, C), f32),       # prev_cont
    )
    out_specs = (
        pl.BlockSpec((Bt, Tc, Vp), lambda b, t: (b, t, 0)),
        pl.BlockSpec((Bt, Tc, 1), lambda b, t: (b, t, 0)),
        pl.BlockSpec((Bt, Tc, S), lambda b, t: (b, t, 0)),
        pl.BlockSpec((Bt, H), lambda b, t: (b, 0)),
        pl.BlockSpec((Bt, C), lambda b, t: (b, 0)),
    )

    scratch_shapes = [
        pltpu.VMEM((Bt, H), f32), pltpu.VMEM((Bt, C), f32),        # state
        pltpu.VMEM((Bt, Tc, H), f32), pltpu.VMEM((Bt, Tc, C), f32),
        pltpu.VMEM((H, Vp), mm), pltpu.VMEM((C, Vp), mm),          # weights
        pltpu.VMEM((1, Vp), f32),
        pltpu.SemaphoreType.DMA((3,)),
    ]

    grid_spec = pltpu.PrefetchScalarGridSpec(
        num_scalar_prefetch=0,
        grid=(B // Bt, T // Tc),
        in_specs=in_specs,
        out_specs=out_specs,
        scratch_shapes=scratch_shapes,
    )

    # ---- scoped-VMEM budget derived from the actual footprint ---------------
    def nbytes(shape, dtype):
        n = 1
        for d in shape:
            n *= int(d)
        return n * jnp.dtype(dtype).itemsize

    est = 0
    est += 2 * (nbytes((Bt, Tc, Din), mm) + nbytes((Bt, Tc, 1), f32)
                + nbytes((Bt, Tc, E), mm))
    est += 2 * (nbytes((Bt, H), f32) + nbytes((Bt, C), f32)
                + nbytes((Bt, S, H), mm) + nbytes((Bt, S, C), mm)
                + nbytes((Bt, S), f32) + nbytes((Bt, S), jnp.int32))
    est += 2 * sum(nbytes(w.shape, w.dtype) for w in small_weights)
    est += 2 * (nbytes((Bt, Tc, Vp), f32) + nbytes((Bt, Tc, 1), f32)
                + nbytes((Bt, Tc, S), f32) + nbytes((Bt, H), f32)
                + nbytes((Bt, C), f32))
    est += (nbytes((H, Vp), mm) + nbytes((C, Vp), mm) + nbytes((1, Vp), f32)
            + nbytes((Bt, H), f32) + nbytes((Bt, C), f32)
            + nbytes((Bt, Tc, H), f32) + nbytes((Bt, Tc, C), f32))
    est += (nbytes((Bt, Tc, 3 * H), f32) + nbytes((Bt, S, H), f32)
            + nbytes((Bt, S, C), f32) + 3 * nbytes((Bt * Tc, Vt), f32)
            + nbytes((Bt, S, Vt), mm) + nbytes((Bt, Tc, Vt), f32))

    vmem_limit = min(max(32 << 20, 2 * est), 100 << 20)
    try:    # clamp to physical per-core VMEM when the query is available
        cap = pltpu.get_tpu_info().vmem_capacity_bytes
        vmem_limit = max(16 << 20, min(vmem_limit, int(cap * 0.9)))
    except Exception:
        pass

    kernel = functools.partial(_gru_pointer_kernel, v_tile=Vt)
    outs = pl.pallas_call(
        kernel,
        out_shape=out_shape,
        grid_spec=grid_spec,
        compiler_params=pltpu.CompilerParams(
            # batch blocks are independent (parallel -> v7x megacore);
            # the recurrence runs sequentially over the time-chunk axis.
            dimension_semantics=("parallel", "arbitrary"),
            vmem_limit_bytes=int(vmem_limit)),
    )(embds_b, mask3, extra_b, init_h, init_c, keys_mm, vals_mm, amask, wid,
      *small_weights, w_gen_h_p, w_gen_c_p, b_gen_p)

    word_probs_p, copy_probs3, att_weights, last_h, last_c = outs
    word_probs = word_probs_p[..., :V] if Vp != V else word_probs_p
    copy_probs = copy_probs3[..., 0]        # (B, T); metadata-only squeeze
    return word_probs, copy_probs, att_weights, last_h, last_c


# ---------------------------------------------------------------------------
# Deterministic parameter construction
# ---------------------------------------------------------------------------
def make_params(key, *, B, Din, C, H, E, Dd, V):
    def uni(k, shape, fan_in):
        bound = 1.0 / jnp.sqrt(jnp.float32(fan_in))
        return jax.random.uniform(k, shape, jnp.float32, -bound, bound)

    ks = jax.random.split(key, 16)
    cell_inp = Din + C + Dd
    return {
        # transformer-decoder stand-in
        "w_dec": uni(ks[0], (E, Dd), E),
        "b_dec": uni(ks[1], (1, Dd), E),
        # GRU cell (gate order r, z, n like torch.nn.GRUCell)
        "w_ih_x": uni(ks[2], (Din, 3 * H), cell_inp),
        "w_ih_c": uni(ks[3], (C, 3 * H), cell_inp),
        "w_ih_s": uni(ks[4], (Dd, 3 * H), cell_inp),
        "b_ih": uni(ks[5], (1, 3 * H), H),
        "w_hh": uni(ks[6], (H, 3 * H), H),
        "b_hh": uni(ks[7], (1, 3 * H), H),
        # pointer-generator
        "w_gen_h": uni(ks[8], (H, V), H + C),
        "w_gen_c": uni(ks[9], (C, V), H + C),
        "b_gen": uni(ks[10], (1, V), H + C),
        "wc_x": uni(ks[11], (1, Din), Din + H + C),
        "wc_h": uni(ks[12], (1, H), Din + H + C),
        "wc_c": uni(ks[13], (1, C), Din + H + C),
        "b_copy": uni(ks[14], (1, 1), Din + H + C),
        # init_cont = None path -> zeros
        "init_cont": jnp.zeros((B, C), jnp.float32),
    }


# ---------------------------------------------------------------------------
# Main
# ---------------------------------------------------------------------------
if __name__ == "__main__":
    B, T, S = 2, 8, 8           # batch, out_seq_len, inp_seq_len
    Din, C, H = 16, 32, 32      # input_dim, contxt_dim(=value_dim), hidden_dim
    E, Dd, V = 16, 16, 64       # extra_feat dim, decoder dim, ext_vocab_size

    key = jax.random.PRNGKey(0)
    k = jax.random.split(key, 10)

    embds = jax.random.normal(k[0], (B, T, Din), jnp.float32)
    mask = jnp.concatenate(
        [jnp.ones((B, T - 2), jnp.float32), jnp.zeros((B, 2), jnp.float32)], axis=1)
    init_hidden = jax.random.normal(k[1], (B, H), jnp.float32)
    att_keys = jax.random.normal(k[2], (B, S, H), jnp.float32)
    att_values = jax.random.normal(k[3], (B, S, C), jnp.float32)
    att_word_ids = jax.random.randint(k[4], (B, S), 0, V, jnp.int32)
    att_mask = jnp.concatenate(
        [jnp.ones((B, S - 1), jnp.float32), jnp.zeros((B, 1), jnp.float32)], axis=1)
    extra_feat = jax.random.normal(k[5], (B, T, E), jnp.float32)

    params = make_params(jax.random.PRNGKey(42), B=B, Din=Din, C=C, H=H,
                         E=E, Dd=Dd, V=V)

    outs = gru_pointer_decoder(embds, mask, init_hidden, att_keys, att_values,
                               att_word_ids, att_mask, extra_feat, params, V)
    outs = jax.block_until_ready(outs)
    word_probs, copy_probs, att_weights, prev_hidden, prev_cont = outs

    # light sanity checks (tolerances account for bf16 matmuls + approx recip
    # in the attention softmax; the vocab softmax uses an exact divide)
    assert word_probs.shape == (B, T, V)
    assert copy_probs.shape == (B, T)
    assert att_weights.shape == (B, T, S)
    assert prev_hidden.shape == (B, H)
    assert prev_cont.shape == (B, C)
    assert bool(jnp.all(jnp.isfinite(word_probs)))
    assert bool(jnp.all((copy_probs > -1e-3) & (copy_probs < 1.0 + 1e-3)))
    assert bool(jnp.allclose(jnp.sum(word_probs, axis=-1), 1.0, atol=2e-2))
    assert bool(jnp.allclose(jnp.sum(att_weights, axis=-1), 1.0, atol=2e-2))

    print("KERNEL_OK")
</pallas_src>

<mosaic_0001>
module attributes {stable_mosaic.version = 11 : i64} {
  func.func @_gru_pointer_kernel(%arg0: i32, %arg1: i32, %arg2: memref<2x8x16xbf16, #tpu.memory_space<vmem>>, %arg3: memref<2x8x1xf32, #tpu.memory_space<vmem>>, %arg4: memref<2x8x16xbf16, #tpu.memory_space<vmem>>, %arg5: memref<2x32xf32, #tpu.memory_space<vmem>>, %arg6: memref<2x32xf32, #tpu.memory_space<vmem>>, %arg7: memref<2x8x32xbf16, #tpu.memory_space<vmem>>, %arg8: memref<2x8x32xbf16, #tpu.memory_space<vmem>>, %arg9: memref<2x8xf32, #tpu.memory_space<vmem>>, %arg10: memref<2x8xi32, #tpu.memory_space<vmem>>, %arg11: memref<16x16xbf16, #tpu.memory_space<vmem>>, %arg12: memref<1x16xf32, #tpu.memory_space<vmem>>, %arg13: memref<16x96xbf16, #tpu.memory_space<vmem>>, %arg14: memref<32x96xbf16, #tpu.memory_space<vmem>>, %arg15: memref<16x96xbf16, #tpu.memory_space<vmem>>, %arg16: memref<1x96xf32, #tpu.memory_space<vmem>>, %arg17: memref<32x96xbf16, #tpu.memory_space<vmem>>, %arg18: memref<1x96xf32, #tpu.memory_space<vmem>>, %arg19: memref<1x16xf32, #tpu.memory_space<vmem>>, %arg20: memref<1x32xf32, #tpu.memory_space<vmem>>, %arg21: memref<1x32xf32, #tpu.memory_space<vmem>>, %arg22: memref<1x1xf32, #tpu.memory_space<vmem>>, %arg23: memref<32x128xbf16, #tpu.memory_space<any>>, %arg24: memref<32x128xbf16, #tpu.memory_space<any>>, %arg25: memref<1x128xf32, #tpu.memory_space<any>>, %arg26: memref<2x8x128xf32, #tpu.memory_space<vmem>>, %arg27: memref<2x8x1xf32, #tpu.memory_space<vmem>>, %arg28: memref<2x8x8xf32, #tpu.memory_space<vmem>>, %arg29: memref<2x32xf32, #tpu.memory_space<vmem>>, %arg30: memref<2x32xf32, #tpu.memory_space<vmem>>, %arg31: memref<2x32xf32, #tpu.memory_space<vmem>>, %arg32: memref<2x32xf32, #tpu.memory_space<vmem>>, %arg33: memref<2x8x32xf32, #tpu.memory_space<vmem>>, %arg34: memref<2x8x32xf32, #tpu.memory_space<vmem>>, %arg35: memref<32x128xbf16, #tpu.memory_space<vmem>>, %arg36: memref<32x128xbf16, #tpu.memory_space<vmem>>, %arg37: memref<1x128xf32, #tpu.memory_space<vmem>>, %arg38: memref<3x!tpu.dma_semaphore, #tpu.memory_space<semaphore_mem>>) attributes {dimension_semantics = [#tpu.dimension_semantics<parallel>, #tpu.dimension_semantics<arbitrary>], iteration_bounds = array<i64: 1, 1>, scalar_prefetch = 0 : i64, scratch_operands = 8 : i64, tpu.core_type = #tpu.core_type<tc>, window_params = [{transform_indices = @transform_0, window_bounds = array<i64: 2, 8, 16>}, {transform_indices = @transform_1, window_bounds = array<i64: 2, 8, 1>}, {transform_indices = @transform_2, window_bounds = array<i64: 2, 8, 16>}, {transform_indices = @transform_3, window_bounds = array<i64: 2, 32>}, {transform_indices = @transform_4, window_bounds = array<i64: 2, 32>}, {transform_indices = @transform_5, window_bounds = array<i64: 2, 8, 32>}, {transform_indices = @transform_6, window_bounds = array<i64: 2, 8, 32>}, {transform_indices = @transform_7, window_bounds = array<i64: 2, 8>}, {transform_indices = @transform_8, window_bounds = array<i64: 2, 8>}, {pipeline_mode = #tpu.pipeline_mode<synchronous>, transform_indices = @transform_9, window_bounds = array<i64: 16, 16>}, {pipeline_mode = #tpu.pipeline_mode<synchronous>, transform_indices = @transform_10, window_bounds = array<i64: 1, 16>}, {pipeline_mode = #tpu.pipeline_mode<synchronous>, transform_indices = @transform_11, window_bounds = array<i64: 16, 96>}, {pipeline_mode = #tpu.pipeline_mode<synchronous>, transform_indices = @transform_12, window_bounds = array<i64: 32, 96>}, {pipeline_mode = #tpu.pipeline_mode<synchronous>, transform_indices = @transform_13, window_bounds = array<i64: 16, 96>}, {pipeline_mode = #tpu.pipeline_mode<synchronous>, transform_indices = @transform_14, window_bounds = array<i64: 1, 96>}, {pipeline_mode = #tpu.pipeline_mode<synchronous>, transform_indices = @transform_15, window_bounds = array<i64: 32, 96>}, {pipeline_mode = #tpu.pipeline_mode<synchronous>, transform_indices = @transform_16, window_bounds = array<i64: 1, 96>}, {pipeline_mode = #tpu.pipeline_mode<synchronous>, transform_indices = @transform_17, window_bounds = array<i64: 1, 16>}, {pipeline_mode = #tpu.pipeline_mode<synchronous>, transform_indices = @transform_18, window_bounds = array<i64: 1, 32>}, {pipeline_mode = #tpu.pipeline_mode<synchronous>, transform_indices = @transform_19, window_bounds = array<i64: 1, 32>}, {pipeline_mode = #tpu.pipeline_mode<synchronous>, transform_indices = @transform_20, window_bounds = array<i64: 1, 1>}, {}, {}, {}, {transform_indices = @transform_24, window_bounds = array<i64: 2, 8, 128>}, {transform_indices = @transform_25, window_bounds = array<i64: 2, 8, 1>}, {transform_indices = @transform_26, window_bounds = array<i64: 2, 8, 8>}, {transform_indices = @transform_27, window_bounds = array<i64: 2, 32>}, {transform_indices = @transform_28, window_bounds = array<i64: 2, 32>}]} {
    %c0_i32 = arith.constant 0 : i32
    %0 = arith.cmpi eq, %arg1, %c0_i32 : i32
    %1 = arith.extui %0 : i1 to i32
    %c0_i32_0 = arith.constant 0 : i32
    %2 = arith.cmpi ne, %1, %c0_i32_0 : i32
    scf.if %2 {
      %c0_i32_317 = arith.constant 0 : i32
      %788 = tpu.memref_slice %arg38[%c0_i32_317] : memref<3x!tpu.dma_semaphore, #tpu.memory_space<semaphore_mem>> -> memref<1x!tpu.dma_semaphore, #tpu.memory_space<semaphore_mem>>
      %789 = tpu.memref_squeeze %788 : memref<1x!tpu.dma_semaphore, #tpu.memory_space<semaphore_mem>> -> memref<!tpu.dma_semaphore, #tpu.memory_space<semaphore_mem>>
      tpu.enqueue_dma source(%arg23 : memref<32x128xbf16, #tpu.memory_space<any>>) target(%arg35 : memref<32x128xbf16, #tpu.memory_space<vmem>>) target_semaphore(%789 : memref<!tpu.dma_semaphore, #tpu.memory_space<semaphore_mem>>)
      %c1_i32 = arith.constant 1 : i32
      %790 = tpu.memref_slice %arg38[%c1_i32] : memref<3x!tpu.dma_semaphore, #tpu.memory_space<semaphore_mem>> -> memref<1x!tpu.dma_semaphore, #tpu.memory_space<semaphore_mem>>
      %791 = tpu.memref_squeeze %790 : memref<1x!tpu.dma_semaphore, #tpu.memory_space<semaphore_mem>> -> memref<!tpu.dma_semaphore, #tpu.memory_space<semaphore_mem>>
      tpu.enqueue_dma source(%arg24 : memref<32x128xbf16, #tpu.memory_space<any>>) target(%arg36 : memref<32x128xbf16, #tpu.memory_space<vmem>>) target_semaphore(%791 : memref<!tpu.dma_semaphore, #tpu.memory_space<semaphore_mem>>)
      %c2_i32 = arith.constant 2 : i32
      %792 = tpu.memref_slice %arg38[%c2_i32] : memref<3x!tpu.dma_semaphore, #tpu.memory_space<semaphore_mem>> -> memref<1x!tpu.dma_semaphore, #tpu.memory_space<semaphore_mem>>
      %793 = tpu.memref_squeeze %792 : memref<1x!tpu.dma_semaphore, #tpu.memory_space<semaphore_mem>> -> memref<!tpu.dma_semaphore, #tpu.memory_space<semaphore_mem>>
      tpu.enqueue_dma source(%arg25 : memref<1x128xf32, #tpu.memory_space<any>>) target(%arg37 : memref<1x128xf32, #tpu.memory_space<vmem>>) target_semaphore(%793 : memref<!tpu.dma_semaphore, #tpu.memory_space<semaphore_mem>>)
      %c0_i32_318 = arith.constant 0 : i32
      %794 = tpu.memref_slice %arg38[%c0_i32_318] : memref<3x!tpu.dma_semaphore, #tpu.memory_space<semaphore_mem>> -> memref<1x!tpu.dma_semaphore, #tpu.memory_space<semaphore_mem>>
      %795 = tpu.memref_squeeze %794 : memref<1x!tpu.dma_semaphore, #tpu.memory_space<semaphore_mem>> -> memref<!tpu.dma_semaphore, #tpu.memory_space<semaphore_mem>>
      tpu.wait_dma2 semaphore(%795 : memref<!tpu.dma_semaphore, #tpu.memory_space<semaphore_mem>>) src(%arg23 : memref<32x128xbf16, #tpu.memory_space<any>>) dst(%arg35 : memref<32x128xbf16, #tpu.memory_space<vmem>>)
      %c1_i32_319 = arith.constant 1 : i32
      %796 = tpu.memref_slice %arg38[%c1_i32_319] : memref<3x!tpu.dma_semaphore, #tpu.memory_space<semaphore_mem>> -> memref<1x!tpu.dma_semaphore, #tpu.memory_space<semaphore_mem>>
      %797 = tpu.memref_squeeze %796 : memref<1x!tpu.dma_semaphore, #tpu.memory_space<semaphore_mem>> -> memref<!tpu.dma_semaphore, #tpu.memory_space<semaphore_mem>>
      tpu.wait_dma2 semaphore(%797 : memref<!tpu.dma_semaphore, #tpu.memory_space<semaphore_mem>>) src(%arg24 : memref<32x128xbf16, #tpu.memory_space<any>>) dst(%arg36 : memref<32x128xbf16, #tpu.memory_space<vmem>>)
      %c2_i32_320 = arith.constant 2 : i32
      %798 = tpu.memref_slice %arg38[%c2_i32_320] : memref<3x!tpu.dma_semaphore, #tpu.memory_space<semaphore_mem>> -> memref<1x!tpu.dma_semaphore, #tpu.memory_space<semaphore_mem>>
      %799 = tpu.memref_squeeze %798 : memref<1x!tpu.dma_semaphore, #tpu.memory_space<semaphore_mem>> -> memref<!tpu.dma_semaphore, #tpu.memory_space<semaphore_mem>>
      tpu.wait_dma2 semaphore(%799 : memref<!tpu.dma_semaphore, #tpu.memory_space<semaphore_mem>>) src(%arg25 : memref<1x128xf32, #tpu.memory_space<any>>) dst(%arg37 : memref<1x128xf32, #tpu.memory_space<vmem>>)
      %c0_321 = arith.constant 0 : index
      %c0_322 = arith.constant 0 : index
      %800 = vector.load %arg5[%c0_321, %c0_322] : memref<2x32xf32, #tpu.memory_space<vmem>>, vector<2x32xf32>
      %c0_323 = arith.constant 0 : index
      %c0_324 = arith.constant 0 : index
      %801 = vector.load %arg31[%c0_323, %c0_324] : memref<2x32xf32, #tpu.memory_space<vmem>>, vector<2x32xf32>
      tpu.vector_store %arg31[%c0_323, %c0_324], %800 {strides = array<i32>} : memref<2x32xf32, #tpu.memory_space<vmem>>, vector<2x32xf32>,
      %c0_325 = arith.constant 0 : index
      %c0_326 = arith.constant 0 : index
      %802 = vector.load %arg6[%c0_325, %c0_326] : memref<2x32xf32, #tpu.memory_space<vmem>>, vector<2x32xf32>
      %c0_327 = arith.constant 0 : index
      %c0_328 = arith.constant 0 : index
      %803 = vector.load %arg32[%c0_327, %c0_328] : memref<2x32xf32, #tpu.memory_space<vmem>>, vector<2x32xf32>
      tpu.vector_store %arg32[%c0_327, %c0_328], %802 {strides = array<i32>} : memref<2x32xf32, #tpu.memory_space<vmem>>, vector<2x32xf32>,
    } else {
    }
    %c0 = arith.constant 0 : index
    %c0_1 = arith.constant 0 : index
    %c0_2 = arith.constant 0 : index
    %3 = vector.load %arg2[%c0, %c0_1, %c0_2] : memref<2x8x16xbf16, #tpu.memory_space<vmem>>, vector<2x8x16xbf16>
    %4 = vector.shape_cast %3 : vector<2x8x16xbf16> to vector<16x16xbf16>
    %c0_3 = arith.constant 0 : index
    %c0_4 = arith.constant 0 : index
    %c0_5 = arith.constant 0 : index
    %5 = vector.load %arg4[%c0_3, %c0_4, %c0_5] : memref<2x8x16xbf16, #tpu.memory_space<vmem>>, vector<2x8x16xbf16>
    %6 = vector.shape_cast %5 : vector<2x8x16xbf16> to vector<16x16xbf16>
    %c0_6 = arith.constant 0 : index
    %c0_7 = arith.constant 0 : index
    %7 = vector.load %arg11[%c0_6, %c0_7] : memref<16x16xbf16, #tpu.memory_space<vmem>>, vector<16x16xbf16>
    %cst = arith.constant dense<0.000000e+00> : vector<16x16xf32>
    %8 = tpu.matmul %6, %7, %cst {dimension_numbers = #tpu.dot_dimension_numbers<[1], [0], [0], [1], [0, 0, 1, 1], [], []>} : vector<16x16xbf16>, vector<16x16xbf16>, vector<16x16xf32> -> vector<16x16xf32>
    %c0_8 = arith.constant 0 : index
    %c0_9 = arith.constant 0 : index
    %9 = vector.load %arg12[%c0_8, %c0_9] : memref<1x16xf32, #tpu.memory_space<vmem>>, vector<1x16xf32>
    %10 = vector.broadcast %9 : vector<1x16xf32> to vector<16x16xf32>
    %11 = arith.addf %8, %10 : vector<16x16xf32>
    %c0_10 = arith.constant 0 : index
    %c0_11 = arith.constant 0 : index
    %12 = vector.load %arg13[%c0_10, %c0_11] : memref<16x96xbf16, #tpu.memory_space<vmem>>, vector<16x96xbf16>
    %cst_12 = arith.constant dense<0.000000e+00> : vector<16x96xf32>
    %13 = tpu.matmul %4, %12, %cst_12 {dimension_numbers = #tpu.dot_dimension_numbers<[1], [0], [0], [1], [0, 0, 1, 1], [], []>} : vector<16x16xbf16>, vector<16x96xbf16>, vector<16x96xf32> -> vector<16x96xf32>
    %14 = arith.truncf %11 : vector<16x16xf32> to vector<16x16xbf16>
    %c0_13 = arith.constant 0 : index
    %c0_14 = arith.constant 0 : index
    %15 = vector.load %arg15[%c0_13, %c0_14] : memref<16x96xbf16, #tpu.memory_space<vmem>>, vector<16x96xbf16>
    %cst_15 = arith.constant dense<0.000000e+00> : vector<16x96xf32>
    %16 = tpu.matmul %14, %15, %cst_15 {dimension_numbers = #tpu.dot_dimension_numbers<[1], [0], [0], [1], [0, 0, 1, 1], [], []>} : vector<16x16xbf16>, vector<16x96xbf16>, vector<16x96xf32> -> vector<16x96xf32>
    %17 = arith.addf %13, %16 : vector<16x96xf32>
    %c0_16 = arith.constant 0 : index
    %c0_17 = arith.constant 0 : index
    %18 = vector.load %arg16[%c0_16, %c0_17] : memref<1x96xf32, #tpu.memory_space<vmem>>, vector<1x96xf32>
    %19 = vector.broadcast %18 : vector<1x96xf32> to vector<16x96xf32>
    %20 = arith.addf %17, %19 : vector<16x96xf32>
    %21 = vector.shape_cast %20 : vector<16x96xf32> to vector<2x8x96xf32>
    %c0_18 = arith.constant 0 : index
    %c0_19 = arith.constant 0 : index
    %c0_20 = arith.constant 0 : index
    %22 = vector.load %arg7[%c0_18, %c0_19, %c0_20] : memref<2x8x32xbf16, #tpu.memory_space<vmem>>, vector<2x8x32xbf16>
    %23 = arith.extf %22 : vector<2x8x32xbf16> to vector<2x8x32xf32>
    %c0_21 = arith.constant 0 : index
    %c0_22 = arith.constant 0 : index
    %c0_23 = arith.constant 0 : index
    %24 = vector.load %arg8[%c0_21, %c0_22, %c0_23] : memref<2x8x32xbf16, #tpu.memory_space<vmem>>, vector<2x8x32xbf16>
    %25 = arith.extf %24 : vector<2x8x32xbf16> to vector<2x8x32xf32>
    %c0_24 = arith.constant 0 : index
    %c0_25 = arith.constant 0 : index
    %26 = vector.load %arg9[%c0_24, %c0_25] : memref<2x8xf32, #tpu.memory_space<vmem>>, vector<2x8xf32>
    %cst_26 = arith.constant 0.000000e+00 : f32
    %27 = vector.broadcast %cst_26 : f32 to vector<2x8xf32>
    %28 = arith.cmpf ogt, %26, %27 : vector<2x8xf32>
    %cst_27 = arith.constant 0.000000e+00 : f32
    %cst_28 = arith.constant -1.000000e+09 : f32
    %29 = vector.broadcast %cst_27 : f32 to vector<2x8xf32>
    %30 = vector.broadcast %cst_28 : f32 to vector<2x8xf32>
    %31 = arith.select %28, %29, %30 : vector<2x8xi1>, vector<2x8xf32>
    %c0_29 = arith.constant 0 : index
    %c0_30 = arith.constant 0 : index
    %32 = vector.load %arg31[%c0_29, %c0_30] : memref<2x32xf32, #tpu.memory_space<vmem>>, vector<2x32xf32>
    %c0_31 = arith.constant 0 : index
    %c0_32 = arith.constant 0 : index
    %33 = vector.load %arg32[%c0_31, %c0_32] : memref<2x32xf32, #tpu.memory_space<vmem>>, vector<2x32xf32>
    %34 = vector.extract_strided_slice %21 {offsets = [0, 0, 0], sizes = [2, 1, 96], strides = [1, 1, 1]} : vector<2x8x96xf32> to vector<2x1x96xf32>
    %35 = vector.shape_cast %34 : vector<2x1x96xf32> to vector<2x96xf32>
    %36 = arith.truncf %33 : vector<2x32xf32> to vector<2x32xbf16>
    %c0_33 = arith.constant 0 : index
    %c0_34 = arith.constant 0 : index
    %37 = vector.load %arg14[%c0_33, %c0_34] : memref<32x96xbf16, #tpu.memory_space<vmem>>, vector<32x96xbf16>
    %cst_35 = arith.constant dense<0.000000e+00> : vector<2x96xf32>
    %38 = tpu.matmul %36, %37, %cst_35 {dimension_numbers = #tpu.dot_dimension_numbers<[1], [0], [0], [1], [0, 0, 1, 1], [], []>} : vector<2x32xbf16>, vector<32x96xbf16>, vector<2x96xf32> -> vector<2x96xf32>
    %39 = arith.addf %35, %38 : vector<2x96xf32>
    %40 = arith.truncf %32 : vector<2x32xf32> to vector<2x32xbf16>
    %c0_36 = arith.constant 0 : index
    %c0_37 = arith.constant 0 : index
    %41 = vector.load %arg17[%c0_36, %c0_37] : memref<32x96xbf16, #tpu.memory_space<vmem>>, vector<32x96xbf16>
    %cst_38 = arith.constant dense<0.000000e+00> : vector<2x96xf32>
    %42 = tpu.matmul %40, %41, %cst_38 {dimension_numbers = #tpu.dot_dimension_numbers<[1], [0], [0], [1], [0, 0, 1, 1], [], []>} : vector<2x32xbf16>, vector<32x96xbf16>, vector<2x96xf32> -> vector<2x96xf32>
    %c0_39 = arith.constant 0 : index
    %c0_40 = arith.constant 0 : index
    %43 = vector.load %arg18[%c0_39, %c0_40] : memref<1x96xf32, #tpu.memory_space<vmem>>, vector<1x96xf32>
    %44 = vector.broadcast %43 : vector<1x96xf32> to vector<2x96xf32>
    %45 = arith.addf %42, %44 : vector<2x96xf32>
    %46 = vector.extract_strided_slice %39 {offsets = [0, 0], sizes = [2, 32], strides = [1, 1]} : vector<2x96xf32> to vector<2x32xf32>
    %47 = vector.extract_strided_slice %45 {offsets = [0, 0], sizes = [2, 32], strides = [1, 1]} : vector<2x96xf32> to vector<2x32xf32>
    %48 = arith.addf %46, %47 : vector<2x32xf32>
    %49 = arith.negf %48 : vector<2x32xf32>
    %50 = math.exp %49 : vector<2x32xf32>
    %cst_41 = arith.constant 1.000000e+00 : f32
    %51 = vector.broadcast %cst_41 : f32 to vector<2x32xf32>
    %52 = arith.addf %51, %50 : vector<2x32xf32>
    %53 = arith.divf %51, %52 : vector<2x32xf32>
    %54 = vector.extract_strided_slice %39 {offsets = [0, 32], sizes = [2, 32], strides = [1, 1]} : vector<2x96xf32> to vector<2x32xf32>
    %55 = vector.extract_strided_slice %45 {offsets = [0, 32], sizes = [2, 32], strides = [1, 1]} : vector<2x96xf32> to vector<2x32xf32>
    %56 = arith.addf %54, %55 : vector<2x32xf32>
    %57 = arith.negf %56 : vector<2x32xf32>
    %58 = math.exp %57 : vector<2x32xf32>
    %cst_42 = arith.constant 1.000000e+00 : f32
    %59 = vector.broadcast %cst_42 : f32 to vector<2x32xf32>
    %60 = arith.addf %59, %58 : vector<2x32xf32>
    %61 = arith.divf %59, %60 : vector<2x32xf32>
    %62 = vector.extract_strided_slice %39 {offsets = [0, 64], sizes = [2, 32], strides = [1, 1]} : vector<2x96xf32> to vector<2x32xf32>
    %63 = vector.extract_strided_slice %45 {offsets = [0, 64], sizes = [2, 32], strides = [1, 1]} : vector<2x96xf32> to vector<2x32xf32>
    %64 = arith.mulf %53, %63 : vector<2x32xf32>
    %65 = arith.addf %62, %64 : vector<2x32xf32>
    %66 = math.tanh %65 : vector<2x32xf32>
    %cst_43 = arith.constant 1.000000e+00 : f32
    %67 = vector.broadcast %cst_43 : f32 to vector<2x32xf32>
    %68 = arith.subf %67, %61 : vector<2x32xf32>
    %69 = arith.mulf %68, %66 : vector<2x32xf32>
    %70 = arith.mulf %61, %32 : vector<2x32xf32>
    %71 = arith.addf %69, %70 : vector<2x32xf32>
    %72 = vector.shape_cast %71 : vector<2x32xf32> to vector<2x1x32xf32>
    %73 = vector.broadcast %72 : vector<2x1x32xf32> to vector<2x8x32xf32>
    %74 = arith.mulf %73, %23 : vector<2x8x32xf32>
    %cst_44 = arith.constant dense<0.000000e+00> : vector<2x8xf32>
    %75 = vector.multi_reduction <add>, %74, %cst_44 [2] : vector<2x8x32xf32> to vector<2x8xf32>
    %76 = arith.addf %75, %31 : vector<2x8xf32>
    %cst_45 = arith.constant dense<0xFF800000> : vector<2xf32>
    %77 = vector.multi_reduction <maximumf>, %76, %cst_45 [1] : vector<2x8xf32> to vector<2xf32>
    %78 = vector.shape_cast %77 : vector<2xf32> to vector<2x1xf32>
    %79 = vector.broadcast %78 : vector<2x1xf32> to vector<2x8xf32>
    %80 = arith.subf %76, %79 : vector<2x8xf32>
    %81 = math.exp %80 : vector<2x8xf32>
    %cst_46 = arith.constant dense<0.000000e+00> : vector<2xf32>
    %82 = vector.multi_reduction <add>, %81, %cst_46 [1] : vector<2x8xf32> to vector<2xf32>
    %83 = vector.shape_cast %82 : vector<2xf32> to vector<2x1xf32>
    %84 = tpu.reciprocal %83 {approx = true} : vector<2x1xf32> -> vector<2x1xf32>
    %85 = vector.broadcast %84 : vector<2x1xf32> to vector<2x8xf32>
    %86 = arith.mulf %81, %85 : vector<2x8xf32>
    %87 = vector.shape_cast %86 : vector<2x8xf32> to vector<2x8x1xf32>
    %88 = vector.broadcast %87 : vector<2x8x1xf32> to vector<2x8x32xf32>
    %89 = arith.mulf %88, %25 : vector<2x8x32xf32>
    %cst_47 = arith.constant dense<0.000000e+00> : vector<2x32xf32>
    %90 = vector.multi_reduction <add>, %89, %cst_47 [1] : vector<2x8x32xf32> to vector<2x32xf32>
    %c0_48 = arith.constant 0 : index
    %c0_49 = arith.constant 0 : index
    %c0_50 = arith.constant 0 : index
    %91 = vector.load %arg3[%c0_48, %c0_49, %c0_50] : memref<2x8x1xf32, #tpu.memory_space<vmem>>, vector<2x1x1xf32>
    %92 = vector.shape_cast %91 : vector<2x1x1xf32> to vector<2x1xf32>
    %93 = vector.broadcast %92 : vector<2x1xf32> to vector<2x32xf32>
    %94 = arith.mulf %93, %71 : vector<2x32xf32>
    %cst_51 = arith.constant 1.000000e+00 : f32
    %95 = vector.broadcast %cst_51 : f32 to vector<2x1xf32>
    %96 = arith.subf %95, %92 : vector<2x1xf32>
    %97 = vector.broadcast %96 : vector<2x1xf32> to vector<2x32xf32>
    %98 = arith.mulf %97, %32 : vector<2x32xf32>
    %99 = arith.addf %94, %98 : vector<2x32xf32>
    %100 = vector.broadcast %92 : vector<2x1xf32> to vector<2x32xf32>
    %101 = arith.mulf %100, %90 : vector<2x32xf32>
    %cst_52 = arith.constant 1.000000e+00 : f32
    %102 = vector.broadcast %cst_52 : f32 to vector<2x1xf32>
    %103 = arith.subf %102, %92 : vector<2x1xf32>
    %104 = vector.broadcast %103 : vector<2x1xf32> to vector<2x32xf32>
    %105 = arith.mulf %104, %33 : vector<2x32xf32>
    %106 = arith.addf %101, %105 : vector<2x32xf32>
    %c0_53 = arith.constant 0 : index
    %c0_54 = arith.constant 0 : index
    %c0_55 = arith.constant 0 : index
    %107 = vector.load %arg33[%c0_53, %c0_54, %c0_55] : memref<2x8x32xf32, #tpu.memory_space<vmem>>, vector<2x1x32xf32>
    %108 = vector.shape_cast %107 : vector<2x1x32xf32> to vector<2x32xf32>
    %109 = vector.shape_cast %99 : vector<2x32xf32> to vector<2x1x32xf32>
    tpu.vector_store %arg33[%c0_53, %c0_54, %c0_55], %109 {strides = array<i32>} : memref<2x8x32xf32, #tpu.memory_space<vmem>>, vector<2x1x32xf32>,
    %c0_56 = arith.constant 0 : index
    %c0_57 = arith.constant 0 : index
    %c0_58 = arith.constant 0 : index
    %110 = vector.load %arg34[%c0_56, %c0_57, %c0_58] : memref<2x8x32xf32, #tpu.memory_space<vmem>>, vector<2x1x32xf32>
    %111 = vector.shape_cast %110 : vector<2x1x32xf32> to vector<2x32xf32>
    %112 = vector.shape_cast %106 : vector<2x32xf32> to vector<2x1x32xf32>
    tpu.vector_store %arg34[%c0_56, %c0_57, %c0_58], %112 {strides = array<i32>} : memref<2x8x32xf32, #tpu.memory_space<vmem>>, vector<2x1x32xf32>,
    %c0_59 = arith.constant 0 : index
    %c0_60 = arith.constant 0 : index
    %c0_61 = arith.constant 0 : index
    %113 = vector.load %arg28[%c0_59, %c0_60, %c0_61] : memref<2x8x8xf32, #tpu.memory_space<vmem>>, vector<2x1x8xf32>
    %114 = vector.shape_cast %113 : vector<2x1x8xf32> to vector<2x8xf32>
    %115 = vector.shape_cast %86 : vector<2x8xf32> to vector<2x1x8xf32>
    tpu.vector_store %arg28[%c0_59, %c0_60, %c0_61], %115 {strides = array<i32>} : memref<2x8x8xf32, #tpu.memory_space<vmem>>, vector<2x1x8xf32>,
    %116 = vector.extract_strided_slice %21 {offsets = [0, 1, 0], sizes = [2, 1, 96], strides = [1, 1, 1]} : vector<2x8x96xf32> to vector<2x1x96xf32>
    %117 = vector.shape_cast %116 : vector<2x1x96xf32> to vector<2x96xf32>
    %118 = arith.truncf %106 : vector<2x32xf32> to vector<2x32xbf16>
    %c0_62 = arith.constant 0 : index
    %c0_63 = arith.constant 0 : index
    %119 = vector.load %arg14[%c0_62, %c0_63] : memref<32x96xbf16, #tpu.memory_space<vmem>>, vector<32x96xbf16>
    %cst_64 = arith.constant dense<0.000000e+00> : vector<2x96xf32>
    %120 = tpu.matmul %118, %119, %cst_64 {dimension_numbers = #tpu.dot_dimension_numbers<[1], [0], [0], [1], [0, 0, 1, 1], [], []>} : vector<2x32xbf16>, vector<32x96xbf16>, vector<2x96xf32> -> vector<2x96xf32>
    %121 = arith.addf %117, %120 : vector<2x96xf32>
    %122 = arith.truncf %99 : vector<2x32xf32> to vector<2x32xbf16>
    %c0_65 = arith.constant 0 : index
    %c0_66 = arith.constant 0 : index
    %123 = vector.load %arg17[%c0_65, %c0_66] : memref<32x96xbf16, #tpu.memory_space<vmem>>, vector<32x96xbf16>
    %cst_67 = arith.constant dense<0.000000e+00> : vector<2x96xf32>
    %124 = tpu.matmul %122, %123, %cst_67 {dimension_numbers = #tpu.dot_dimension_numbers<[1], [0], [0], [1], [0, 0, 1, 1], [], []>} : vector<2x32xbf16>, vector<32x96xbf16>, vector<2x96xf32> -> vector<2x96xf32>
    %c0_68 = arith.constant 0 : index
    %c0_69 = arith.constant 0 : index
    %125 = vector.load %arg18[%c0_68, %c0_69] : memref<1x96xf32, #tpu.memory_space<vmem>>, vector<1x96xf32>
    %126 = vector.broadcast %125 : vector<1x96xf32> to vector<2x96xf32>
    %127 = arith.addf %124, %126 : vector<2x96xf32>
    %128 = vector.extract_strided_slice %121 {offsets = [0, 0], sizes = [2, 32], strides = [1, 1]} : vector<2x96xf32> to vector<2x32xf32>
    %129 = vector.extract_strided_slice %127 {offsets = [0, 0], sizes = [2, 32], strides = [1, 1]} : vector<2x96xf32> to vector<2x32xf32>
    %130 = arith.addf %128, %129 : vector<2x32xf32>
    %131 = arith.negf %130 : vector<2x32xf32>
    %132 = math.exp %131 : vector<2x32xf32>
    %cst_70 = arith.constant 1.000000e+00 : f32
    %133 = vector.broadcast %cst_70 : f32 to vector<2x32xf32>
    %134 = arith.addf %133, %132 : vector<2x32xf32>
    %135 = arith.divf %133, %134 : vector<2x32xf32>
    %136 = vector.extract_strided_slice %121 {offsets = [0, 32], sizes = [2, 32], strides = [1, 1]} : vector<2x96xf32> to vector<2x32xf32>
    %137 = vector.extract_strided_slice %127 {offsets = [0, 32], sizes = [2, 32], strides = [1, 1]} : vector<2x96xf32> to vector<2x32xf32>
    %138 = arith.addf %136, %137 : vector<2x32xf32>
    %139 = arith.negf %138 : vector<2x32xf32>
    %140 = math.exp %139 : vector<2x32xf32>
    %cst_71 = arith.constant 1.000000e+00 : f32
    %141 = vector.broadcast %cst_71 : f32 to vector<2x32xf32>
    %142 = arith.addf %141, %140 : vector<2x32xf32>
    %143 = arith.divf %141, %142 : vector<2x32xf32>
    %144 = vector.extract_strided_slice %121 {offsets = [0, 64], sizes = [2, 32], strides = [1, 1]} : vector<2x96xf32> to vector<2x32xf32>
    %145 = vector.extract_strided_slice %127 {offsets = [0, 64], sizes = [2, 32], strides = [1, 1]} : vector<2x96xf32> to vector<2x32xf32>
    %146 = arith.mulf %135, %145 : vector<2x32xf32>
    %147 = arith.addf %144, %146 : vector<2x32xf32>
    %148 = math.tanh %147 : vector<2x32xf32>
    %cst_72 = arith.constant 1.000000e+00 : f32
    %149 = vector.broadcast %cst_72 : f32 to vector<2x32xf32>
    %150 = arith.subf %149, %143 : vector<2x32xf32>
    %151 = arith.mulf %150, %148 : vector<2x32xf32>
    %152 = arith.mulf %143, %99 : vector<2x32xf32>
    %153 = arith.addf %151, %152 : vector<2x32xf32>
    %154 = vector.shape_cast %153 : vector<2x32xf32> to vector<2x1x32xf32>
    %155 = vector.broadcast %154 : vector<2x1x32xf32> to vector<2x8x32xf32>
    %156 = arith.mulf %155, %23 : vector<2x8x32xf32>
    %cst_73 = arith.constant dense<0.000000e+00> : vector<2x8xf32>
    %157 = vector.multi_reduction <add>, %156, %cst_73 [2] : vector<2x8x32xf32> to vector<2x8xf32>
    %158 = arith.addf %157, %31 : vector<2x8xf32>
    %cst_74 = arith.constant dense<0xFF800000> : vector<2xf32>
    %159 = vector.multi_reduction <maximumf>, %158, %cst_74 [1] : vector<2x8xf32> to vector<2xf32>
    %160 = vector.shape_cast %159 : vector<2xf32> to vector<2x1xf32>
    %161 = vector.broadcast %160 : vector<2x1xf32> to vector<2x8xf32>
    %162 = arith.subf %158, %161 : vector<2x8xf32>
    %163 = math.exp %162 : vector<2x8xf32>
    %cst_75 = arith.constant dense<0.000000e+00> : vector<2xf32>
    %164 = vector.multi_reduction <add>, %163, %cst_75 [1] : vector<2x8xf32> to vector<2xf32>
    %165 = vector.shape_cast %164 : vector<2xf32> to vector<2x1xf32>
    %166 = tpu.reciprocal %165 {approx = true} : vector<2x1xf32> -> vector<2x1xf32>
    %167 = vector.broadcast %166 : vector<2x1xf32> to vector<2x8xf32>
    %168 = arith.mulf %163, %167 : vector<2x8xf32>
    %169 = vector.shape_cast %168 : vector<2x8xf32> to vector<2x8x1xf32>
    %170 = vector.broadcast %169 : vector<2x8x1xf32> to vector<2x8x32xf32>
    %171 = arith.mulf %170, %25 : vector<2x8x32xf32>
    %cst_76 = arith.constant dense<0.000000e+00> : vector<2x32xf32>
    %172 = vector.multi_reduction <add>, %171, %cst_76 [1] : vector<2x8x32xf32> to vector<2x32xf32>
    %c0_77 = arith.constant 0 : index
    %c1 = arith.constant 1 : index
    %c0_78 = arith.constant 0 : index
    %173 = vector.load %arg3[%c0_77, %c1, %c0_78] : memref<2x8x1xf32, #tpu.memory_space<vmem>>, vector<2x1x1xf32>
    %174 = vector.shape_cast %173 : vector<2x1x1xf32> to vector<2x1xf32>
    %175 = vector.broadcast %174 : vector<2x1xf32> to vector<2x32xf32>
    %176 = arith.mulf %175, %153 : vector<2x32xf32>
    %cst_79 = arith.constant 1.000000e+00 : f32
    %177 = vector.broadcast %cst_79 : f32 to vector<2x1xf32>
    %178 = arith.subf %177, %174 : vector<2x1xf32>
    %179 = vector.broadcast %178 : vector<2x1xf32> to vector<2x32xf32>
    %180 = arith.mulf %179, %99 : vector<2x32xf32>
    %181 = arith.addf %176, %180 : vector<2x32xf32>
    %182 = vector.broadcast %174 : vector<2x1xf32> to vector<2x32xf32>
    %183 = arith.mulf %182, %172 : vector<2x32xf32>
    %cst_80 = arith.constant 1.000000e+00 : f32
    %184 = vector.broadcast %cst_80 : f32 to vector<2x1xf32>
    %185 = arith.subf %184, %174 : vector<2x1xf32>
    %186 = vector.broadcast %185 : vector<2x1xf32> to vector<2x32xf32>
    %187 = arith.mulf %186, %106 : vector<2x32xf32>
    %188 = arith.addf %183, %187 : vector<2x32xf32>
    %c0_81 = arith.constant 0 : index
    %c1_82 = arith.constant 1 : index
    %c0_83 = arith.constant 0 : index
    %189 = vector.load %arg33[%c0_81, %c1_82, %c0_83] : memref<2x8x32xf32, #tpu.memory_space<vmem>>, vector<2x1x32xf32>
    %190 = vector.shape_cast %189 : vector<2x1x32xf32> to vector<2x32xf32>
    %191 = vector.shape_cast %181 : vector<2x32xf32> to vector<2x1x32xf32>
    tpu.vector_store %arg33[%c0_81, %c1_82, %c0_83], %191 {strides = array<i32>} : memref<2x8x32xf32, #tpu.memory_space<vmem>>, vector<2x1x32xf32>,
    %c0_84 = arith.constant 0 : index
    %c1_85 = arith.constant 1 : index
    %c0_86 = arith.constant 0 : index
    %192 = vector.load %arg34[%c0_84, %c1_85, %c0_86] : memref<2x8x32xf32, #tpu.memory_space<vmem>>, vector<2x1x32xf32>
    %193 = vector.shape_cast %192 : vector<2x1x32xf32> to vector<2x32xf32>
    %194 = vector.shape_cast %188 : vector<2x32xf32> to vector<2x1x32xf32>
    tpu.vector_store %arg34[%c0_84, %c1_85, %c0_86], %194 {strides = array<i32>} : memref<2x8x32xf32, #tpu.memory_space<vmem>>, vector<2x1x32xf32>,
    %c0_87 = arith.constant 0 : index
    %c1_88 = arith.constant 1 : index
    %c0_89 = arith.constant 0 : index
    %195 = vector.load %arg28[%c0_87, %c1_88, %c0_89] : memref<2x8x8xf32, #tpu.memory_space<vmem>>, vector<2x1x8xf32>
    %196 = vector.shape_cast %195 : vector<2x1x8xf32> to vector<2x8xf32>
    %197 = vector.shape_cast %168 : vector<2x8xf32> to vector<2x1x8xf32>
    tpu.vector_store %arg28[%c0_87, %c1_88, %c0_89], %197 {strides = array<i32>} : memref<2x8x8xf32, #tpu.memory_space<vmem>>, vector<2x1x8xf32>,
    %198 = vector.extract_strided_slice %21 {offsets = [0, 2, 0], sizes = [2, 1, 96], strides = [1, 1, 1]} : vector<2x8x96xf32> to vector<2x1x96xf32>
    %199 = vector.shape_cast %198 : vector<2x1x96xf32> to vector<2x96xf32>
    %200 = arith.truncf %188 : vector<2x32xf32> to vector<2x32xbf16>
    %c0_90 = arith.constant 0 : index
    %c0_91 = arith.constant 0 : index
    %201 = vector.load %arg14[%c0_90, %c0_91] : memref<32x96xbf16, #tpu.memory_space<vmem>>, vector<32x96xbf16>
    %cst_92 = arith.constant dense<0.000000e+00> : vector<2x96xf32>
    %202 = tpu.matmul %200, %201, %cst_92 {dimension_numbers = #tpu.dot_dimension_numbers<[1], [0], [0], [1], [0, 0, 1, 1], [], []>} : vector<2x32xbf16>, vector<32x96xbf16>, vector<2x96xf32> -> vector<2x96xf32>
    %203 = arith.addf %199, %202 : vector<2x96xf32>
    %204 = arith.truncf %181 : vector<2x32xf32> to vector<2x32xbf16>
    %c0_93 = arith.constant 0 : index
    %c0_94 = arith.constant 0 : index
    %205 = vector.load %arg17[%c0_93, %c0_94] : memref<32x96xbf16, #tpu.memory_space<vmem>>, vector<32x96xbf16>
    %cst_95 = arith.constant dense<0.000000e+00> : vector<2x96xf32>
    %206 = tpu.matmul %204, %205, %cst_95 {dimension_numbers = #tpu.dot_dimension_numbers<[1], [0], [0], [1], [0, 0, 1, 1], [], []>} : vector<2x32xbf16>, vector<32x96xbf16>, vector<2x96xf32> -> vector<2x96xf32>
    %c0_96 = arith.constant 0 : index
    %c0_97 = arith.constant 0 : index
    %207 = vector.load %arg18[%c0_96, %c0_97] : memref<1x96xf32, #tpu.memory_space<vmem>>, vector<1x96xf32>
    %208 = vector.broadcast %207 : vector<1x96xf32> to vector<2x96xf32>
    %209 = arith.addf %206, %208 : vector<2x96xf32>
    %210 = vector.extract_strided_slice %203 {offsets = [0, 0], sizes = [2, 32], strides = [1, 1]} : vector<2x96xf32> to vector<2x32xf32>
    %211 = vector.extract_strided_slice %209 {offsets = [0, 0], sizes = [2, 32], strides = [1, 1]} : vector<2x96xf32> to vector<2x32xf32>
    %212 = arith.addf %210, %211 : vector<2x32xf32>
    %213 = arith.negf %212 : vector<2x32xf32>
    %214 = math.exp %213 : vector<2x32xf32>
    %cst_98 = arith.constant 1.000000e+00 : f32
    %215 = vector.broadcast %cst_98 : f32 to vector<2x32xf32>
    %216 = arith.addf %215, %214 : vector<2x32xf32>
    %217 = arith.divf %215, %216 : vector<2x32xf32>
    %218 = vector.extract_strided_slice %203 {offsets = [0, 32], sizes = [2, 32], strides = [1, 1]} : vector<2x96xf32> to vector<2x32xf32>
    %219 = vector.extract_strided_slice %209 {offsets = [0, 32], sizes = [2, 32], strides = [1, 1]} : vector<2x96xf32> to vector<2x32xf32>
    %220 = arith.addf %218, %219 : vector<2x32xf32>
    %221 = arith.negf %220 : vector<2x32xf32>
    %222 = math.exp %221 : vector<2x32xf32>
    %cst_99 = arith.constant 1.000000e+00 : f32
    %223 = vector.broadcast %cst_99 : f32 to vector<2x32xf32>
    %224 = arith.addf %223, %222 : vector<2x32xf32>
    %225 = arith.divf %223, %224 : vector<2x32xf32>
    %226 = vector.extract_strided_slice %203 {offsets = [0, 64], sizes = [2, 32], strides = [1, 1]} : vector<2x96xf32> to vector<2x32xf32>
    %227 = vector.extract_strided_slice %209 {offsets = [0, 64], sizes = [2, 32], strides = [1, 1]} : vector<2x96xf32> to vector<2x32xf32>
    %228 = arith.mulf %217, %227 : vector<2x32xf32>
    %229 = arith.addf %226, %228 : vector<2x32xf32>
    %230 = math.tanh %229 : vector<2x32xf32>
    %cst_100 = arith.constant 1.000000e+00 : f32
    %231 = vector.broadcast %cst_100 : f32 to vector<2x32xf32>
    %232 = arith.subf %231, %225 : vector<2x32xf32>
    %233 = arith.mulf %232, %230 : vector<2x32xf32>
    %234 = arith.mulf %225, %181 : vector<2x32xf32>
    %235 = arith.addf %233, %234 : vector<2x32xf32>
    %236 = vector.shape_cast %235 : vector<2x32xf32> to vector<2x1x32xf32>
    %237 = vector.broadcast %236 : vector<2x1x32xf32> to vector<2x8x32xf32>
    %238 = arith.mulf %237, %23 : vector<2x8x32xf32>
    %cst_101 = arith.constant dense<0.000000e+00> : vector<2x8xf32>
    %239 = vector.multi_reduction <add>, %238, %cst_101 [2] : vector<2x8x32xf32> to vector<2x8xf32>
    %240 = arith.addf %239, %31 : vector<2x8xf32>
    %cst_102 = arith.constant dense<0xFF800000> : vector<2xf32>
    %241 = vector.multi_reduction <maximumf>, %240, %cst_102 [1] : vector<2x8xf32> to vector<2xf32>
    %242 = vector.shape_cast %241 : vector<2xf32> to vector<2x1xf32>
    %243 = vector.broadcast %242 : vector<2x1xf32> to vector<2x8xf32>
    %244 = arith.subf %240, %243 : vector<2x8xf32>
    %245 = math.exp %244 : vector<2x8xf32>
    %cst_103 = arith.constant dense<0.000000e+00> : vector<2xf32>
    %246 = vector.multi_reduction <add>, %245, %cst_103 [1] : vector<2x8xf32> to vector<2xf32>
    %247 = vector.shape_cast %246 : vector<2xf32> to vector<2x1xf32>
    %248 = tpu.reciprocal %247 {approx = true} : vector<2x1xf32> -> vector<2x1xf32>
    %249 = vector.broadcast %248 : vector<2x1xf32> to vector<2x8xf32>
    %250 = arith.mulf %245, %249 : vector<2x8xf32>
    %251 = vector.shape_cast %250 : vector<2x8xf32> to vector<2x8x1xf32>
    %252 = vector.broadcast %251 : vector<2x8x1xf32> to vector<2x8x32xf32>
    %253 = arith.mulf %252, %25 : vector<2x8x32xf32>
    %cst_104 = arith.constant dense<0.000000e+00> : vector<2x32xf32>
    %254 = vector.multi_reduction <add>, %253, %cst_104 [1] : vector<2x8x32xf32> to vector<2x32xf32>
    %c0_105 = arith.constant 0 : index
    %c2 = arith.constant 2 : index
    %c0_106 = arith.constant 0 : index
    %255 = vector.load %arg3[%c0_105, %c2, %c0_106] : memref<2x8x1xf32, #tpu.memory_space<vmem>>, vector<2x1x1xf32>
    %256 = vector.shape_cast %255 : vector<2x1x1xf32> to vector<2x1xf32>
    %257 = vector.broadcast %256 : vector<2x1xf32> to vector<2x32xf32>
    %258 = arith.mulf %257, %235 : vector<2x32xf32>
    %cst_107 = arith.constant 1.000000e+00 : f32
    %259 = vector.broadcast %cst_107 : f32 to vector<2x1xf32>
    %260 = arith.subf %259, %256 : vector<2x1xf32>
    %261 = vector.broadcast %260 : vector<2x1xf32> to vector<2x32xf32>
    %262 = arith.mulf %261, %181 : vector<2x32xf32>
    %263 = arith.addf %258, %262 : vector<2x32xf32>
    %264 = vector.broadcast %256 : vector<2x1xf32> to vector<2x32xf32>
    %265 = arith.mulf %264, %254 : vector<2x32xf32>
    %cst_108 = arith.constant 1.000000e+00 : f32
    %266 = vector.broadcast %cst_108 : f32 to vector<2x1xf32>
    %267 = arith.subf %266, %256 : vector<2x1xf32>
    %268 = vector.broadcast %267 : vector<2x1xf32> to vector<2x32xf32>
    %269 = arith.mulf %268, %188 : vector<2x32xf32>
    %270 = arith.addf %265, %269 : vector<2x32xf32>
    %c0_109 = arith.constant 0 : index
    %c2_110 = arith.constant 2 : index
    %c0_111 = arith.constant 0 : index
    %271 = vector.load %arg33[%c0_109, %c2_110, %c0_111] : memref<2x8x32xf32, #tpu.memory_space<vmem>>, vector<2x1x32xf32>
    %272 = vector.shape_cast %271 : vector<2x1x32xf32> to vector<2x32xf32>
    %273 = vector.shape_cast %263 : vector<2x32xf32> to vector<2x1x32xf32>
    tpu.vector_store %arg33[%c0_109, %c2_110, %c0_111], %273 {strides = array<i32>} : memref<2x8x32xf32, #tpu.memory_space<vmem>>, vector<2x1x32xf32>,
    %c0_112 = arith.constant 0 : index
    %c2_113 = arith.constant 2 : index
    %c0_114 = arith.constant 0 : index
    %274 = vector.load %arg34[%c0_112, %c2_113, %c0_114] : memref<2x8x32xf32, #tpu.memory_space<vmem>>, vector<2x1x32xf32>
    %275 = vector.shape_cast %274 : vector<2x1x32xf32> to vector<2x32xf32>
    %276 = vector.shape_cast %270 : vector<2x32xf32> to vector<2x1x32xf32>
    tpu.vector_store %arg34[%c0_112, %c2_113, %c0_114], %276 {strides = array<i32>} : memref<2x8x32xf32, #tpu.memory_space<vmem>>, vector<2x1x32xf32>,
    %c0_115 = arith.constant 0 : index
    %c2_116 = arith.constant 2 : index
    %c0_117 = arith.constant 0 : index
    %277 = vector.load %arg28[%c0_115, %c2_116, %c0_117] : memref<2x8x8xf32, #tpu.memory_space<vmem>>, vector<2x1x8xf32>
    %278 = vector.shape_cast %277 : vector<2x1x8xf32> to vector<2x8xf32>
    %279 = vector.shape_cast %250 : vector<2x8xf32> to vector<2x1x8xf32>
    tpu.vector_store %arg28[%c0_115, %c2_116, %c0_117], %279 {strides = array<i32>} : memref<2x8x8xf32, #tpu.memory_space<vmem>>, vector<2x1x8xf32>,
    %280 = vector.extract_strided_slice %21 {offsets = [0, 3, 0], sizes = [2, 1, 96], strides = [1, 1, 1]} : vector<2x8x96xf32> to vector<2x1x96xf32>
    %281 = vector.shape_cast %280 : vector<2x1x96xf32> to vector<2x96xf32>
    %282 = arith.truncf %270 : vector<2x32xf32> to vector<2x32xbf16>
    %c0_118 = arith.constant 0 : index
    %c0_119 = arith.constant 0 : index
    %283 = vector.load %arg14[%c0_118, %c0_119] : memref<32x96xbf16, #tpu.memory_space<vmem>>, vector<32x96xbf16>
    %cst_120 = arith.constant dense<0.000000e+00> : vector<2x96xf32>
    %284 = tpu.matmul %282, %283, %cst_120 {dimension_numbers = #tpu.dot_dimension_numbers<[1], [0], [0], [1], [0, 0, 1, 1], [], []>} : vector<2x32xbf16>, vector<32x96xbf16>, vector<2x96xf32> -> vector<2x96xf32>
    %285 = arith.addf %281, %284 : vector<2x96xf32>
    %286 = arith.truncf %263 : vector<2x32xf32> to vector<2x32xbf16>
    %c0_121 = arith.constant 0 : index
    %c0_122 = arith.constant 0 : index
    %287 = vector.load %arg17[%c0_121, %c0_122] : memref<32x96xbf16, #tpu.memory_space<vmem>>, vector<32x96xbf16>
    %cst_123 = arith.constant dense<0.000000e+00> : vector<2x96xf32>
    %288 = tpu.matmul %286, %287, %cst_123 {dimension_numbers = #tpu.dot_dimension_numbers<[1], [0], [0], [1], [0, 0, 1, 1], [], []>} : vector<2x32xbf16>, vector<32x96xbf16>, vector<2x96xf32> -> vector<2x96xf32>
    %c0_124 = arith.constant 0 : index
    %c0_125 = arith.constant 0 : index
    %289 = vector.load %arg18[%c0_124, %c0_125] : memref<1x96xf32, #tpu.memory_space<vmem>>, vector<1x96xf32>
    %290 = vector.broadcast %289 : vector<1x96xf32> to vector<2x96xf32>
    %291 = arith.addf %288, %290 : vector<2x96xf32>
    %292 = vector.extract_strided_slice %285 {offsets = [0, 0], sizes = [2, 32], strides = [1, 1]} : vector<2x96xf32> to vector<2x32xf32>
    %293 = vector.extract_strided_slice %291 {offsets = [0, 0], sizes = [2, 32], strides = [1, 1]} : vector<2x96xf32> to vector<2x32xf32>
    %294 = arith.addf %292, %293 : vector<2x32xf32>
    %295 = arith.negf %294 : vector<2x32xf32>
    %296 = math.exp %295 : vector<2x32xf32>
    %cst_126 = arith.constant 1.000000e+00 : f32
    %297 = vector.broadcast %cst_126 : f32 to vector<2x32xf32>
    %298 = arith.addf %297, %296 : vector<2x32xf32>
    %299 = arith.divf %297, %298 : vector<2x32xf32>
    %300 = vector.extract_strided_slice %285 {offsets = [0, 32], sizes = [2, 32], strides = [1, 1]} : vector<2x96xf32> to vector<2x32xf32>
    %301 = vector.extract_strided_slice %291 {offsets = [0, 32], sizes = [2, 32], strides = [1, 1]} : vector<2x96xf32> to vector<2x32xf32>
    %302 = arith.addf %300, %301 : vector<2x32xf32>
    %303 = arith.negf %302 : vector<2x32xf32>
    %304 = math.exp %303 : vector<2x32xf32>
    %cst_127 = arith.constant 1.000000e+00 : f32
    %305 = vector.broadcast %cst_127 : f32 to vector<2x32xf32>
    %306 = arith.addf %305, %304 : vector<2x32xf32>
    %307 = arith.divf %305, %306 : vector<2x32xf32>
    %308 = vector.extract_strided_slice %285 {offsets = [0, 64], sizes = [2, 32], strides = [1, 1]} : vector<2x96xf32> to vector<2x32xf32>
    %309 = vector.extract_strided_slice %291 {offsets = [0, 64], sizes = [2, 32], strides = [1, 1]} : vector<2x96xf32> to vector<2x32xf32>
    %310 = arith.mulf %299, %309 : vector<2x32xf32>
    %311 = arith.addf %308, %310 : vector<2x32xf32>
    %312 = math.tanh %311 : vector<2x32xf32>
    %cst_128 = arith.constant 1.000000e+00 : f32
    %313 = vector.broadcast %cst_128 : f32 to vector<2x32xf32>
    %314 = arith.subf %313, %307 : vector<2x32xf32>
    %315 = arith.mulf %314, %312 : vector<2x32xf32>
    %316 = arith.mulf %307, %263 : vector<2x32xf32>
    %317 = arith.addf %315, %316 : vector<2x32xf32>
    %318 = vector.shape_cast %317 : vector<2x32xf32> to vector<2x1x32xf32>
    %319 = vector.broadcast %318 : vector<2x1x32xf32> to vector<2x8x32xf32>
    %320 = arith.mulf %319, %23 : vector<2x8x32xf32>
    %cst_129 = arith.constant dense<0.000000e+00> : vector<2x8xf32>
    %321 = vector.multi_reduction <add>, %320, %cst_129 [2] : vector<2x8x32xf32> to vector<2x8xf32>
    %322 = arith.addf %321, %31 : vector<2x8xf32>
    %cst_130 = arith.constant dense<0xFF800000> : vector<2xf32>
    %323 = vector.multi_reduction <maximumf>, %322, %cst_130 [1] : vector<2x8xf32> to vector<2xf32>
    %324 = vector.shape_cast %323 : vector<2xf32> to vector<2x1xf32>
    %325 = vector.broadcast %324 : vector<2x1xf32> to vector<2x8xf32>
    %326 = arith.subf %322, %325 : vector<2x8xf32>
    %327 = math.exp %326 : vector<2x8xf32>
    %cst_131 = arith.constant dense<0.000000e+00> : vector<2xf32>
    %328 = vector.multi_reduction <add>, %327, %cst_131 [1] : vector<2x8xf32> to vector<2xf32>
    %329 = vector.shape_cast %328 : vector<2xf32> to vector<2x1xf32>
    %330 = tpu.reciprocal %329 {approx = true} : vector<2x1xf32> -> vector<2x1xf32>
    %331 = vector.broadcast %330 : vector<2x1xf32> to vector<2x8xf32>
    %332 = arith.mulf %327, %331 : vector<2x8xf32>
    %333 = vector.shape_cast %332 : vector<2x8xf32> to vector<2x8x1xf32>
    %334 = vector.broadcast %333 : vector<2x8x1xf32> to vector<2x8x32xf32>
    %335 = arith.mulf %334, %25 : vector<2x8x32xf32>
    %cst_132 = arith.constant dense<0.000000e+00> : vector<2x32xf32>
    %336 = vector.multi_reduction <add>, %335, %cst_132 [1] : vector<2x8x32xf32> to vector<2x32xf32>
    %c0_133 = arith.constant 0 : index
    %c3 = arith.constant 3 : index
    %c0_134 = arith.constant 0 : index
    %337 = vector.load %arg3[%c0_133, %c3, %c0_134] : memref<2x8x1xf32, #tpu.memory_space<vmem>>, vector<2x1x1xf32>
    %338 = vector.shape_cast %337 : vector<2x1x1xf32> to vector<2x1xf32>
    %339 = vector.broadcast %338 : vector<2x1xf32> to vector<2x32xf32>
    %340 = arith.mulf %339, %317 : vector<2x32xf32>
    %cst_135 = arith.constant 1.000000e+00 : f32
    %341 = vector.broadcast %cst_135 : f32 to vector<2x1xf32>
    %342 = arith.subf %341, %338 : vector<2x1xf32>
    %343 = vector.broadcast %342 : vector<2x1xf32> to vector<2x32xf32>
    %344 = arith.mulf %343, %263 : vector<2x32xf32>
    %345 = arith.addf %340, %344 : vector<2x32xf32>
    %346 = vector.broadcast %338 : vector<2x1xf32> to vector<2x32xf32>
    %347 = arith.mulf %346, %336 : vector<2x32xf32>
    %cst_136 = arith.constant 1.000000e+00 : f32
    %348 = vector.broadcast %cst_136 : f32 to vector<2x1xf32>
    %349 = arith.subf %348, %338 : vector<2x1xf32>
    %350 = vector.broadcast %349 : vector<2x1xf32> to vector<2x32xf32>
    %351 = arith.mulf %350, %270 : vector<2x32xf32>
    %352 = arith.addf %347, %351 : vector<2x32xf32>
    %c0_137 = arith.constant 0 : index
    %c3_138 = arith.constant 3 : index
    %c0_139 = arith.constant 0 : index
    %353 = vector.load %arg33[%c0_137, %c3_138, %c0_139] : memref<2x8x32xf32, #tpu.memory_space<vmem>>, vector<2x1x32xf32>
    %354 = vector.shape_cast %353 : vector<2x1x32xf32> to vector<2x32xf32>
    %355 = vector.shape_cast %345 : vector<2x32xf32> to vector<2x1x32xf32>
    tpu.vector_store %arg33[%c0_137, %c3_138, %c0_139], %355 {strides = array<i32>} : memref<2x8x32xf32, #tpu.memory_space<vmem>>, vector<2x1x32xf32>,
    %c0_140 = arith.constant 0 : index
    %c3_141 = arith.constant 3 : index
    %c0_142 = arith.constant 0 : index
    %356 = vector.load %arg34[%c0_140, %c3_141, %c0_142] : memref<2x8x32xf32, #tpu.memory_space<vmem>>, vector<2x1x32xf32>
    %357 = vector.shape_cast %356 : vector<2x1x32xf32> to vector<2x32xf32>
    %358 = vector.shape_cast %352 : vector<2x32xf32> to vector<2x1x32xf32>
    tpu.vector_store %arg34[%c0_140, %c3_141, %c0_142], %358 {strides = array<i32>} : memref<2x8x32xf32, #tpu.memory_space<vmem>>, vector<2x1x32xf32>,
    %c0_143 = arith.constant 0 : index
    %c3_144 = arith.constant 3 : index
    %c0_145 = arith.constant 0 : index
    %359 = vector.load %arg28[%c0_143, %c3_144, %c0_145] : memref<2x8x8xf32, #tpu.memory_space<vmem>>, vector<2x1x8xf32>
    %360 = vector.shape_cast %359 : vector<2x1x8xf32> to vector<2x8xf32>
    %361 = vector.shape_cast %332 : vector<2x8xf32> to vector<2x1x8xf32>
    tpu.vector_store %arg28[%c0_143, %c3_144, %c0_145], %361 {strides = array<i32>} : memref<2x8x8xf32, #tpu.memory_space<vmem>>, vector<2x1x8xf32>,
    %362 = vector.extract_strided_slice %21 {offsets = [0, 4, 0], sizes = [2, 1, 96], strides = [1, 1, 1]} : vector<2x8x96xf32> to vector<2x1x96xf32>
    %363 = vector.shape_cast %362 : vector<2x1x96xf32> to vector<2x96xf32>
    %364 = arith.truncf %352 : vector<2x32xf32> to vector<2x32xbf16>
    %c0_146 = arith.constant 0 : index
    %c0_147 = arith.constant 0 : index
    %365 = vector.load %arg14[%c0_146, %c0_147] : memref<32x96xbf16, #tpu.memory_space<vmem>>, vector<32x96xbf16>
    %cst_148 = arith.constant dense<0.000000e+00> : vector<2x96xf32>
    %366 = tpu.matmul %364, %365, %cst_148 {dimension_numbers = #tpu.dot_dimension_numbers<[1], [0], [0], [1], [0, 0, 1, 1], [], []>} : vector<2x32xbf16>, vector<32x96xbf16>, vector<2x96xf32> -> vector<2x96xf32>
    %367 = arith.addf %363, %366 : vector<2x96xf32>
    %368 = arith.truncf %345 : vector<2x32xf32> to vector<2x32xbf16>
    %c0_149 = arith.constant 0 : index
    %c0_150 = arith.constant 0 : index
    %369 = vector.load %arg17[%c0_149, %c0_150] : memref<32x96xbf16, #tpu.memory_space<vmem>>, vector<32x96xbf16>
    %cst_151 = arith.constant dense<0.000000e+00> : vector<2x96xf32>
    %370 = tpu.matmul %368, %369, %cst_151 {dimension_numbers = #tpu.dot_dimension_numbers<[1], [0], [0], [1], [0, 0, 1, 1], [], []>} : vector<2x32xbf16>, vector<32x96xbf16>, vector<2x96xf32> -> vector<2x96xf32>
    %c0_152 = arith.constant 0 : index
    %c0_153 = arith.constant 0 : index
    %371 = vector.load %arg18[%c0_152, %c0_153] : memref<1x96xf32, #tpu.memory_space<vmem>>, vector<1x96xf32>
    %372 = vector.broadcast %371 : vector<1x96xf32> to vector<2x96xf32>
    %373 = arith.addf %370, %372 : vector<2x96xf32>
    %374 = vector.extract_strided_slice %367 {offsets = [0, 0], sizes = [2, 32], strides = [1, 1]} : vector<2x96xf32> to vector<2x32xf32>
    %375 = vector.extract_strided_slice %373 {offsets = [0, 0], sizes = [2, 32], strides = [1, 1]} : vector<2x96xf32> to vector<2x32xf32>
    %376 = arith.addf %374, %375 : vector<2x32xf32>
    %377 = arith.negf %376 : vector<2x32xf32>
    %378 = math.exp %377 : vector<2x32xf32>
    %cst_154 = arith.constant 1.000000e+00 : f32
    %379 = vector.broadcast %cst_154 : f32 to vector<2x32xf32>
    %380 = arith.addf %379, %378 : vector<2x32xf32>
    %381 = arith.divf %379, %380 : vector<2x32xf32>
    %382 = vector.extract_strided_slice %367 {offsets = [0, 32], sizes = [2, 32], strides = [1, 1]} : vector<2x96xf32> to vector<2x32xf32>
    %383 = vector.extract_strided_slice %373 {offsets = [0, 32], sizes = [2, 32], strides = [1, 1]} : vector<2x96xf32> to vector<2x32xf32>
    %384 = arith.addf %382, %383 : vector<2x32xf32>
    %385 = arith.negf %384 : vector<2x32xf32>
    %386 = math.exp %385 : vector<2x32xf32>
    %cst_155 = arith.constant 1.000000e+00 : f32
    %387 = vector.broadcast %cst_155 : f32 to vector<2x32xf32>
    %388 = arith.addf %387, %386 : vector<2x32xf32>
    %389 = arith.divf %387, %388 : vector<2x32xf32>
    %390 = vector.extract_strided_slice %367 {offsets = [0, 64], sizes = [2, 32], strides = [1, 1]} : vector<2x96xf32> to vector<2x32xf32>
    %391 = vector.extract_strided_slice %373 {offsets = [0, 64], sizes = [2, 32], strides = [1, 1]} : vector<2x96xf32> to vector<2x32xf32>
    %392 = arith.mulf %381, %391 : vector<2x32xf32>
    %393 = arith.addf %390, %392 : vector<2x32xf32>
    %394 = math.tanh %393 : vector<2x32xf32>
    %cst_156 = arith.constant 1.000000e+00 : f32
    %395 = vector.broadcast %cst_156 : f32 to vector<2x32xf32>
    %396 = arith.subf %395, %389 : vector<2x32xf32>
    %397 = arith.mulf %396, %394 : vector<2x32xf32>
    %398 = arith.mulf %389, %345 : vector<2x32xf32>
    %399 = arith.addf %397, %398 : vector<2x32xf32>
    %400 = vector.shape_cast %399 : vector<2x32xf32> to vector<2x1x32xf32>
    %401 = vector.broadcast %400 : vector<2x1x32xf32> to vector<2x8x32xf32>
    %402 = arith.mulf %401, %23 : vector<2x8x32xf32>
    %cst_157 = arith.constant dense<0.000000e+00> : vector<2x8xf32>
    %403 = vector.multi_reduction <add>, %402, %cst_157 [2] : vector<2x8x32xf32> to vector<2x8xf32>
    %404 = arith.addf %403, %31 : vector<2x8xf32>
    %cst_158 = arith.constant dense<0xFF800000> : vector<2xf32>
    %405 = vector.multi_reduction <maximumf>, %404, %cst_158 [1] : vector<2x8xf32> to vector<2xf32>
    %406 = vector.shape_cast %405 : vector<2xf32> to vector<2x1xf32>
    %407 = vector.broadcast %406 : vector<2x1xf32> to vector<2x8xf32>
    %408 = arith.subf %404, %407 : vector<2x8xf32>
    %409 = math.exp %408 : vector<2x8xf32>
    %cst_159 = arith.constant dense<0.000000e+00> : vector<2xf32>
    %410 = vector.multi_reduction <add>, %409, %cst_159 [1] : vector<2x8xf32> to vector<2xf32>
    %411 = vector.shape_cast %410 : vector<2xf32> to vector<2x1xf32>
    %412 = tpu.reciprocal %411 {approx = true} : vector<2x1xf32> -> vector<2x1xf32>
    %413 = vector.broadcast %412 : vector<2x1xf32> to vector<2x8xf32>
    %414 = arith.mulf %409, %413 : vector<2x8xf32>
    %415 = vector.shape_cast %414 : vector<2x8xf32> to vector<2x8x1xf32>
    %416 = vector.broadcast %415 : vector<2x8x1xf32> to vector<2x8x32xf32>
    %417 = arith.mulf %416, %25 : vector<2x8x32xf32>
    %cst_160 = arith.constant dense<0.000000e+00> : vector<2x32xf32>
    %418 = vector.multi_reduction <add>, %417, %cst_160 [1] : vector<2x8x32xf32> to vector<2x32xf32>
    %c0_161 = arith.constant 0 : index
    %c4 = arith.constant 4 : index
    %c0_162 = arith.constant 0 : index
    %419 = vector.load %arg3[%c0_161, %c4, %c0_162] : memref<2x8x1xf32, #tpu.memory_space<vmem>>, vector<2x1x1xf32>
    %420 = vector.shape_cast %419 : vector<2x1x1xf32> to vector<2x1xf32>
    %421 = vector.broadcast %420 : vector<2x1xf32> to vector<2x32xf32>
    %422 = arith.mulf %421, %399 : vector<2x32xf32>
    %cst_163 = arith.constant 1.000000e+00 : f32
    %423 = vector.broadcast %cst_163 : f32 to vector<2x1xf32>
    %424 = arith.subf %423, %420 : vector<2x1xf32>
    %425 = vector.broadcast %424 : vector<2x1xf32> to vector<2x32xf32>
    %426 = arith.mulf %425, %345 : vector<2x32xf32>
    %427 = arith.addf %422, %426 : vector<2x32xf32>
    %428 = vector.broadcast %420 : vector<2x1xf32> to vector<2x32xf32>
    %429 = arith.mulf %428, %418 : vector<2x32xf32>
    %cst_164 = arith.constant 1.000000e+00 : f32
    %430 = vector.broadcast %cst_164 : f32 to vector<2x1xf32>
    %431 = arith.subf %430, %420 : vector<2x1xf32>
    %432 = vector.broadcast %431 : vector<2x1xf32> to vector<2x32xf32>
    %433 = arith.mulf %432, %352 : vector<2x32xf32>
    %434 = arith.addf %429, %433 : vector<2x32xf32>
    %c0_165 = arith.constant 0 : index
    %c4_166 = arith.constant 4 : index
    %c0_167 = arith.constant 0 : index
    %435 = vector.load %arg33[%c0_165, %c4_166, %c0_167] : memref<2x8x32xf32, #tpu.memory_space<vmem>>, vector<2x1x32xf32>
    %436 = vector.shape_cast %435 : vector<2x1x32xf32> to vector<2x32xf32>
    %437 = vector.shape_cast %427 : vector<2x32xf32> to vector<2x1x32xf32>
    tpu.vector_store %arg33[%c0_165, %c4_166, %c0_167], %437 {strides = array<i32>} : memref<2x8x32xf32, #tpu.memory_space<vmem>>, vector<2x1x32xf32>,
    %c0_168 = arith.constant 0 : index
    %c4_169 = arith.constant 4 : index
    %c0_170 = arith.constant 0 : index
    %438 = vector.load %arg34[%c0_168, %c4_169, %c0_170] : memref<2x8x32xf32, #tpu.memory_space<vmem>>, vector<2x1x32xf32>
    %439 = vector.shape_cast %438 : vector<2x1x32xf32> to vector<2x32xf32>
    %440 = vector.shape_cast %434 : vector<2x32xf32> to vector<2x1x32xf32>
    tpu.vector_store %arg34[%c0_168, %c4_169, %c0_170], %440 {strides = array<i32>} : memref<2x8x32xf32, #tpu.memory_space<vmem>>, vector<2x1x32xf32>,
    %c0_171 = arith.constant 0 : index
    %c4_172 = arith.constant 4 : index
    %c0_173 = arith.constant 0 : index
    %441 = vector.load %arg28[%c0_171, %c4_172, %c0_173] : memref<2x8x8xf32, #tpu.memory_space<vmem>>, vector<2x1x8xf32>
    %442 = vector.shape_cast %441 : vector<2x1x8xf32> to vector<2x8xf32>
    %443 = vector.shape_cast %414 : vector<2x8xf32> to vector<2x1x8xf32>
    tpu.vector_store %arg28[%c0_171, %c4_172, %c0_173], %443 {strides = array<i32>} : memref<2x8x8xf32, #tpu.memory_space<vmem>>, vector<2x1x8xf32>,
    %444 = vector.extract_strided_slice %21 {offsets = [0, 5, 0], sizes = [2, 1, 96], strides = [1, 1, 1]} : vector<2x8x96xf32> to vector<2x1x96xf32>
    %445 = vector.shape_cast %444 : vector<2x1x96xf32> to vector<2x96xf32>
    %446 = arith.truncf %434 : vector<2x32xf32> to vector<2x32xbf16>
    %c0_174 = arith.constant 0 : index
    %c0_175 = arith.constant 0 : index
    %447 = vector.load %arg14[%c0_174, %c0_175] : memref<32x96xbf16, #tpu.memory_space<vmem>>, vector<32x96xbf16>
    %cst_176 = arith.constant dense<0.000000e+00> : vector<2x96xf32>
    %448 = tpu.matmul %446, %447, %cst_176 {dimension_numbers = #tpu.dot_dimension_numbers<[1], [0], [0], [1], [0, 0, 1, 1], [], []>} : vector<2x32xbf16>, vector<32x96xbf16>, vector<2x96xf32> -> vector<2x96xf32>
    %449 = arith.addf %445, %448 : vector<2x96xf32>
    %450 = arith.truncf %427 : vector<2x32xf32> to vector<2x32xbf16>
    %c0_177 = arith.constant 0 : index
    %c0_178 = arith.constant 0 : index
    %451 = vector.load %arg17[%c0_177, %c0_178] : memref<32x96xbf16, #tpu.memory_space<vmem>>, vector<32x96xbf16>
    %cst_179 = arith.constant dense<0.000000e+00> : vector<2x96xf32>
    %452 = tpu.matmul %450, %451, %cst_179 {dimension_numbers = #tpu.dot_dimension_numbers<[1], [0], [0], [1], [0, 0, 1, 1], [], []>} : vector<2x32xbf16>, vector<32x96xbf16>, vector<2x96xf32> -> vector<2x96xf32>
    %c0_180 = arith.constant 0 : index
    %c0_181 = arith.constant 0 : index
    %453 = vector.load %arg18[%c0_180, %c0_181] : memref<1x96xf32, #tpu.memory_space<vmem>>, vector<1x96xf32>
    %454 = vector.broadcast %453 : vector<1x96xf32> to vector<2x96xf32>
    %455 = arith.addf %452, %454 : vector<2x96xf32>
    %456 = vector.extract_strided_slice %449 {offsets = [0, 0], sizes = [2, 32], strides = [1, 1]} : vector<2x96xf32> to vector<2x32xf32>
    %457 = vector.extract_strided_slice %455 {offsets = [0, 0], sizes = [2, 32], strides = [1, 1]} : vector<2x96xf32> to vector<2x32xf32>
    %458 = arith.addf %456, %457 : vector<2x32xf32>
    %459 = arith.negf %458 : vector<2x32xf32>
    %460 = math.exp %459 : vector<2x32xf32>
    %cst_182 = arith.constant 1.000000e+00 : f32
    %461 = vector.broadcast %cst_182 : f32 to vector<2x32xf32>
    %462 = arith.addf %461, %460 : vector<2x32xf32>
    %463 = arith.divf %461, %462 : vector<2x32xf32>
    %464 = vector.extract_strided_slice %449 {offsets = [0, 32], sizes = [2, 32], strides = [1, 1]} : vector<2x96xf32> to vector<2x32xf32>
    %465 = vector.extract_strided_slice %455 {offsets = [0, 32], sizes = [2, 32], strides = [1, 1]} : vector<2x96xf32> to vector<2x32xf32>
    %466 = arith.addf %464, %465 : vector<2x32xf32>
    %467 = arith.negf %466 : vector<2x32xf32>
    %468 = math.exp %467 : vector<2x32xf32>
    %cst_183 = arith.constant 1.000000e+00 : f32
    %469 = vector.broadcast %cst_183 : f32 to vector<2x32xf32>
    %470 = arith.addf %469, %468 : vector<2x32xf32>
    %471 = arith.divf %469, %470 : vector<2x32xf32>
    %472 = vector.extract_strided_slice %449 {offsets = [0, 64], sizes = [2, 32], strides = [1, 1]} : vector<2x96xf32> to vector<2x32xf32>
    %473 = vector.extract_strided_slice %455 {offsets = [0, 64], sizes = [2, 32], strides = [1, 1]} : vector<2x96xf32> to vector<2x32xf32>
    %474 = arith.mulf %463, %473 : vector<2x32xf32>
    %475 = arith.addf %472, %474 : vector<2x32xf32>
    %476 = math.tanh %475 : vector<2x32xf32>
    %cst_184 = arith.constant 1.000000e+00 : f32
    %477 = vector.broadcast %cst_184 : f32 to vector<2x32xf32>
    %478 = arith.subf %477, %471 : vector<2x32xf32>
    %479 = arith.mulf %478, %476 : vector<2x32xf32>
    %480 = arith.mulf %471, %427 : vector<2x32xf32>
    %481 = arith.addf %479, %480 : vector<2x32xf32>
    %482 = vector.shape_cast %481 : vector<2x32xf32> to vector<2x1x32xf32>
    %483 = vector.broadcast %482 : vector<2x1x32xf32> to vector<2x8x32xf32>
    %484 = arith.mulf %483, %23 : vector<2x8x32xf32>
    %cst_185 = arith.constant dense<0.000000e+00> : vector<2x8xf32>
    %485 = vector.multi_reduction <add>, %484, %cst_185 [2] : vector<2x8x32xf32> to vector<2x8xf32>
    %486 = arith.addf %485, %31 : vector<2x8xf32>
    %cst_186 = arith.constant dense<0xFF800000> : vector<2xf32>
    %487 = vector.multi_reduction <maximumf>, %486, %cst_186 [1] : vector<2x8xf32> to vector<2xf32>
    %488 = vector.shape_cast %487 : vector<2xf32> to vector<2x1xf32>
    %489 = vector.broadcast %488 : vector<2x1xf32> to vector<2x8xf32>
    %490 = arith.subf %486, %489 : vector<2x8xf32>
    %491 = math.exp %490 : vector<2x8xf32>
    %cst_187 = arith.constant dense<0.000000e+00> : vector<2xf32>
    %492 = vector.multi_reduction <add>, %491, %cst_187 [1] : vector<2x8xf32> to vector<2xf32>
    %493 = vector.shape_cast %492 : vector<2xf32> to vector<2x1xf32>
    %494 = tpu.reciprocal %493 {approx = true} : vector<2x1xf32> -> vector<2x1xf32>
    %495 = vector.broadcast %494 : vector<2x1xf32> to vector<2x8xf32>
    %496 = arith.mulf %491, %495 : vector<2x8xf32>
    %497 = vector.shape_cast %496 : vector<2x8xf32> to vector<2x8x1xf32>
    %498 = vector.broadcast %497 : vector<2x8x1xf32> to vector<2x8x32xf32>
    %499 = arith.mulf %498, %25 : vector<2x8x32xf32>
    %cst_188 = arith.constant dense<0.000000e+00> : vector<2x32xf32>
    %500 = vector.multi_reduction <add>, %499, %cst_188 [1] : vector<2x8x32xf32> to vector<2x32xf32>
    %c0_189 = arith.constant 0 : index
    %c5 = arith.constant 5 : index
    %c0_190 = arith.constant 0 : index
    %501 = vector.load %arg3[%c0_189, %c5, %c0_190] : memref<2x8x1xf32, #tpu.memory_space<vmem>>, vector<2x1x1xf32>
    %502 = vector.shape_cast %501 : vector<2x1x1xf32> to vector<2x1xf32>
    %503 = vector.broadcast %502 : vector<2x1xf32> to vector<2x32xf32>
    %504 = arith.mulf %503, %481 : vector<2x32xf32>
    %cst_191 = arith.constant 1.000000e+00 : f32
    %505 = vector.broadcast %cst_191 : f32 to vector<2x1xf32>
    %506 = arith.subf %505, %502 : vector<2x1xf32>
    %507 = vector.broadcast %506 : vector<2x1xf32> to vector<2x32xf32>
    %508 = arith.mulf %507, %427 : vector<2x32xf32>
    %509 = arith.addf %504, %508 : vector<2x32xf32>
    %510 = vector.broadcast %502 : vector<2x1xf32> to vector<2x32xf32>
    %511 = arith.mulf %510, %500 : vector<2x32xf32>
    %cst_192 = arith.constant 1.000000e+00 : f32
    %512 = vector.broadcast %cst_192 : f32 to vector<2x1xf32>
    %513 = arith.subf %512, %502 : vector<2x1xf32>
    %514 = vector.broadcast %513 : vector<2x1xf32> to vector<2x32xf32>
    %515 = arith.mulf %514, %434 : vector<2x32xf32>
    %516 = arith.addf %511, %515 : vector<2x32xf32>
    %c0_193 = arith.constant 0 : index
    %c5_194 = arith.constant 5 : index
    %c0_195 = arith.constant 0 : index
    %517 = vector.load %arg33[%c0_193, %c5_194, %c0_195] : memref<2x8x32xf32, #tpu.memory_space<vmem>>, vector<2x1x32xf32>
    %518 = vector.shape_cast %517 : vector<2x1x32xf32> to vector<2x32xf32>
    %519 = vector.shape_cast %509 : vector<2x32xf32> to vector<2x1x32xf32>
    tpu.vector_store %arg33[%c0_193, %c5_194, %c0_195], %519 {strides = array<i32>} : memref<2x8x32xf32, #tpu.memory_space<vmem>>, vector<2x1x32xf32>,
    %c0_196 = arith.constant 0 : index
    %c5_197 = arith.constant 5 : index
    %c0_198 = arith.constant 0 : index
    %520 = vector.load %arg34[%c0_196, %c5_197, %c0_198] : memref<2x8x32xf32, #tpu.memory_space<vmem>>, vector<2x1x32xf32>
    %521 = vector.shape_cast %520 : vector<2x1x32xf32> to vector<2x32xf32>
    %522 = vector.shape_cast %516 : vector<2x32xf32> to vector<2x1x32xf32>
    tpu.vector_store %arg34[%c0_196, %c5_197, %c0_198], %522 {strides = array<i32>} : memref<2x8x32xf32, #tpu.memory_space<vmem>>, vector<2x1x32xf32>,
    %c0_199 = arith.constant 0 : index
    %c5_200 = arith.constant 5 : index
    %c0_201 = arith.constant 0 : index
    %523 = vector.load %arg28[%c0_199, %c5_200, %c0_201] : memref<2x8x8xf32, #tpu.memory_space<vmem>>, vector<2x1x8xf32>
    %524 = vector.shape_cast %523 : vector<2x1x8xf32> to vector<2x8xf32>
    %525 = vector.shape_cast %496 : vector<2x8xf32> to vector<2x1x8xf32>
    tpu.vector_store %arg28[%c0_199, %c5_200, %c0_201], %525 {strides = array<i32>} : memref<2x8x8xf32, #tpu.memory_space<vmem>>, vector<2x1x8xf32>,
    %526 = vector.extract_strided_slice %21 {offsets = [0, 6, 0], sizes = [2, 1, 96], strides = [1, 1, 1]} : vector<2x8x96xf32> to vector<2x1x96xf32>
    %527 = vector.shape_cast %526 : vector<2x1x96xf32> to vector<2x96xf32>
    %528 = arith.truncf %516 : vector<2x32xf32> to vector<2x32xbf16>
    %c0_202 = arith.constant 0 : index
    %c0_203 = arith.constant 0 : index
    %529 = vector.load %arg14[%c0_202, %c0_203] : memref<32x96xbf16, #tpu.memory_space<vmem>>, vector<32x96xbf16>
    %cst_204 = arith.constant dense<0.000000e+00> : vector<2x96xf32>
    %530 = tpu.matmul %528, %529, %cst_204 {dimension_numbers = #tpu.dot_dimension_numbers<[1], [0], [0], [1], [0, 0, 1, 1], [], []>} : vector<2x32xbf16>, vector<32x96xbf16>, vector<2x96xf32> -> vector<2x96xf32>
    %531 = arith.addf %527, %530 : vector<2x96xf32>
    %532 = arith.truncf %509 : vector<2x32xf32> to vector<2x32xbf16>
    %c0_205 = arith.constant 0 : index
    %c0_206 = arith.constant 0 : index
    %533 = vector.load %arg17[%c0_205, %c0_206] : memref<32x96xbf16, #tpu.memory_space<vmem>>, vector<32x96xbf16>
    %cst_207 = arith.constant dense<0.000000e+00> : vector<2x96xf32>
    %534 = tpu.matmul %532, %533, %cst_207 {dimension_numbers = #tpu.dot_dimension_numbers<[1], [0], [0], [1], [0, 0, 1, 1], [], []>} : vector<2x32xbf16>, vector<32x96xbf16>, vector<2x96xf32> -> vector<2x96xf32>
    %c0_208 = arith.constant 0 : index
    %c0_209 = arith.constant 0 : index
    %535 = vector.load %arg18[%c0_208, %c0_209] : memref<1x96xf32, #tpu.memory_space<vmem>>, vector<1x96xf32>
    %536 = vector.broadcast %535 : vector<1x96xf32> to vector<2x96xf32>
    %537 = arith.addf %534, %536 : vector<2x96xf32>
    %538 = vector.extract_strided_slice %531 {offsets = [0, 0], sizes = [2, 32], strides = [1, 1]} : vector<2x96xf32> to vector<2x32xf32>
    %539 = vector.extract_strided_slice %537 {offsets = [0, 0], sizes = [2, 32], strides = [1, 1]} : vector<2x96xf32> to vector<2x32xf32>
    %540 = arith.addf %538, %539 : vector<2x32xf32>
    %541 = arith.negf %540 : vector<2x32xf32>
    %542 = math.exp %541 : vector<2x32xf32>
    %cst_210 = arith.constant 1.000000e+00 : f32
    %543 = vector.broadcast %cst_210 : f32 to vector<2x32xf32>
    %544 = arith.addf %543, %542 : vector<2x32xf32>
    %545 = arith.divf %543, %544 : vector<2x32xf32>
    %546 = vector.extract_strided_slice %531 {offsets = [0, 32], sizes = [2, 32], strides = [1, 1]} : vector<2x96xf32> to vector<2x32xf32>
    %547 = vector.extract_strided_slice %537 {offsets = [0, 32], sizes = [2, 32], strides = [1, 1]} : vector<2x96xf32> to vector<2x32xf32>
    %548 = arith.addf %546, %547 : vector<2x32xf32>
    %549 = arith.negf %548 : vector<2x32xf32>
    %550 = math.exp %549 : vector<2x32xf32>
    %cst_211 = arith.constant 1.000000e+00 : f32
    %551 = vector.broadcast %cst_211 : f32 to vector<2x32xf32>
    %552 = arith.addf %551, %550 : vector<2x32xf32>
    %553 = arith.divf %551, %552 : vector<2x32xf32>
    %554 = vector.extract_strided_slice %531 {offsets = [0, 64], sizes = [2, 32], strides = [1, 1]} : vector<2x96xf32> to vector<2x32xf32>
    %555 = vector.extract_strided_slice %537 {offsets = [0, 64], sizes = [2, 32], strides = [1, 1]} : vector<2x96xf32> to vector<2x32xf32>
    %556 = arith.mulf %545, %555 : vector<2x32xf32>
    %557 = arith.addf %554, %556 : vector<2x32xf32>
    %558 = math.tanh %557 : vector<2x32xf32>
    %cst_212 = arith.constant 1.000000e+00 : f32
    %559 = vector.broadcast %cst_212 : f32 to vector<2x32xf32>
    %560 = arith.subf %559, %553 : vector<2x32xf32>
    %561 = arith.mulf %560, %558 : vector<2x32xf32>
    %562 = arith.mulf %553, %509 : vector<2x32xf32>
    %563 = arith.addf %561, %562 : vector<2x32xf32>
    %564 = vector.shape_cast %563 : vector<2x32xf32> to vector<2x1x32xf32>
    %565 = vector.broadcast %564 : vector<2x1x32xf32> to vector<2x8x32xf32>
    %566 = arith.mulf %565, %23 : vector<2x8x32xf32>
    %cst_213 = arith.constant dense<0.000000e+00> : vector<2x8xf32>
    %567 = vector.multi_reduction <add>, %566, %cst_213 [2] : vector<2x8x32xf32> to vector<2x8xf32>
    %568 = arith.addf %567, %31 : vector<2x8xf32>
    %cst_214 = arith.constant dense<0xFF800000> : vector<2xf32>
    %569 = vector.multi_reduction <maximumf>, %568, %cst_214 [1] : vector<2x8xf32> to vector<2xf32>
    %570 = vector.shape_cast %569 : vector<2xf32> to vector<2x1xf32>
    %571 = vector.broadcast %570 : vector<2x1xf32> to vector<2x8xf32>
    %572 = arith.subf %568, %571 : vector<2x8xf32>
    %573 = math.exp %572 : vector<2x8xf32>
    %cst_215 = arith.constant dense<0.000000e+00> : vector<2xf32>
    %574 = vector.multi_reduction <add>, %573, %cst_215 [1] : vector<2x8xf32> to vector<2xf32>
    %575 = vector.shape_cast %574 : vector<2xf32> to vector<2x1xf32>
    %576 = tpu.reciprocal %575 {approx = true} : vector<2x1xf32> -> vector<2x1xf32>
    %577 = vector.broadcast %576 : vector<2x1xf32> to vector<2x8xf32>
    %578 = arith.mulf %573, %577 : vector<2x8xf32>
    %579 = vector.shape_cast %578 : vector<2x8xf32> to vector<2x8x1xf32>
    %580 = vector.broadcast %579 : vector<2x8x1xf32> to vector<2x8x32xf32>
    %581 = arith.mulf %580, %25 : vector<2x8x32xf32>
    %cst_216 = arith.constant dense<0.000000e+00> : vector<2x32xf32>
    %582 = vector.multi_reduction <add>, %581, %cst_216 [1] : vector<2x8x32xf32> to vector<2x32xf32>
    %c0_217 = arith.constant 0 : index
    %c6 = arith.constant 6 : index
    %c0_218 = arith.constant 0 : index
    %583 = vector.load %arg3[%c0_217, %c6, %c0_218] : memref<2x8x1xf32, #tpu.memory_space<vmem>>, vector<2x1x1xf32>
    %584 = vector.shape_cast %583 : vector<2x1x1xf32> to vector<2x1xf32>
    %585 = vector.broadcast %584 : vector<2x1xf32> to vector<2x32xf32>
    %586 = arith.mulf %585, %563 : vector<2x32xf32>
    %cst_219 = arith.constant 1.000000e+00 : f32
    %587 = vector.broadcast %cst_219 : f32 to vector<2x1xf32>
    %588 = arith.subf %587, %584 : vector<2x1xf32>
    %589 = vector.broadcast %588 : vector<2x1xf32> to vector<2x32xf32>
    %590 = arith.mulf %589, %509 : vector<2x32xf32>
    %591 = arith.addf %586, %590 : vector<2x32xf32>
    %592 = vector.broadcast %584 : vector<2x1xf32> to vector<2x32xf32>
    %593 = arith.mulf %592, %582 : vector<2x32xf32>
    %cst_220 = arith.constant 1.000000e+00 : f32
    %594 = vector.broadcast %cst_220 : f32 to vector<2x1xf32>
    %595 = arith.subf %594, %584 : vector<2x1xf32>
    %596 = vector.broadcast %595 : vector<2x1xf32> to vector<2x32xf32>
    %597 = arith.mulf %596, %516 : vector<2x32xf32>
    %598 = arith.addf %593, %597 : vector<2x32xf32>
    %c0_221 = arith.constant 0 : index
    %c6_222 = arith.constant 6 : index
    %c0_223 = arith.constant 0 : index
    %599 = vector.load %arg33[%c0_221, %c6_222, %c0_223] : memref<2x8x32xf32, #tpu.memory_space<vmem>>, vector<2x1x32xf32>
    %600 = vector.shape_cast %599 : vector<2x1x32xf32> to vector<2x32xf32>
    %601 = vector.shape_cast %591 : vector<2x32xf32> to vector<2x1x32xf32>
    tpu.vector_store %arg33[%c0_221, %c6_222, %c0_223], %601 {strides = array<i32>} : memref<2x8x32xf32, #tpu.memory_space<vmem>>, vector<2x1x32xf32>,
    %c0_224 = arith.constant 0 : index
    %c6_225 = arith.constant 6 : index
    %c0_226 = arith.constant 0 : index
    %602 = vector.load %arg34[%c0_224, %c6_225, %c0_226] : memref<2x8x32xf32, #tpu.memory_space<vmem>>, vector<2x1x32xf32>
    %603 = vector.shape_cast %602 : vector<2x1x32xf32> to vector<2x32xf32>
    %604 = vector.shape_cast %598 : vector<2x32xf32> to vector<2x1x32xf32>
    tpu.vector_store %arg34[%c0_224, %c6_225, %c0_226], %604 {strides = array<i32>} : memref<2x8x32xf32, #tpu.memory_space<vmem>>, vector<2x1x32xf32>,
    %c0_227 = arith.constant 0 : index
    %c6_228 = arith.constant 6 : index
    %c0_229 = arith.constant 0 : index
    %605 = vector.load %arg28[%c0_227, %c6_228, %c0_229] : memref<2x8x8xf32, #tpu.memory_space<vmem>>, vector<2x1x8xf32>
    %606 = vector.shape_cast %605 : vector<2x1x8xf32> to vector<2x8xf32>
    %607 = vector.shape_cast %578 : vector<2x8xf32> to vector<2x1x8xf32>
    tpu.vector_store %arg28[%c0_227, %c6_228, %c0_229], %607 {strides = array<i32>} : memref<2x8x8xf32, #tpu.memory_space<vmem>>, vector<2x1x8xf32>,
    %608 = vector.extract_strided_slice %21 {offsets = [0, 7, 0], sizes = [2, 1, 96], strides = [1, 1, 1]} : vector<2x8x96xf32> to vector<2x1x96xf32>
    %609 = vector.shape_cast %608 : vector<2x1x96xf32> to vector<2x96xf32>
    %610 = arith.truncf %598 : vector<2x32xf32> to vector<2x32xbf16>
    %c0_230 = arith.constant 0 : index
    %c0_231 = arith.constant 0 : index
    %611 = vector.load %arg14[%c0_230, %c0_231] : memref<32x96xbf16, #tpu.memory_space<vmem>>, vector<32x96xbf16>
    %cst_232 = arith.constant dense<0.000000e+00> : vector<2x96xf32>
    %612 = tpu.matmul %610, %611, %cst_232 {dimension_numbers = #tpu.dot_dimension_numbers<[1], [0], [0], [1], [0, 0, 1, 1], [], []>} : vector<2x32xbf16>, vector<32x96xbf16>, vector<2x96xf32> -> vector<2x96xf32>
    %613 = arith.addf %609, %612 : vector<2x96xf32>
    %614 = arith.truncf %591 : vector<2x32xf32> to vector<2x32xbf16>
    %c0_233 = arith.constant 0 : index
    %c0_234 = arith.constant 0 : index
    %615 = vector.load %arg17[%c0_233, %c0_234] : memref<32x96xbf16, #tpu.memory_space<vmem>>, vector<32x96xbf16>
    %cst_235 = arith.constant dense<0.000000e+00> : vector<2x96xf32>
    %616 = tpu.matmul %614, %615, %cst_235 {dimension_numbers = #tpu.dot_dimension_numbers<[1], [0], [0], [1], [0, 0, 1, 1], [], []>} : vector<2x32xbf16>, vector<32x96xbf16>, vector<2x96xf32> -> vector<2x96xf32>
    %c0_236 = arith.constant 0 : index
    %c0_237 = arith.constant 0 : index
    %617 = vector.load %arg18[%c0_236, %c0_237] : memref<1x96xf32, #tpu.memory_space<vmem>>, vector<1x96xf32>
    %618 = vector.broadcast %617 : vector<1x96xf32> to vector<2x96xf32>
    %619 = arith.addf %616, %618 : vector<2x96xf32>
    %620 = vector.extract_strided_slice %613 {offsets = [0, 0], sizes = [2, 32], strides = [1, 1]} : vector<2x96xf32> to vector<2x32xf32>
    %621 = vector.extract_strided_slice %619 {offsets = [0, 0], sizes = [2, 32], strides = [1, 1]} : vector<2x96xf32> to vector<2x32xf32>
    %622 = arith.addf %620, %621 : vector<2x32xf32>
    %623 = arith.negf %622 : vector<2x32xf32>
    %624 = math.exp %623 : vector<2x32xf32>
    %cst_238 = arith.constant 1.000000e+00 : f32
    %625 = vector.broadcast %cst_238 : f32 to vector<2x32xf32>
    %626 = arith.addf %625, %624 : vector<2x32xf32>
    %627 = arith.divf %625, %626 : vector<2x32xf32>
    %628 = vector.extract_strided_slice %613 {offsets = [0, 32], sizes = [2, 32], strides = [1, 1]} : vector<2x96xf32> to vector<2x32xf32>
    %629 = vector.extract_strided_slice %619 {offsets = [0, 32], sizes = [2, 32], strides = [1, 1]} : vector<2x96xf32> to vector<2x32xf32>
    %630 = arith.addf %628, %629 : vector<2x32xf32>
    %631 = arith.negf %630 : vector<2x32xf32>
    %632 = math.exp %631 : vector<2x32xf32>
    %cst_239 = arith.constant 1.000000e+00 : f32
    %633 = vector.broadcast %cst_239 : f32 to vector<2x32xf32>
    %634 = arith.addf %633, %632 : vector<2x32xf32>
    %635 = arith.divf %633, %634 : vector<2x32xf32>
    %636 = vector.extract_strided_slice %613 {offsets = [0, 64], sizes = [2, 32], strides = [1, 1]} : vector<2x96xf32> to vector<2x32xf32>
    %637 = vector.extract_strided_slice %619 {offsets = [0, 64], sizes = [2, 32], strides = [1, 1]} : vector<2x96xf32> to vector<2x32xf32>
    %638 = arith.mulf %627, %637 : vector<2x32xf32>
    %639 = arith.addf %636, %638 : vector<2x32xf32>
    %640 = math.tanh %639 : vector<2x32xf32>
    %cst_240 = arith.constant 1.000000e+00 : f32
    %641 = vector.broadcast %cst_240 : f32 to vector<2x32xf32>
    %642 = arith.subf %641, %635 : vector<2x32xf32>
    %643 = arith.mulf %642, %640 : vector<2x32xf32>
    %644 = arith.mulf %635, %591 : vector<2x32xf32>
    %645 = arith.addf %643, %644 : vector<2x32xf32>
    %646 = vector.shape_cast %645 : vector<2x32xf32> to vector<2x1x32xf32>
    %647 = vector.broadcast %646 : vector<2x1x32xf32> to vector<2x8x32xf32>
    %648 = arith.mulf %647, %23 : vector<2x8x32xf32>
    %cst_241 = arith.constant dense<0.000000e+00> : vector<2x8xf32>
    %649 = vector.multi_reduction <add>, %648, %cst_241 [2] : vector<2x8x32xf32> to vector<2x8xf32>
    %650 = arith.addf %649, %31 : vector<2x8xf32>
    %cst_242 = arith.constant dense<0xFF800000> : vector<2xf32>
    %651 = vector.multi_reduction <maximumf>, %650, %cst_242 [1] : vector<2x8xf32> to vector<2xf32>
    %652 = vector.shape_cast %651 : vector<2xf32> to vector<2x1xf32>
    %653 = vector.broadcast %652 : vector<2x1xf32> to vector<2x8xf32>
    %654 = arith.subf %650, %653 : vector<2x8xf32>
    %655 = math.exp %654 : vector<2x8xf32>
    %cst_243 = arith.constant dense<0.000000e+00> : vector<2xf32>
    %656 = vector.multi_reduction <add>, %655, %cst_243 [1] : vector<2x8xf32> to vector<2xf32>
    %657 = vector.shape_cast %656 : vector<2xf32> to vector<2x1xf32>
    %658 = tpu.reciprocal %657 {approx = true} : vector<2x1xf32> -> vector<2x1xf32>
    %659 = vector.broadcast %658 : vector<2x1xf32> to vector<2x8xf32>
    %660 = arith.mulf %655, %659 : vector<2x8xf32>
    %661 = vector.shape_cast %660 : vector<2x8xf32> to vector<2x8x1xf32>
    %662 = vector.broadcast %661 : vector<2x8x1xf32> to vector<2x8x32xf32>
    %663 = arith.mulf %662, %25 : vector<2x8x32xf32>
    %cst_244 = arith.constant dense<0.000000e+00> : vector<2x32xf32>
    %664 = vector.multi_reduction <add>, %663, %cst_244 [1] : vector<2x8x32xf32> to vector<2x32xf32>
    %c0_245 = arith.constant 0 : index
    %c7 = arith.constant 7 : index
    %c0_246 = arith.constant 0 : index
    %665 = vector.load %arg3[%c0_245, %c7, %c0_246] : memref<2x8x1xf32, #tpu.memory_space<vmem>>, vector<2x1x1xf32>
    %666 = vector.shape_cast %665 : vector<2x1x1xf32> to vector<2x1xf32>
    %667 = vector.broadcast %666 : vector<2x1xf32> to vector<2x32xf32>
    %668 = arith.mulf %667, %645 : vector<2x32xf32>
    %cst_247 = arith.constant 1.000000e+00 : f32
    %669 = vector.broadcast %cst_247 : f32 to vector<2x1xf32>
    %670 = arith.subf %669, %666 : vector<2x1xf32>
    %671 = vector.broadcast %670 : vector<2x1xf32> to vector<2x32xf32>
    %672 = arith.mulf %671, %591 : vector<2x32xf32>
    %673 = arith.addf %668, %672 : vector<2x32xf32>
    %674 = vector.broadcast %666 : vector<2x1xf32> to vector<2x32xf32>
    %675 = arith.mulf %674, %664 : vector<2x32xf32>
    %cst_248 = arith.constant 1.000000e+00 : f32
    %676 = vector.broadcast %cst_248 : f32 to vector<2x1xf32>
    %677 = arith.subf %676, %666 : vector<2x1xf32>
    %678 = vector.broadcast %677 : vector<2x1xf32> to vector<2x32xf32>
    %679 = arith.mulf %678, %598 : vector<2x32xf32>
    %680 = arith.addf %675, %679 : vector<2x32xf32>
    %c0_249 = arith.constant 0 : index
    %c7_250 = arith.constant 7 : index
    %c0_251 = arith.constant 0 : index
    %681 = vector.load %arg33[%c0_249, %c7_250, %c0_251] : memref<2x8x32xf32, #tpu.memory_space<vmem>>, vector<2x1x32xf32>
    %682 = vector.shape_cast %681 : vector<2x1x32xf32> to vector<2x32xf32>
    %683 = vector.shape_cast %673 : vector<2x32xf32> to vector<2x1x32xf32>
    tpu.vector_store %arg33[%c0_249, %c7_250, %c0_251], %683 {strides = array<i32>} : memref<2x8x32xf32, #tpu.memory_space<vmem>>, vector<2x1x32xf32>,
    %c0_252 = arith.constant 0 : index
    %c7_253 = arith.constant 7 : index
    %c0_254 = arith.constant 0 : index
    %684 = vector.load %arg34[%c0_252, %c7_253, %c0_254] : memref<2x8x32xf32, #tpu.memory_space<vmem>>, vector<2x1x32xf32>
    %685 = vector.shape_cast %684 : vector<2x1x32xf32> to vector<2x32xf32>
    %686 = vector.shape_cast %680 : vector<2x32xf32> to vector<2x1x32xf32>
    tpu.vector_store %arg34[%c0_252, %c7_253, %c0_254], %686 {strides = array<i32>} : memref<2x8x32xf32, #tpu.memory_space<vmem>>, vector<2x1x32xf32>,
    %c0_255 = arith.constant 0 : index
    %c7_256 = arith.constant 7 : index
    %c0_257 = arith.constant 0 : index
    %687 = vector.load %arg28[%c0_255, %c7_256, %c0_257] : memref<2x8x8xf32, #tpu.memory_space<vmem>>, vector<2x1x8xf32>
    %688 = vector.shape_cast %687 : vector<2x1x8xf32> to vector<2x8xf32>
    %689 = vector.shape_cast %660 : vector<2x8xf32> to vector<2x1x8xf32>
    tpu.vector_store %arg28[%c0_255, %c7_256, %c0_257], %689 {strides = array<i32>} : memref<2x8x8xf32, #tpu.memory_space<vmem>>, vector<2x1x8xf32>,
    %c0_258 = arith.constant 0 : index
    %c0_259 = arith.constant 0 : index
    %690 = vector.load %arg31[%c0_258, %c0_259] : memref<2x32xf32, #tpu.memory_space<vmem>>, vector<2x32xf32>
    tpu.vector_store %arg31[%c0_258, %c0_259], %673 {strides = array<i32>} : memref<2x32xf32, #tpu.memory_space<vmem>>, vector<2x32xf32>,
    %c0_260 = arith.constant 0 : index
    %c0_261 = arith.constant 0 : index
    %691 = vector.load %arg32[%c0_260, %c0_261] : memref<2x32xf32, #tpu.memory_space<vmem>>, vector<2x32xf32>
    tpu.vector_store %arg32[%c0_260, %c0_261], %680 {strides = array<i32>} : memref<2x32xf32, #tpu.memory_space<vmem>>, vector<2x32xf32>,
    %c0_262 = arith.constant 0 : index
    %c0_263 = arith.constant 0 : index
    %c0_264 = arith.constant 0 : index
    %692 = vector.load %arg33[%c0_262, %c0_263, %c0_264] : memref<2x8x32xf32, #tpu.memory_space<vmem>>, vector<2x8x32xf32>
    %693 = vector.shape_cast %692 : vector<2x8x32xf32> to vector<16x32xf32>
    %c0_265 = arith.constant 0 : index
    %c0_266 = arith.constant 0 : index
    %c0_267 = arith.constant 0 : index
    %694 = vector.load %arg34[%c0_265, %c0_266, %c0_267] : memref<2x8x32xf32, #tpu.memory_space<vmem>>, vector<2x8x32xf32>
    %695 = vector.shape_cast %694 : vector<2x8x32xf32> to vector<16x32xf32>
    %696 = arith.truncf %693 : vector<16x32xf32> to vector<16x32xbf16>
    %697 = arith.truncf %695 : vector<16x32xf32> to vector<16x32xbf16>
    %c0_268 = arith.constant 0 : index
    %c0_269 = arith.constant 0 : index
    %698 = vector.load %arg20[%c0_268, %c0_269] : memref<1x32xf32, #tpu.memory_space<vmem>>, vector<1x32xf32>
    %699 = vector.broadcast %698 : vector<1x32xf32> to vector<16x32xf32>
    %700 = arith.mulf %693, %699 : vector<16x32xf32>
    %cst_270 = arith.constant dense<0.000000e+00> : vector<16xf32>
    %701 = vector.multi_reduction <add>, %700, %cst_270 [1] : vector<16x32xf32> to vector<16xf32>
    %702 = vector.shape_cast %701 : vector<16xf32> to vector<16x1xf32>
    %c0_271 = arith.constant 0 : index
    %c0_272 = arith.constant 0 : index
    %703 = vector.load %arg21[%c0_271, %c0_272] : memref<1x32xf32, #tpu.memory_space<vmem>>, vector<1x32xf32>
    %704 = vector.broadcast %703 : vector<1x32xf32> to vector<16x32xf32>
    %705 = arith.mulf %695, %704 : vector<16x32xf32>
    %cst_273 = arith.constant dense<0.000000e+00> : vector<16xf32>
    %706 = vector.multi_reduction <add>, %705, %cst_273 [1] : vector<16x32xf32> to vector<16xf32>
    %707 = vector.shape_cast %706 : vector<16xf32> to vector<16x1xf32>
    %708 = arith.addf %702, %707 : vector<16x1xf32>
    %709 = arith.extf %4 : vector<16x16xbf16> to vector<16x16xf32>
    %c0_274 = arith.constant 0 : index
    %c0_275 = arith.constant 0 : index
    %710 = vector.load %arg19[%c0_274, %c0_275] : memref<1x16xf32, #tpu.memory_space<vmem>>, vector<1x16xf32>
    %711 = vector.broadcast %710 : vector<1x16xf32> to vector<16x16xf32>
    %712 = arith.mulf %709, %711 : vector<16x16xf32>
    %cst_276 = arith.constant dense<0.000000e+00> : vector<16xf32>
    %713 = vector.multi_reduction <add>, %712, %cst_276 [1] : vector<16x16xf32> to vector<16xf32>
    %714 = vector.shape_cast %713 : vector<16xf32> to vector<16x1xf32>
    %715 = arith.addf %708, %714 : vector<16x1xf32>
    %c0_277 = arith.constant 0 : index
    %c0_278 = arith.constant 0 : index
    %716 = vector.load %arg22[%c0_277, %c0_278] : memref<1x1xf32, #tpu.memory_space<vmem>>, vector<1x1xf32>
    %717 = vector.broadcast %716 : vector<1x1xf32> to vector<16x1xf32>
    %718 = arith.addf %715, %717 : vector<16x1xf32>
    %719 = arith.negf %718 : vector<16x1xf32>
    %720 = math.exp %719 : vector<16x1xf32>
    %cst_279 = arith.constant 1.000000e+00 : f32
    %721 = vector.broadcast %cst_279 : f32 to vector<16x1xf32>
    %722 = arith.addf %721, %720 : vector<16x1xf32>
    %723 = arith.divf %721, %722 : vector<16x1xf32>
    %724 = vector.shape_cast %723 : vector<16x1xf32> to vector<2x8x1xf32>
    %cst_280 = arith.constant 1.000000e+00 : f32
    %725 = vector.broadcast %cst_280 : f32 to vector<16x1xf32>
    %726 = arith.subf %725, %723 : vector<16x1xf32>
    %c0_281 = arith.constant 0 : index
    %c0_282 = arith.constant 0 : index
    %c0_283 = arith.constant 0 : index
    %727 = vector.load %arg27[%c0_281, %c0_282, %c0_283] : memref<2x8x1xf32, #tpu.memory_space<vmem>>, vector<2x8x1xf32>
    tpu.vector_store %arg27[%c0_281, %c0_282, %c0_283], %724 {strides = array<i32>} : memref<2x8x1xf32, #tpu.memory_space<vmem>>, vector<2x8x1xf32>,
    %c0_284 = arith.constant 0 : index
    %c0_285 = arith.constant 0 : index
    %728 = vector.load %arg10[%c0_284, %c0_285] : memref<2x8xi32, #tpu.memory_space<vmem>>, vector<2x8xi32>
    %c0_286 = arith.constant 0 : index
    %c0_287 = arith.constant 0 : index
    %c0_288 = arith.constant 0 : index
    %729 = vector.load %arg28[%c0_286, %c0_287, %c0_288] : memref<2x8x8xf32, #tpu.memory_space<vmem>>, vector<2x8x8xf32>
    %730 = arith.truncf %729 : vector<2x8x8xf32> to vector<2x8x8xbf16>
    %cst_289 = arith.constant -1.000000e+30 : f32
    %731 = vector.broadcast %cst_289 : f32 to vector<16x1xf32>
    %cst_290 = arith.constant 0.000000e+00 : f32
    %732 = vector.broadcast %cst_290 : f32 to vector<16x1xf32>
    %c0_291 = arith.constant 0 : index
    %c0_292 = arith.constant 0 : index
    %733 = vector.load %arg35[%c0_291, %c0_292] : memref<32x128xbf16, #tpu.memory_space<vmem>>, vector<32x128xbf16>
    %cst_293 = arith.constant dense<0.000000e+00> : vector<16x128xf32>
    %734 = tpu.matmul %696, %733, %cst_293 {dimension_numbers = #tpu.dot_dimension_numbers<[1], [0], [0], [1], [0, 0, 1, 1], [], []>} : vector<16x32xbf16>, vector<32x128xbf16>, vector<16x128xf32> -> vector<16x128xf32>
    %c0_294 = arith.constant 0 : index
    %c0_295 = arith.constant 0 : index
    %735 = vector.load %arg36[%c0_294, %c0_295] : memref<32x128xbf16, #tpu.memory_space<vmem>>, vector<32x128xbf16>
    %cst_296 = arith.constant dense<0.000000e+00> : vector<16x128xf32>
    %736 = tpu.matmul %697, %735, %cst_296 {dimension_numbers = #tpu.dot_dimension_numbers<[1], [0], [0], [1], [0, 0, 1, 1], [], []>} : vector<16x32xbf16>, vector<32x128xbf16>, vector<16x128xf32> -> vector<16x128xf32>
    %737 = arith.addf %734, %736 : vector<16x128xf32>
    %c0_297 = arith.constant 0 : index
    %c0_298 = arith.constant 0 : index
    %738 = vector.load %arg37[%c0_297, %c0_298] : memref<1x128xf32, #tpu.memory_space<vmem>>, vector<1x128xf32>
    %739 = vector.broadcast %738 : vector<1x128xf32> to vector<16x128xf32>
    %740 = arith.addf %737, %739 : vector<16x128xf32>
    %cst_299 = arith.constant dense<0xFF800000> : vector<16xf32>
    %741 = vector.multi_reduction <maximumf>, %740, %cst_299 [1] : vector<16x128xf32> to vector<16xf32>
    %742 = vector.shape_cast %741 : vector<16xf32> to vector<16x1xf32>
    %743 = arith.maximumf %731, %742 : vector<16x1xf32>
    %744 = arith.subf %731, %743 : vector<16x1xf32>
    %745 = math.exp %744 : vector<16x1xf32>
    %746 = arith.mulf %732, %745 : vector<16x1xf32>
    %747 = vector.broadcast %743 : vector<16x1xf32> to vector<16x128xf32>
    %748 = arith.subf %740, %747 : vector<16x128xf32>
    %749 = math.exp %748 : vector<16x128xf32>
    %cst_300 = arith.constant dense<0.000000e+00> : vector<16xf32>
    %750 = vector.multi_reduction <add>, %749, %cst_300 [1] : vector<16x128xf32> to vector<16xf32>
    %751 = vector.shape_cast %750 : vector<16xf32> to vector<16x1xf32>
    %752 = arith.addf %746, %751 : vector<16x1xf32>
    %cst_301 = arith.constant 1.000000e+00 : f32
    %753 = vector.broadcast %cst_301 : f32 to vector<16x1xf32>
    %754 = arith.divf %753, %752 : vector<16x1xf32>
    %c0_302 = arith.constant 0 : index
    %c0_303 = arith.constant 0 : index
    %755 = vector.load %arg35[%c0_302, %c0_303] : memref<32x128xbf16, #tpu.memory_space<vmem>>, vector<32x128xbf16>
    %cst_304 = arith.constant dense<0.000000e+00> : vector<16x128xf32>
    %756 = tpu.matmul %696, %755, %cst_304 {dimension_numbers = #tpu.dot_dimension_numbers<[1], [0], [0], [1], [0, 0, 1, 1], [], []>} : vector<16x32xbf16>, vector<32x128xbf16>, vector<16x128xf32> -> vector<16x128xf32>
    %c0_305 = arith.constant 0 : index
    %c0_306 = arith.constant 0 : index
    %757 = vector.load %arg36[%c0_305, %c0_306] : memref<32x128xbf16, #tpu.memory_space<vmem>>, vector<32x128xbf16>
    %cst_307 = arith.constant dense<0.000000e+00> : vector<16x128xf32>
    %758 = tpu.matmul %697, %757, %cst_307 {dimension_numbers = #tpu.dot_dimension_numbers<[1], [0], [0], [1], [0, 0, 1, 1], [], []>} : vector<16x32xbf16>, vector<32x128xbf16>, vector<16x128xf32> -> vector<16x128xf32>
    %759 = arith.addf %756, %758 : vector<16x128xf32>
    %c0_308 = arith.constant 0 : index
    %c0_309 = arith.constant 0 : index
    %760 = vector.load %arg37[%c0_308, %c0_309] : memref<1x128xf32, #tpu.memory_space<vmem>>, vector<1x128xf32>
    %761 = vector.broadcast %760 : vector<1x128xf32> to vector<16x128xf32>
    %762 = arith.addf %759, %761 : vector<16x128xf32>
    %763 = vector.broadcast %743 : vector<16x1xf32> to vector<16x128xf32>
    %764 = arith.subf %762, %763 : vector<16x128xf32>
    %765 = math.exp %764 : vector<16x128xf32>
    %766 = vector.broadcast %754 : vector<16x1xf32> to vector<16x128xf32>
    %767 = arith.mulf %765, %766 : vector<16x128xf32>
    %768 = tpu.iota {dimensions = array<i32: 2>} : vector<2x8x128xi32>
    %c0_i32_310 = arith.constant 0 : i32
    %769 = vector.broadcast %c0_i32_310 : i32 to vector<2x8x128xi32>
    %770 = arith.addi %768, %769 : vector<2x8x128xi32>
    %771 = vector.shape_cast %728 : vector<2x8xi32> to vector<2x8x1xi32>
    %772 = vector.broadcast %771 : vector<2x8x1xi32> to vector<2x8x128xi32>
    %773 = arith.cmpi eq, %772, %770 : vector<2x8x128xi32>
    %774 = arith.extui %773 : vector<2x8x128xi1> to vector<2x8x128xi32>
    %775 = arith.sitofp %774 : vector<2x8x128xi32> to vector<2x8x128xf32>
    %776 = arith.truncf %775 : vector<2x8x128xf32> to vector<2x8x128xbf16>
    %cst_311 = arith.constant dense<0.000000e+00> : vector<2x8x128xf32>
    %777 = tpu.matmul %730, %776, %cst_311 {dimension_numbers = #tpu.dot_dimension_numbers<[2], [1], [1], [2], [0, 0, 0, 1, 1, 2], [0], [0]>} : vector<2x8x8xbf16>, vector<2x8x128xbf16>, vector<2x8x128xf32> -> vector<2x8x128xf32>
    %778 = vector.broadcast %726 : vector<16x1xf32> to vector<16x128xf32>
    %779 = arith.mulf %778, %767 : vector<16x128xf32>
    %780 = vector.shape_cast %779 : vector<16x128xf32> to vector<2x8x128xf32>
    %781 = vector.broadcast %724 : vector<2x8x1xf32> to vector<2x8x128xf32>
    %782 = arith.mulf %781, %777 : vector<2x8x128xf32>
    %783 = arith.addf %780, %782 : vector<2x8x128xf32>
    %c0_312 = arith.constant 0 : index
    %c0_313 = arith.constant 0 : index
    %c0_314 = arith.constant 0 : index
    %784 = vector.load %arg26[%c0_312, %c0_313, %c0_314] : memref<2x8x128xf32, #tpu.memory_space<vmem>>, vector<2x8x128xf32>
    tpu.vector_store %arg26[%c0_312, %c0_313, %c0_314], %783 {strides = array<i32>} : memref<2x8x128xf32, #tpu.memory_space<vmem>>, vector<2x8x128xf32>,
    %c0_i32_315 = arith.constant 0 : i32
    %785 = arith.cmpi eq, %arg1, %c0_i32_315 : i32
    %786 = arith.extui %785 : i1 to i32
    %c0_i32_316 = arith.constant 0 : i32
    %787 = arith.cmpi ne, %786, %c0_i32_316 : i32
    scf.if %787 {
      %c0_317 = arith.constant 0 : index
      %c0_318 = arith.constant 0 : index
      %788 = vector.load %arg31[%c0_317, %c0_318] : memref<2x32xf32, #tpu.memory_space<vmem>>, vector<2x32xf32>
      %c0_319 = arith.constant 0 : index
      %c0_320 = arith.constant 0 : index
      %789 = vector.load %arg29[%c0_319, %c0_320] : memref<2x32xf32, #tpu.memory_space<vmem>>, vector<2x32xf32>
      tpu.vector_store %arg29[%c0_319, %c0_320], %788 {strides = array<i32>} : memref<2x32xf32, #tpu.memory_space<vmem>>, vector<2x32xf32>,
      %c0_321 = arith.constant 0 : index
      %c0_322 = arith.constant 0 : index
      %790 = vector.load %arg32[%c0_321, %c0_322] : memref<2x32xf32, #tpu.memory_space<vmem>>, vector<2x32xf32>
      %c0_323 = arith.constant 0 : index
      %c0_324 = arith.constant 0 : index
      %791 = vector.load %arg30[%c0_323, %c0_324] : memref<2x32xf32, #tpu.memory_space<vmem>>, vector<2x32xf32>
      tpu.vector_store %arg30[%c0_323, %c0_324], %790 {strides = array<i32>} : memref<2x32xf32, #tpu.memory_space<vmem>>, vector<2x32xf32>,
    } else {
    }
    return
  }
  func.func @transform_0(%arg0: i32, %arg1: i32) -> (i32, i32, i32) {
    %c0_i32 = arith.constant 0 : i32
    %c0_i32_0 = arith.constant 0 : i32
    return %arg0, %arg1, %c0_i32 : i32, i32, i32
  }
  func.func @transform_1(%arg0: i32, %arg1: i32) -> (i32, i32, i32) {
    %c0_i32 = arith.constant 0 : i32
    %c0_i32_0 = arith.constant 0 : i32
    return %arg0, %arg1, %c0_i32 : i32, i32, i32
  }
  func.func @transform_2(%arg0: i32, %arg1: i32) -> (i32, i32, i32) {
    %c0_i32 = arith.constant 0 : i32
    %c0_i32_0 = arith.constant 0 : i32
    return %arg0, %arg1, %c0_i32 : i32, i32, i32
  }
  func.func @transform_3(%arg0: i32, %arg1: i32) -> (i32, i32) {
    %c0_i32 = arith.constant 0 : i32
    %c0_i32_0 = arith.constant 0 : i32
    return %arg0, %c0_i32 : i32, i32
  }
  func.func @transform_4(%arg0: i32, %arg1: i32) -> (i32, i32) {
    %c0_i32 = arith.constant 0 : i32
    %c0_i32_0 = arith.constant 0 : i32
    return %arg0, %c0_i32 : i32, i32
  }
  func.func @transform_5(%arg0: i32, %arg1: i32) -> (i32, i32, i32) {
    %c0_i32 = arith.constant 0 : i32
    %c0_i32_0 = arith.constant 0 : i32
    %c0_i32_1 = arith.constant 0 : i32
    return %arg0, %c0_i32, %c0_i32_0 : i32, i32, i32
  }
  func.func @transform_6(%arg0: i32, %arg1: i32) -> (i32, i32, i32) {
    %c0_i32 = arith.constant 0 : i32
    %c0_i32_0 = arith.constant 0 : i32
    %c0_i32_1 = arith.constant 0 : i32
    return %arg0, %c0_i32, %c0_i32_0 : i32, i32, i32
  }
  func.func @transform_7(%arg0: i32, %arg1: i32) -> (i32, i32) {
    %c0_i32 = arith.constant 0 : i32
    %c0_i32_0 = arith.constant 0 : i32
    return %arg0, %c0_i32 : i32, i32
  }
  func.func @transform_8(%arg0: i32, %arg1: i32) -> (i32, i32) {
    %c0_i32 = arith.constant 0 : i32
    %c0_i32_0 = arith.constant 0 : i32
    return %arg0, %c0_i32 : i32, i32
  }
  func.func @transform_9(%arg0: i32, %arg1: i32) -> (i32, i32) {
    %c0_i32 = arith.constant 0 : i32
    %c0_i32_0 = arith.constant 0 : i32
    %c0_i32_1 = arith.constant 0 : i32
    return %c0_i32, %c0_i32_0 : i32, i32
  }
  func.func @transform_10(%arg0: i32, %arg1: i32) -> (i32, i32) {
    %c0_i32 = arith.constant 0 : i32
    %c0_i32_0 = arith.constant 0 : i32
    %c0_i32_1 = arith.constant 0 : i32
    return %c0_i32, %c0_i32_0 : i32, i32
  }
  func.func @transform_11(%arg0: i32, %arg1: i32) -> (i32, i32) {
    %c0_i32 = arith.constant 0 : i32
    %c0_i32_0 = arith.constant 0 : i32
    %c0_i32_1 = arith.constant 0 : i32
    return %c0_i32, %c0_i32_0 : i32, i32
  }
  func.func @transform_12(%arg0: i32, %arg1: i32) -> (i32, i32) {
    %c0_i32 = arith.constant 0 : i32
    %c0_i32_0 = arith.constant 0 : i32
    %c0_i32_1 = arith.constant 0 : i32
    return %c0_i32, %c0_i32_0 : i32, i32
  }
  func.func @transform_13(%arg0: i32, %arg1: i32) -> (i32, i32) {
    %c0_i32 = arith.constant 0 : i32
    %c0_i32_0 = arith.constant 0 : i32
    %c0_i32_1 = arith.constant 0 : i32
    return %c0_i32, %c0_i32_0 : i32, i32
  }
  func.func @transform_14(%arg0: i32, %arg1: i32) -> (i32, i32) {
    %c0_i32 = arith.constant 0 : i32
    %c0_i32_0 = arith.constant 0 : i32
    %c0_i32_1 = arith.constant 0 : i32
    return %c0_i32, %c0_i32_0 : i32, i32
  }
  func.func @transform_15(%arg0: i32, %arg1: i32) -> (i32, i32) {
    %c0_i32 = arith.constant 0 : i32
    %c0_i32_0 = arith.constant 0 : i32
    %c0_i32_1 = arith.constant 0 : i32
    return %c0_i32, %c0_i32_0 : i32, i32
  }
  func.func @transform_16(%arg0: i32, %arg1: i32) -> (i32, i32) {
    %c0_i32 = arith.constant 0 : i32
    %c0_i32_0 = arith.constant 0 : i32
    %c0_i32_1 = arith.constant 0 : i32
    return %c0_i32, %c0_i32_0 : i32, i32
  }
  func.func @transform_17(%arg0: i32, %arg1: i32) -> (i32, i32) {
    %c0_i32 = arith.constant 0 : i32
    %c0_i32_0 = arith.constant 0 : i32
    %c0_i32_1 = arith.constant 0 : i32
    return %c0_i32, %c0_i32_0 : i32, i32
  }
  func.func @transform_18(%arg0: i32, %arg1: i32) -> (i32, i32) {
    %c0_i32 = arith.constant 0 : i32
    %c0_i32_0 = arith.constant 0 : i32
    %c0_i32_1 = arith.constant 0 : i32
    return %c0_i32, %c0_i32_0 : i32, i32
  }
  func.func @transform_19(%arg0: i32, %arg1: i32) -> (i32, i32) {
    %c0_i32 = arith.constant 0 : i32
    %c0_i32_0 = arith.constant 0 : i32
    %c0_i32_1 = arith.constant 0 : i32
    return %c0_i32, %c0_i32_0 : i32, i32
  }
  func.func @transform_20(%arg0: i32, %arg1: i32) -> (i32, i32) {
    %c0_i32 = arith.constant 0 : i32
    %c0_i32_0 = arith.constant 0 : i32
    %c0_i32_1 = arith.constant 0 : i32
    return %c0_i32, %c0_i32_0 : i32, i32
  }
  func.func @transform_24(%arg0: i32, %arg1: i32) -> (i32, i32, i32) {
    %c0_i32 = arith.constant 0 : i32
    %c0_i32_0 = arith.constant 0 : i32
    return %arg0, %arg1, %c0_i32 : i32, i32, i32
  }
  func.func @transform_25(%arg0: i32, %arg1: i32) -> (i32, i32, i32) {
    %c0_i32 = arith.constant 0 : i32
    %c0_i32_0 = arith.constant 0 : i32
    return %arg0, %arg1, %c0_i32 : i32, i32, i32
  }
  func.func @transform_26(%arg0: i32, %arg1: i32) -> (i32, i32, i32) {
    %c0_i32 = arith.constant 0 : i32
    %c0_i32_0 = arith.constant 0 : i32
    return %arg0, %arg1, %c0_i32 : i32, i32, i32
  }
  func.func @transform_27(%arg0: i32, %arg1: i32) -> (i32, i32) {
    %c0_i32 = arith.constant 0 : i32
    %c0_i32_0 = arith.constant 0 : i32
    return %arg0, %c0_i32 : i32, i32
  }
  func.func @transform_28(%arg0: i32, %arg1: i32) -> (i32, i32) {
    %c0_i32 = arith.constant 0 : i32
    %c0_i32_0 = arith.constant 0 : i32
    return %arg0, %c0_i32 : i32, i32
  }
}

</mosaic_0001>

<bundles_post_ra>
// kernel: tpu_custom_call.1
= control target key start
LH: loop header
LB: loop body
LE: loop exit
PB: predicated region body
PF: predicated region fallthrough
CT: control target
= control target key end

     0   :  { %s5722_s0 = inlined_call_operand.hbm [shape: bf16[2,8,16], index: 0, kind: input, shape index: {}]   ;;  %s5723_s1 = inlined_call_operand.vmem [shape: f32[2,8,1], index: 1, kind: input, shape index: {}]   ;;  %s5724_s2 = inlined_call_operand.hbm [shape: bf16[2,8,16], index: 2, kind: input, shape index: {}]   ;;  %s5725_s3 = inlined_call_operand.vmem [shape: f32[2,32], index: 3, kind: input, shape index: {}]   ;;  %s5726_s4 = inlined_call_operand.hbm [shape: f32[2,32], index: 4, kind: input, shape index: {}]   ;;  %s5727_s5 = inlined_call_operand.hbm [shape: bf16[2,8,32], index: 5, kind: input, shape index: {}]   ;;  %s5728_s6 = inlined_call_operand.hbm [shape: bf16[2,8,32], index: 6, kind: input, shape index: {}]   ;;  %s5729_s7 = inlined_call_operand.hbm [shape: f32[2,8], index: 7, kind: input, shape index: {}]   ;;  %s5730_s8 = inlined_call_operand.hbm [shape: s32[2,8], index: 8, kind: input, shape index: {}]   ;;  %s5731_s9 = inlined_call_operand.hbm [shape: bf16[16,16], index: 9, kind: input, shape index: {}]   ;;  %s5732_s10 = inlined_call_operand.hbm [shape: f32[1,16], index: 10, kind: input, shape index: {}]   ;;  %s5733_s11 = inlined_call_operand.hbm [shape: bf16[16,96], index: 11, kind: input, shape index: {}]   ;;  %s5734_s12 = inlined_call_operand.vmem [shape: bf16[32,96], index: 12, kind: input, shape index: {}]   ;;  %s5735_s13 = inlined_call_operand.hbm [shape: bf16[16,96], index: 13, kind: input, shape index: {}]   ;;  %s5736_s14 = inlined_call_operand.hbm [shape: f32[1,96], index: 14, kind: input, shape index: {}]   ;;  %s5737_s15 = inlined_call_operand.hbm [shape: bf16[32,96], index: 15, kind: input, shape index: {}]   ;;  %s5738_s16 = inlined_call_operand.hbm [shape: f32[1,96], index: 16, kind: input, shape index: {}]   ;;  %s5739_s17 = inlined_call_operand.hbm [shape: f32[1,16], index: 17, kind: input, shape index: {}]   ;;  %s5740_s18 = inlined_call_operand.vmem [shape: f32[1,32], index: 18, kind: input, shape index: {}]   ;;  %s5741_s19 = inlined_call_operand.vmem [shape: f32[1,32], index: 19, kind: input, shape index: {}]   ;;  %s5742_s20 = inlined_call_operand.<no memory space> [shape: f32[1,1], index: 20, kind: input, shape index: {}]   ;;  %s5743_s21 = inlined_call_operand.vmem [shape: bf16[32,128], index: 21, kind: input, shape index: {}]   ;;  %s5744_s22 = inlined_call_operand.hbm [shape: bf16[32,128], index: 22, kind: input, shape index: {}]   ;;  %s5745_s23 = inlined_call_operand.vmem [shape: f32[1,128], index: 23, kind: input, shape index: {}]   ;;  %s5746_s24 = inlined_call_operand.hbm [shape: f32[2,8,128], index: 24, kind: output, shape index: {0}]   ;;  %s5747_s25 = inlined_call_operand.vmem [shape: f32[2,8,1], index: 25, kind: output, shape index: {1}]   ;;  %s5748_s26 = inlined_call_operand.hbm [shape: f32[2,8,8], index: 26, kind: output, shape index: {2}]   ;;  %s5749_s27 = inlined_call_operand.hbm [shape: f32[2,32], index: 27, kind: output, shape index: {3}]   ;;  %s5750_s28 = inlined_call_operand.hbm [shape: f32[2,32], index: 28, kind: output, shape index: {4}]  }
   0x1   :  { %5755 = sst [smem:[#allocation61_spill]] %s5722_s0  ;;  %v34_v0 = vstv %s5742_s20 }
   0x2   :  { %5756 = sst [smem:[#allocation62_spill]] %s5723_s1  ;;  %35 = vst [vmem:[#allocation10] sm:$0x1] %v34_v0 }
   0x3   :  { %5757 = sst [smem:[#allocation63_spill]] %s5724_s2 }
   0x4   :  { %5758 = sst [smem:[#allocation64_spill]] %s5725_s3 }
   0x5   :  { %5759 = sst [smem:[#allocation65_spill]] %s5726_s4 }
   0x6   :  { %5760 = sst [smem:[#allocation66_spill]] %s5727_s5 }
   0x7   :  { %5761 = sst [smem:[#allocation67_spill]] %s5728_s6 }
   0x8   :  { %5762 = sst [smem:[#allocation68_spill]] %s5729_s7 }
   0x9   :  { %5763 = sst [smem:[#allocation69_spill]] %s5730_s8 }
   0xa   :  { %5764 = sst [smem:[#allocation70_spill]] %s5731_s9 }
   0xb   :  { %5765 = sst [smem:[#allocation71_spill]] %s5732_s10 }
   0xc   :  { %5766 = sst [smem:[#allocation72_spill]] %s5733_s11 }
   0xd   :  { %5767 = sst [smem:[#allocation73_spill]] %s5734_s12 }
   0xe   :  { %5768 = sst [smem:[#allocation74_spill]] %s5746_s24 }
   0xf   :  { %36 = vsyncpa [#allocation12], 0 }
  0x10   :  { %37 = vsyncpa [#allocation15], 0 }
  0x11   :  { %38 = vsyncpa [#allocation18], 0 }
  0x12   :  { %39 = vsyncpa [#allocation21], 0 }
  0x13   :  { %40 = vsyncpa [#allocation24], 0 }
  0x14   :  { %41 = vsyncpa [#allocation27], 0 }
  0x15   :  { %42 = vsyncpa [#allocation30], 0 }
  0x16   :  { %43 = vsyncpa [#allocation33], 0 }
  0x17   :  { %44 = vsyncpa [#allocation13], 0 }
  0x18   :  { %45 = vsyncpa [#allocation37], 0 }
  0x19   :  { %46 = vsyncpa [#allocation40], 0  ;;  %s5769_s3 = sld [smem:[#allocation63_spill]]  ;;  %s4645_s10 = smov [#allocation14]  }
  0x1a   :  { %s68_s0 = sshll.u32 %s4645_s10, 4  ;;  %s5770_s29 = sld [smem:[#allocation66_spill]]  ;;  %s69_s0 = int_to_ptr.vmem [resolvable:$true] %s68_s0 }
  0x1b   :  { %s5753_s7 = smov 64   ;;  %s4647_s12 = smov 4  }
  0x1c   :  { %s4648_s1 = smov [#allocation17]   ;;  %s5771_s9 = sld [smem:[#allocation68_spill]] }
  0x1d   :  { %s94_s4 = sshll.u32 %s4648_s1, 4  ;;  %s5772_s20 = sld [smem:[#allocation70_spill]]  ;;  %s95_s4 = int_to_ptr.vmem [resolvable:$true] %s94_s4 }
  0x1e   :  { %s5773_s5 = sld [smem:[#allocation72_spill]]  ;;  %s4651_s10 = smov [#allocation26]  }
  0x1f   :  { %s66_s6 = sshll.u32 %s5769_s3, 4  ;;  %s193_s3 = sshll.u32 %s5736_s14, 4  ;;  %s67_s6 = int_to_ptr.hbm [resolvable:$true] %s66_s6  ;;  %s194_s3 = int_to_ptr.hbm [resolvable:$true] %s193_s3 }
  0x20   :  { %s92_s2 = sshll.u32 %s5770_s29, 4  ;;  %s4649_s29 = smov [#allocation20]   ;;  %s93_s2 = int_to_ptr.hbm [resolvable:$true] %s92_s2 }
  0x21   :  { %74 = dma.hbm_to_vmem [thread:$0]  %s67_s6, 128, %s69_s0, [#allocation15], %s5753_s7, %s5753_s7, %s4647_s12  }
  0x22   :  { %s119_s30 = sshll.u32 %s5771_s9, 4  ;;  %s121_s24 = sshll.u32 %s4649_s29, 4  ;;  %s120_s30 = int_to_ptr.hbm [resolvable:$true] %s119_s30  ;;  %s122_s24 = int_to_ptr.vmem [resolvable:$true] %s121_s24 }
  0x23   :  { %100 = dma.hbm_to_vmem [thread:$0]  %s93_s2, 128, %s95_s4, [#allocation18], %s5753_s7, %s5753_s7, %s4647_s12  }
  0x24   :  { %s140_s11 = sshll.u32 %s5772_s20, 4  ;;  %s4650_s6 = smov [#allocation23]   ;;  %s141_s11 = int_to_ptr.hbm [resolvable:$true] %s140_s11 }
  0x25   :  { %124 = dma.hbm_to_vmem [thread:$0]  %s120_s30, 32, %s122_s24, [#allocation21]  }
  0x26   :  { %s142_s0 = sshll.u32 %s4650_s6, 4  ;;  %s164_s9 = sshll.u32 %s5773_s5, 4  ;;  %s143_s0 = int_to_ptr.vmem [resolvable:$true] %s142_s0  ;;  %s165_s9 = int_to_ptr.hbm [resolvable:$true] %s164_s9 }
  0x27   :  { %148 = dma.hbm_to_vmem [thread:$0]  %s141_s11, 128, %s143_s0, [#allocation24], %s5753_s7, %s5753_s7, %s4647_s12  }
  0x28   :  { %s166_s20 = sshll.u32 %s4651_s10, 4  ;;  %s4652_s24 = smov [#allocation29]   ;;  %s167_s20 = int_to_ptr.vmem [resolvable:$true] %s166_s20 }
  0x29   :  { %172 = dma.hbm_to_vmem [thread:$0]  %s165_s9, 128, %s167_s20, [#allocation27], %s5753_s7, %s5753_s7, %s4647_s12  }
  0x2a   :  { %s195_s30 = sshll.u32 %s4652_s24, 4  ;;  %s217_s1 = sshll.u32 %s5738_s16, 4  ;;  %s196_s30 = int_to_ptr.vmem [resolvable:$true] %s195_s30  ;;  %s218_s1 = int_to_ptr.hbm [resolvable:$true] %s217_s1 }
  0x2b   :  { %198 = dma.hbm_to_vmem [thread:$0]  %s194_s3, 16, %s196_s30, [#allocation30]  }
  0x2c   :  { %s5774_s14 = sld [smem:[#allocation61_spill]]  ;;  %s4653_s5 = smov [#allocation32]  }
  0x2d   :  { %s219_s2 = sshll.u32 %s4653_s5, 4  ;;  %s4654_s4 = smov [#allocation11]   ;;  %s220_s2 = int_to_ptr.vmem [resolvable:$true] %s219_s2 }
  0x2e   :  { %222 = dma.hbm_to_vmem [thread:$0]  %s218_s1, 16, %s220_s2, [#allocation33]  }
  0x2f   :  { %s53_s9 = sshll.u32 %s4654_s4, 4  ;;  %s5775_s24 = sld [smem:[#allocation65_spill]]  ;;  %s54_s9 = int_to_ptr.vmem [resolvable:$true] %s53_s9 }
  0x30   :  { %s5776_s16 = smov 64   ;;  %s5777_s29 = sld [smem:[#allocation67_spill]] }
  0x31   :  { %s4655_s11 = smov [#allocation16]   ;;  %s4656_s1 = smov [#allocation19]  }
  0x32   :  { %s51_s8 = sshll.u32 %s5774_s14, 4  ;;  %s84_s0 = sshll.u32 %s4655_s11, 4  ;;  %s52_s8 = int_to_ptr.hbm [resolvable:$true] %s51_s8  ;;  %s85_s0 = int_to_ptr.vmem [resolvable:$true] %s84_s0 }
  0x33   :  { %59 = dma.hbm_to_vmem [thread:$0]  %s52_s8, 128, %s54_s9, [#allocation12], %s5776_s16, %s5776_s16, %s4647_s12  }
  0x34   :  { %s107_s14 = sshll.u32 %s4656_s1, 4  ;;  %s5778_s4 = sld [smem:[#allocation69_spill]]  ;;  %s108_s14 = int_to_ptr.vmem [resolvable:$true] %s107_s14 }
  0x35   :  { %s82_s7 = sshll.u32 %s5775_s24, 4  ;;  %s5779_s20 = sld [smem:[#allocation71_spill]]  ;;  %s83_s7 = int_to_ptr.hbm [resolvable:$true] %s82_s7 }
  0x36   :  { %s105_s6 = sshll.u32 %s5777_s29, 4  ;;  %s4657_s3 = smov [#allocation22]   ;;  %s106_s6 = int_to_ptr.hbm [resolvable:$true] %s105_s6 }
  0x37   :  { %87 = dma.hbm_to_vmem [thread:$0]  %s83_s7, 32, %s85_s0, [#allocation15]  }
  0x38   :  { %113 = dma.hbm_to_vmem [thread:$0]  %s106_s6, 128, %s108_s14, [#allocation18], %s5776_s16, %s5776_s16, %s4647_s12  }
  0x39   :  { %s132_s30 = sshll.u32 %s4657_s3, 4  ;;  %s4658_s7 = smov [#allocation25]   ;;  %s133_s30 = int_to_ptr.vmem [resolvable:$true] %s132_s30 }
  0x3a   :  { %s130_s10 = sshll.u32 %s5778_s4, 4  ;;  %s156_s29 = sshll.u32 %s4658_s7, 4  ;;  %s131_s10 = int_to_ptr.hbm [resolvable:$true] %s130_s10  ;;  %s157_s29 = int_to_ptr.vmem [resolvable:$true] %s156_s29 }
  0x3b   :  { %s154_s24 = sshll.u32 %s5779_s20, 4  ;;  %s179_s1 = sshll.u32 %s5735_s13, 4  ;;  %s155_s24 = int_to_ptr.hbm [resolvable:$true] %s154_s24  ;;  %s180_s1 = int_to_ptr.hbm [resolvable:$true] %s179_s1 }
  0x3c   :  { %135 = dma.hbm_to_vmem [thread:$0]  %s131_s10, 32, %s133_s30, [#allocation21]  }
  0x3d   :  { %159 = dma.hbm_to_vmem [thread:$0]  %s155_s24, 16, %s157_s29, [#allocation24]  }
  0x3e   :  { %s203_s14 = sshll.u32 %s5737_s15, 4  ;;  %s4659_s2 = smov [#allocation28]   ;;  %s204_s14 = int_to_ptr.hbm [resolvable:$true] %s203_s14 }
  0x3f   :  { %s181_s4 = sshll.u32 %s4659_s2, 4  ;;  %s4660_s10 = smov [#allocation31]   ;;  %s182_s4 = int_to_ptr.vmem [resolvable:$true] %s181_s4 }
  0x40   :  { %187 = dma.hbm_to_vmem [thread:$0]  %s180_s1, 128, %s182_s4, [#allocation27], %s5776_s16, %s5776_s16, %s4647_s12  }
  0x41   :  { %s205_s8 = sshll.u32 %s4660_s10, 4  ;;  %s228_s13 = sshll.u32 %s5739_s17, 4  ;;  %s206_s8 = int_to_ptr.vmem [resolvable:$true] %s205_s8  ;;  %s229_s13 = int_to_ptr.hbm [resolvable:$true] %s228_s13 }
  0x42   :  { %211 = dma.hbm_to_vmem [thread:$0]  %s204_s14, 256, %s206_s8, [#allocation30], %s5776_s16, %s5776_s16, %s4647_s12  }
  0x43   :  { %s4661_s15 = smov [#allocation34]  }
  0x44   :  { %s230_s24 = sshll.u32 %s4661_s15, 4  ;;  %s231_s24 = int_to_ptr.vmem [resolvable:$true] %s230_s24 }
  0x45   :  { %233 = dma.hbm_to_vmem [thread:$0]  %s229_s13, 16, %s231_s24, [#allocation33]  }
  0x46   :  { %4617 = dma.done.wait [#allocation12], 128  }
  0x47   :  { %4618 = vsyncadd [#allocation12], 4294967168 }
  0x48   :  { %4619 = dma.done.wait [#allocation15], 160  }
  0x49   :  { %4620 = vsyncadd [#allocation15], 4294967136 }
  0x4a   :  { %4621 = dma.done.wait [#allocation18], 256  }
  0x4b   :  { %4622 = vsyncadd [#allocation18], 4294967040 }
  0x4c   :  { %4623 = dma.done.wait [#allocation21], 64  }
  0x4d   :  { %4624 = vsyncadd [#allocation21], 4294967232 }
  0x4e   :  { %4625 = dma.done.wait [#allocation24], 144  }
  0x4f   :  { %4626 = vsyncadd [#allocation24], 4294967152 }
  0x50   :  { %4627 = dma.done.wait [#allocation27], 256  }
  0x51   :  { %4628 = vsyncadd [#allocation27], 4294967040 }
  0x52   :  { %4629 = dma.done.wait [#allocation30], 272  }
  0x53   :  { %4630 = vsyncadd [#allocation30], 4294967024 }
  0x54   :  { %4631 = dma.done.wait [#allocation33], 32  }
  0x55   :  { %4632 = vsyncadd [#allocation33], 4294967264  ;;  %v315_v1 = vld [vmem:[%s5743_s21] sm:$0xff]  ;;  %v317_v2 = vld [vmem:[%s5743_s21 + $0x8] sm:$0xff] }
  0x56   :  { %316 = vst [vmem:[#allocation6] sm:$0xff] %v315_v1 }
  0x57   :  { %318 = vst [vmem:[#allocation6 + $0x8] sm:$0xff] %v317_v2 }
  0x58   :  { %324 = vsyncadd [#allocation9], 256  ;;  %s333_s11 = sshll.u32 %s5744_s22, 4  ;;  %v354_v3 = vld [vmem:[%s5745_s23] sm:$0x1]  ;;  %s4662_s5 = smov [#allocation7]   ;;  %s334_s11 = int_to_ptr.hbm [resolvable:$true] %s333_s11 }
  0x59   :  { %s335_s6 = sshll.u32 %s4662_s5, 4  ;;  %355 = vst [vmem:[#allocation8] sm:$0x1] %v354_v3  ;;  %s336_s6 = int_to_ptr.vmem [resolvable:$true] %s335_s6 }
  0x5a   :  { %338 = dma.hbm_to_vmem [thread:$0]  %s334_s11, 256, %s336_s6, [#allocation9 + $0x1] }
  0x5b   :  { %373 = vsyncadd [#allocation9 + $0x2], 16 }
  0x5c   :  { %4633 = dma.done.wait [#allocation9], 256 }
  0x5d   :  { %4634 = vsyncadd [#allocation9], 4294967040 }
  0x5e   :  { %4635 = dma.done.wait [#allocation9 + $0x1], 256 }
  0x5f   :  { %4636 = vsyncadd [#allocation9 + $0x1], 4294967040 }
  0x60   :  { %4637 = dma.done.wait [#allocation9 + $0x2], 16 }
  0x61   :  { %4638 = vsyncadd [#allocation9 + $0x2], 4294967280  ;;  %vm384_vm0 = vcmask 254976   ;;  %v3869_v4 = vld [vmem:[#allocation23] sm:$0xff]  ;;  %vm409_vm1 = vcmask 130048   ;;  %s5780_s23 = sld [smem:[#allocation64_spill]] }
  0x62   :  { %v3875_v5 = vld [vmem:[#allocation31 + $0x8] sm:$0xff]  ;;  %420 = vmatpush.bf16.msra.mxu0 %v3869_v4  ;;  %s5781_s4 = sld [smem:[#allocation73_spill]]  ;;  %v3867_v10 = vld [vmem:[#allocation11] sm:$0xff]  ;;  %vm519_vm2 = vcmask 261120   ;;  %v3871_v18 = vld [vmem:[#allocation28] sm:$0xff]  ;;  %s4663_s9 = smov 32  }
  0x63   :  { %v3868_v6 = vld [vmem:[#allocation14] sm:$0xff]  ;;  %v3870_v8 = vld [vmem:[#allocation26] sm:$0xff]  ;;  %448 = vmatpush.bf16.msra.mxu1 %v3871_v18  ;;  %v3960_v33 = vld [vmem:[#allocation29] ss:$0 sm:$0xff]  ;;  %s4664_s20 = smov 96   ;;  %vm724_vm12 = vcmask 1041409  }
  0x64   :  { %v3874_v11 = vld [vmem:[#allocation31] sm:$0xff]  ;;  %476 = vmatpush.bf16.msra.mxu2 %v3870_v8  ;;  %v386_v14 = vld [vmem:[#allocation16] sm:$0x3]  ;;  %v3958_v20 = vld [vmem:[#allocation25] ss:$0 sm:$0xff]  ;;  %vm727_vm13 = vcmask 58368  }
  0x65   :  { %3665 = vmatmul.msk.bf16.vlgmr.msra.gmra.mxu0 %vm409_vm1, %v3868_v6  ;;  %387 = vst.msk [vmem:[#allocation3] sm:$0x3] %vm384_vm0, %v386_v14  ;;  %v3959_v25 = vld [vmem:[#allocation32] ss:$0 sm:$0xff]  ;;  %s5782_s24 = sld [smem:[#allocation62_spill]]  ;;  %vm858_vm14 = vcmask 57344  }
  0x66   :  { %572 = vmatpush.bf16.msrb.mxu0 %v3875_v5  ;;  %vm849_vm15 = vcmask 253952   ;;  %s4668_s8 = smov [#allocation36]   ;;  %s3571_s12 = sshll.u32 %s5748_s26, 4  ;;  %s3572_s12 = int_to_ptr.hbm [resolvable:$true] %s3571_s12 }
  0x67   :  { %v383_v7 = vld [vmem:[%s5780_s23] sm:$0x3]  ;;  %3679 = vmatmul.msk.bf16.vlgmr.msra.gmra.mxu2 %vm409_vm1, %v3867_v10  ;;  %s3569_s13 = sshll.u32 %s4668_s8, 4  ;;  %s4669_s3 = smov 128   ;;  %s3570_s13 = int_to_ptr.vmem [resolvable:$true] %s3569_s13 }
  0x68   :  { %385 = vst.msk [vmem:[#allocation2] sm:$0x3] %vm384_vm0, %v383_v7  ;;  %v3873_v9 = vld [vmem:[%s5781_s4 + $0x8] sm:$0xff]  ;;  %v3872_v15 = vld [vmem:[%s5781_s4] sm:$0xff]  ;;  %s4670_s30 = smov 8   ;;  %s4671_s29 = smov [#allocation38]  }
  0x69   :  { %529 = vmatpush.bf16.msra.mxu3 %v3873_v9  ;;  %s3583_s11 = sshll.u32 %s4671_s29, 4  ;;  %s3585_s5 = sshll.u32 %s5749_s27, 4  ;;  %s3584_s11 = int_to_ptr.vmem [resolvable:$true] %s3583_s11  ;;  %s3586_s5 = int_to_ptr.hbm [resolvable:$true] %s3585_s5 }
  0x6a   :  { %573 = vmatpush.bf16.msrb.mxu0 %v3874_v11  ;;  %s3596_s22 = sshll.u32 %s5750_s28, 4  ;;  %s4672_s23 = smov [#allocation39]   ;;  %s3597_s22 = int_to_ptr.hbm [resolvable:$true] %s3596_s22 }
  0x6c   :  { %v4921_v16 = vld [vmem:[#allocation3] sm:$0x3] }
  0x6d   :  { %530 = vmatpush.bf16.msra.mxu3 %v3872_v15  ;;  %v502_v17 = vpack.c.bf16 %v4921_v16, %v4921_v16 }
  0x6f   :  { %v4912_v12 = vld [vmem:[#allocation2] sm:$0x3] }
  0x70   :  { %v542_v13 = vpack.c.bf16 %v4912_v12, %v4912_v12  ;;  %3688 = vmatmul.msk.bf16.vlgmr.msra.gmra.mxu3 %vm519_vm2, %v502_v17 }
  0x75   :  { %3697 = vmatmul.msk.bf16.vlgmr.msrb.gmra.mxu0 %vm519_vm2, %v542_v13  ;;  %v656_v13 = vrot.slane %v4912_v12, 1 }
  0xe2   :  { %v422_v19 = vpop.f32.mrf.mxu0 }
  0xe3   :  { %v423_v22 = vadd.f32 %v3958_v20, %v422_v19 }
  0xea   :  { %v424_v21 = vpop.f32.mrf.mxu0  ;;  %v478_v32 = vpop.f32.mrf.mxu2 }
  0xeb   :  { %v425_v23 = vadd.f32 %v3958_v20, %v424_v21  ;;  %v3909_v20 = vld [vmem:[#allocation17] sm:$0xff]  }
  0xed   :  { %v429_v24 = vpack.c.bf16 %v425_v23, %v423_v22  ;;  %v3910_v22 = vunpack.c.l.bf16 %v3909_v20  ;;  %v3911_v23 = vunpack.c.h.bf16 %v3909_v20 }
  0xef   :  { %3670 = vmatmul.msk.bf16.vlgmr.msra.gmra.mxu1 %vm409_vm1, %v429_v24  ;;  %v3945_v24 = vpack.i.bf16 %v3911_v23, %v3910_v22 }
  0xf2   :  { %v575_v26 = vpop.f32.mrf.mxu0  ;;  %v480_v39 = vpop.f32.mrf.mxu2 }
  0xf3   :  { %v576_v27 = vadd.f32 %v3959_v25, %v575_v26  ;;  %v532_v30 = vpop.f32.mrf.mxu3  ;;  %v695_v25 = vlaneseq }
  0xf4   :  { %v537_v43 = vrot.slane %v532_v30, 1 }
  0xf5   :  { %623 = vrot.lane.b32.xlu0 %v576_v27, %s5776_s16  ;;  %v580_v28 = vrot.slane %v576_v27, 1  ;;  %v4946_v26 = vshrl.u32 %v695_v25, 7 }
  0xf7   :  { %3950 = vset.pattern.permute.xlu1 %v4946_v26 }
  0xfa   :  { %v577_v29 = vpop.f32.mrf.mxu0 }
  0xfb   :  { %v534_v31 = vpop.f32.mrf.mxu3 }
  0xfd   :  { %625 = vrot.lane.b32.xlu0 %v580_v28, %s5776_s16 }
 0x105   :  { %657 = vrot.lane.b32.xlu0 %v4912_v12, %s4663_s9 }
 0x167   :  { %v624_v60 = vpop.permute.xlu0 %623 }
 0x16c   :  { %v450_v34 = vpop.f32.mrf.mxu1 }
 0x16d   :  { %v479_v35 = vadd.f32 %v478_v32, %v450_v34 }
 0x16f   :  { %v4931_v36 = vadd.f32 %v3960_v33, %v479_v35  ;;  %v626_v9 = vpop.permute.xlu0 %625 }
 0x171   :  { %v540_v37 = vadd.f32 %v532_v30, %v4931_v36 }
 0x173   :  { %v583_v38 = vadd.f32 %v576_v27, %v540_v37 }
 0x174   :  { %v452_v40 = vpop.f32.mrf.mxu1 }
 0x175   :  { %v481_v41 = vadd.f32 %v480_v39, %v452_v40  ;;  %v3698_v42 = vmul.f32 -1.442695, %v583_v38 }
 0x177   :  { %v4934_v44 = vadd.f32 %v3960_v33, %v481_v41  ;;  %3973 = vpow2.f32 %v3698_v42  ;;  %v497_v41 = vld [vmem:[#allocation20] sm:$0x3] }
 0x178   :  { %vm498_vm11 = vcmp.gt.f32.partialorder %v497_v41, 0.0 }
 0x179   :  { %v541_v45 = vadd.f32 %v537_v43, %v4934_v44 }
 0x17b   :  { %v584_v46 = vadd.f32 %v580_v28, %v541_v45  ;;  %v658_v28 = vpop.permute.xlu0 %657 }
 0x17d   :  { %v3974_v47 = vpop.eup %3973  ;;  %v3699_v48 = vmul.f32 -1.442695, %v584_v46 }
 0x17e   :  { %v591_v49 = vadd.f32 1.0, %v3974_v47 }
 0x17f   :  { %3975 = vpow2.f32 %v3699_v48 }
 0x180   :  { %3977 = vrcp.f32 %v591_v49  ;;  %v604_v55 = vand.u32 2147483648, %v591_v49  ;;  %v602_v57 = vand.u32 2147483647, %v591_v49  ;;  %vm598_vm4 = vweird.f32 %v591_v49 }
 0x182   :  { %v605_v61 = vor.u32 1.1754944e-38, %v604_v55  ;;  %vm603_vm6 = vcmp.eq.f32.partialorder %v602_v57, 8.507059e+37  ;;  %v4666_v57 = vmov 0  }
 0x183   :  { %3953 = vset.pattern.permute.xlu0 %v4666_v57  ;;  %3952 = vset.pattern.permute.xlu2 %v4666_v57 }
 0x185   :  { %v3976_v50 = vpop.eup %3975 }
 0x186   :  { %v3978_v51 = vpop.eup %3977  ;;  %v592_v52 = vadd.f32 1.0, %v3976_v50 }
 0x187   :  { %v594_v53 = vmul.f32 %v3978_v51, %v591_v49  ;;  %vm599_vm3 = vweird.f32 %v3978_v51  ;;  %v4665_v49 = vmov -1e+09  }
 0x188   :  { %3979 = vrcp.f32 %v592_v52  ;;  %vm600_vm5 = vmor %vm598_vm4, %vm599_vm3  ;;  %v619_v3 = vand.u32 2147483648, %v592_v52  ;;  %v617_v5 = vand.u32 2147483647, %v592_v52  ;;  %vm613_vm8 = vweird.f32 %v592_v52 }
 0x189   :  { %v595_v54 = vsub.f32 1.0, %v594_v53  ;;  %v499_v50 = vsel %vm498_vm11, 0.0, %v4665_v49 }
 0x18a   :  { %v620_v7 = vor.u32 1.1754944e-38, %v619_v3  ;;  %vm618_vm10 = vcmp.eq.f32.partialorder %v617_v5, 8.507059e+37 }
 0x18b   :  { %v596_v56 = vmul.f32 %v3978_v51, %v595_v54 }
 0x18d   :  { %v597_v58 = vadd.f32 %v3978_v51, %v596_v56 }
 0x18e   :  { %v3980_v59 = vpop.eup %3979 }
 0x18f   :  { %v601_v62 = vsel %vm600_vm5, %v3978_v51, %v597_v58  ;;  %v609_v63 = vmul.f32 %v3980_v59, %v592_v52  ;;  %vm614_vm7 = vweird.f32 %v3980_v59  ;;  %v694_v51 = vperm.slane %v499_v50, 0 }
 0x190   :  { %v606_v0 = vsel %vm603_vm6, %v605_v61, %v601_v62  ;;  %vm615_vm9 = vmor %vm613_vm8, %vm614_vm7  ;;  %v701_v52 = vperm.slane %v499_v50, 1 }
 0x191   :  { %v629_v1 = vmul.f32 %v624_v60, %v606_v0  ;;  %v610_v2 = vsub.f32 1.0, %v609_v63  ;;  %v643_v29 = vsub.f32 1.0, %v606_v0  ;;  %v663_v35 = vmul.f32 %v658_v28, %v606_v0 }
 0x193   :  { %633 = vrot.lane.b32.xlu1 %v629_v1, %s5776_s16  ;;  %v611_v4 = vmul.f32 %v3980_v59, %v610_v2  ;;  %v4974_v1 = vand.u32 127, %v695_v25 }
 0x195   :  { %v612_v6 = vadd.f32 %v3980_v59, %v611_v4 }
 0x197   :  { %v616_v8 = vsel %vm615_vm9, %v3980_v59, %v612_v6 }
 0x198   :  { %v621_v10 = vsel %vm618_vm10, %v620_v7, %v616_v8  ;;  %v792_v7 = vld [vmem:[%s5782_s24 + $0x8] sm:$0x1] }
 0x199   :  { %v630_v11 = vmul.f32 %v626_v9, %v621_v10  ;;  %v644_v30 = vsub.f32 1.0, %v621_v10  ;;  %v806_v20 = vsub.f32 1.0, %v792_v7 }
 0x19b   :  { %635 = vrot.lane.b32.xlu1 %v630_v11, %s5776_s16 }
 0x1a3   :  { %659 = vrot.lane.b32.xlu1 %v656_v13, %s4663_s9 }
 0x205   :  { %v634_v14 = vpop.permute.xlu1 %633 }
 0x206   :  { %v639_v15 = vadd.f32 %v634_v14, %v540_v37 }
 0x208   :  { %3981 = vtanh.f32 %v639_v15 }
 0x20d   :  { %v636_v17 = vpop.permute.xlu1 %635 }
 0x20e   :  { %v3982_v18 = vpop.eup %3981  ;;  %v640_v19 = vadd.f32 %v636_v17, %v541_v45 }
 0x20f   :  { %647 = vrot.lane.b32.xlu2 %v3982_v18, %s4664_s20 }
 0x210   :  { %3983 = vtanh.f32 %v640_v19 }
 0x215   :  { %v660_v31 = vpop.permute.xlu1 %659 }
 0x216   :  { %v3984_v21 = vpop.eup %3983  ;;  %v664_v37 = vmul.f32 %v660_v31, %v621_v10 }
 0x217   :  { %649 = vrot.lane.b32.xlu2 %v3984_v21, %s4664_s20  ;;  %v791_v21 = vld [vmem:[%s5782_s24] sm:$0x1] }
 0x218   :  { %v805_v22 = vsub.f32 1.0, %v791_v21 }
 0x21f   :  { %3946 = vrot.lane.b32.xlu2 %v3945_v24, %s4663_s9 }
 0x269   :  { %v648_v27 = vpop.permute.xlu2 %647 }
 0x26a   :  { %v653_v33 = vmul.f32 %v648_v27, %v643_v29 }
 0x26c   :  { %v4949_v38 = vadd.f32 %v663_v35, %v653_v33 }
 0x26e   :  { %v667_v42 = vperm.slane %v4949_v38, 0 }
 0x271   :  { %v650_v32 = vpop.permute.xlu2 %649 }
 0x272   :  { %v654_v34 = vmul.f32 %v650_v32, %v644_v30 }
 0x274   :  { %v4951_v39 = vadd.f32 %v664_v37, %v654_v34  ;;  %v3879_v34 = vld [vmem:[#allocation31 + $0x8] sm:$0xff] }
 0x275   :  { %948 = vmatpush.bf16.msrb.mxu2 %v3879_v34 }
 0x276   :  { %v668_v43 = vperm.slane %v4951_v39, 0 }
 0x279   :  { %v3947_v40 = vpop.permute.xlu2 %3946 }
 0x27a   :  { %v4955_v45 = vunpack.i.h.bf16 %v3947_v40  ;;  %v4957_v46 = vunpack.i.l.bf16 %v3947_v40 }
 0x27c   :  { %v677_v47 = vmul.f32 %v4957_v46, %v667_v42  ;;  %v678_v48 = vmul.f32 %v4955_v45, %v668_v43 }
 0x27e   :  { %681 = vrot.lane.b32.xlu0 %v677_v47, %s4664_s20  ;;  %683 = vrot.lane.b32.xlu1 %v678_v48, %s4664_s20 }
 0x286   :  { %699 = vperm.xlu1 %3950, %v694_v51  }
 0x28e   :  { %706 = vperm.xlu1 %3950, %v701_v52  }
 0x296   :  { %3951 = vset.pattern.permute.xlu1 %v4666_v57 }
 0x2f0   :  { %v682_v53 = vpop.permute.xlu0 %681  ;;  %v684_v54 = vpop.permute.xlu1 %683 }
 0x2f1   :  { %v687_v55 = vsel %vm519_vm2, %v682_v53, 0.0  ;;  %v690_v56 = vsel %vm519_vm2, %v684_v54, 0.0 }
 0x2f2   :  { %688 = vadd.xlane.f32.xlu2 %v687_v55  ;;  %691 = vadd.xlane.f32.xlu0 %v690_v56 }
 0x2f8   :  { %v4968_v58 = vpop.permute.xlu1 %699 }
 0x300   :  { %v4971_v62 = vpop.permute.xlu1 %706 }
 0x365   :  { %v689_v59 = vpop.xlane.xlu2 %688  ;;  %v692_v61 = vpop.xlane.xlu0 %691 }
 0x366   :  { %v710_v60 = vadd.f32 %v4968_v58, %v689_v59  ;;  %v711_v63 = vadd.f32 %v4971_v62, %v692_v61  ;;  %v3877_v61 = vld [vmem:[%s5781_s4 + $0x8] sm:$0xff] }
 0x367   :  { %895 = vmatpush.bf16.msrb.mxu1 %v3877_v61 }
 0x368   :  { %715 = vperm.xlu1 %3951, %v710_v60  }
 0x370   :  { %718 = vperm.xlu1 %3951, %v711_v63  }
 0x3da   :  { %v716_v0 = vpop.permute.xlu1 %715 }
 0x3db   :  { %v722_v3 = vperm.slane %v716_v0, %v4974_v1  ;;  %v3913_v0 = vld [vmem:[#allocation19] sm:$0xff]  }
 0x3e2   :  { %v719_v2 = vpop.permute.xlu1 %718 }
 0x3e3   :  { %v723_v4 = vperm.slane %v719_v2, %v4974_v1  ;;  %v5022_v2 = vunpack.c.l.bf16 %v3913_v0 }
 0x3e5   :  { %v725_v5 = vsel %vm724_vm12, %v723_v4, %v722_v3  ;;  %v5024_v3 = vunpack.c.h.bf16 %v3913_v0 }
 0x3e6   :  { %v728_v6 = vsel %vm727_vm13, %v725_v5, -inf }
 0x3e7   :  { %729 = vmax.xlane.f32.xlu1 %v728_v6 }
 0x400   :  { %800 = vperm.xlu1 %3951, %v792_v7  }
 0x45a   :  { %v730_v8 = vpop.xlane.xlu1 %729 }
 0x45b   :  { %v732_v9 = vperm.slane %v730_v8, 0  ;;  %v733_v10 = vperm.slane %v730_v8, 1 }
 0x45d   :  { %v736_v11 = vsub.f32 %v710_v60, %v732_v9  ;;  %v737_v14 = vsub.f32 %v711_v63, %v733_v10  ;;  %v3878_v60 = vld [vmem:[#allocation31] sm:$0xff]  ;;  %v3876_v63 = vld [vmem:[%s5781_s4] sm:$0xff] }
 0x45e   :  { %949 = vmatpush.bf16.msrb.mxu2 %v3878_v60  ;;  %896 = vmatpush.bf16.msrb.mxu1 %v3876_v63 }
 0x45f   :  { %v738_v15 = vmul.f32 1.442695, %v736_v11  ;;  %v740_v17 = vmul.f32 1.442695, %v737_v14 }
 0x461   :  { %3985 = vpow2.f32 %v738_v15 }
 0x462   :  { %3987 = vpow2.f32 %v740_v17 }
 0x467   :  { %v3986_v18 = vpop.eup %3985 }
 0x468   :  { %v3988_v19 = vpop.eup %3987  ;;  %745 = vperm.xlu2 %3952, %v3986_v18  }
 0x469   :  { %748 = vperm.xlu0 %3953, %v3988_v19  }
 0x470   :  { %814 = vperm.xlu2 %3952, %v806_v20  }
 0x471   :  { %795 = vperm.xlu0 %3953, %v791_v21  }
 0x472   :  { %v801_v37 = vpop.permute.xlu1 %800 }
 0x478   :  { %809 = vperm.xlu2 %3952, %v805_v22  }
 0x4c2   :  { %v746_v23 = vpop.permute.xlu2 %745 }
 0x4c3   :  { %v750_v30 = vperm.slane %v746_v23, %v4974_v1 }
 0x4ca   :  { %v4986_v24 = vpop.permute.xlu2 %814 }
 0x4cb   :  { %v820_v25 = vmul.f32 %v4986_v24, %v656_v13 }
 0x4cd   :  { %825 = vrot.lane.b32.xlu0 %v820_v25, %s4663_s9  ;;  %v834_v25 = vrot.slane %v4921_v16, 1 }
 0x4d2   :  { %v4992_v27 = vpop.permute.xlu2 %809 }
 0x4d3   :  { %v819_v28 = vmul.f32 %v4992_v27, %v4912_v12  ;;  %v804_v12 = vmul.f32 %v801_v37, %v4951_v39 }
 0x4d5   :  { %823 = vrot.lane.b32.xlu0 %v819_v28, %s4663_s9 }
 0x4db   :  { %v749_v29 = vpop.permute.xlu0 %748 }
 0x4dc   :  { %v751_v31 = vperm.slane %v749_v29, %v4974_v1 }
 0x4de   :  { %v752_v32 = vsel %vm724_vm12, %v751_v31, %v750_v30 }
 0x4df   :  { %v754_v33 = vsel %vm727_vm13, %v752_v32, 0.0  ;;  %v838_v32 = vmul.f32 %v834_v25, %v4986_v24 }
 0x4e0   :  { %755 = vadd.xlane.f32.xlu2 %v754_v33  ;;  %v837_v33 = vmul.f32 %v4992_v27, %v4921_v16 }
 0x4e3   :  { %v5001_v13 = vpop.permute.xlu0 %795 }
 0x4e4   :  { %v803_v42 = vmul.f32 %v5001_v13, %v4949_v38 }
 0x53f   :  { %v826_v35 = vpop.permute.xlu0 %825 }
 0x540   :  { %v5006_v43 = vadd.f32 %v826_v35, %v804_v12 }
 0x542   :  { %v909_v48 = vpack.c.bf16 %v5006_v43, %v5006_v43 }
 0x544   :  { %v921_v39 = vunpack.c.l.b16 %v909_v48  ;;  %v3961_v48 = vld [vmem:[#allocation32] ss:$0 sm:$0xff] }
 0x546   :  { %v922_v38 = vrot.slane %v921_v39, 7 }
 0x547   :  { %v824_v40 = vpop.permute.xlu0 %823 }
 0x548   :  { %v5008_v47 = vadd.f32 %v824_v40, %v803_v42 }
 0x54a   :  { %v908_v50 = vpack.c.bf16 %v5008_v47, %v5008_v47 }
 0x54c   :  { %v920_v55 = vunpack.c.l.b16 %v908_v50 }
 0x54e   :  { %v923_v56 = vsel %vm724_vm12, %v922_v38, %v920_v55 }
 0x54f   :  { %v924_v59 = vpack.c.b16 %v923_v56, %v923_v56 }
 0x553   :  { %v756_v41 = vpop.xlane.xlu2 %755 }
 0x554   :  { %3989 = vrcp.f32 %v756_v41 }
 0x55a   :  { %v3990_v49 = vpop.eup %3989 }
 0x55b   :  { %v760_v51 = vperm.slane %v3990_v49, 1  ;;  %v759_v52 = vperm.slane %v3990_v49, 0 }
 0x55d   :  { %v764_v53 = vmul.f32 %v3988_v19, %v760_v51  ;;  %v763_v54 = vmul.f32 %v3986_v18, %v759_v52 }
 0x55f   :  { %772 = vperm.xlu1 %3951, %v764_v53   ;;  %767 = vperm.xlu0 %3953, %v763_v54  }
 0x567   :  { %925 = vrot.lane.b32.xlu1 %v924_v59, %s4664_s20 }
 0x5d1   :  { %v768_v4 = vpop.permute.xlu0 %767  ;;  %v773_v5 = vpop.permute.xlu1 %772 }
 0x5d2   :  { %v775_v6 = vmul.f32 %v5022_v2, %v768_v4  ;;  %v854_v7 = vperm.slane %v768_v4, %v4974_v1  ;;  %v776_v8 = vmul.f32 %v5024_v3, %v773_v5  ;;  %v855_v9 = vperm.slane %v773_v5, %v4974_v1 }
 0x5d4   :  { %v777_v10 = vsel %vm519_vm2, %v775_v6, 0.0  ;;  %859 = vst.msk [vmem:[#allocation36] sm:$0x1] %vm858_vm14, %v854_v7  ;;  %v784_v11 = vsel %vm519_vm2, %v776_v8, 0.0 }
 0x5d5   :  { %v778_v14 = vrot.slane %v777_v10, 4  ;;  %v785_v15 = vrot.slane %v784_v11, 4  ;;  %860 = vst.msk [vmem:[#allocation36 + $0x8] sm:$0x1] %vm858_vm14, %v855_v9 }
 0x5d7   :  { %v779_v17 = vadd.f32 %v778_v14, %v777_v10  ;;  %v786_v18 = vadd.f32 %v785_v15, %v784_v11 }
 0x5d9   :  { %v780_v19 = vrot.slane %v779_v17, 2  ;;  %v787_v20 = vrot.slane %v786_v18, 2  ;;  %v926_v21 = vpop.permute.xlu1 %925 }
 0x5da   :  { %3717 = vmatmul.msk.bf16.vlgmr.msrb.gmra.mxu2 %vm519_vm2, %v926_v21 }
 0x5db   :  { %v781_v22 = vadd.f32 %v780_v19, %v779_v17  ;;  %v788_v23 = vadd.f32 %v787_v20, %v786_v18 }
 0x5dd   :  { %v782_v28 = vrot.slane %v781_v22, 1  ;;  %v789_v29 = vrot.slane %v788_v23, 1 }
 0x5df   :  { %v783_v30 = vadd.f32 %v782_v28, %v781_v22  ;;  %v790_v31 = vadd.f32 %v789_v29, %v788_v23 }
 0x5e1   :  { %v831_v34 = vmul.f32 %v5001_v13, %v783_v30  ;;  %v832_v35 = vmul.f32 %v801_v37, %v790_v31 }
 0x5e3   :  { %v5040_v12 = vadd.f32 %v837_v33, %v831_v34  ;;  %v5042_v40 = vadd.f32 %v838_v32, %v832_v35 }
 0x5e5   :  { %852 = vst.msk [vmem:[#allocation5] sm:$0x1] %vm849_vm15, %v5040_v12  ;;  %v861_v41 = vpack.c.bf16 %v5040_v12, %v5040_v12  ;;  %v862_v24 = vpack.c.bf16 %v5042_v40, %v5042_v40 }
 0x5e6   :  { %853 = vst.msk [vmem:[#allocation5 + $0x8] sm:$0x1] %vm849_vm15, %v5042_v40 }
 0x5e7   :  { %v870_v16 = vunpack.c.l.b16 %v862_v24  ;;  %v869_v27 = vunpack.c.l.b16 %v861_v41 }
 0x5e9   :  { %v871_v13 = vrot.slane %v870_v16, 7 }
 0x5eb   :  { %v872_v37 = vsel %vm724_vm12, %v871_v13, %v869_v27 }
 0x5ec   :  { %v873_v42 = vpack.c.b16 %v872_v37, %v872_v37 }
 0x5ee   :  { %3708 = vmatmul.msk.bf16.vlgmr.msrb.gmra.mxu1 %vm519_vm2, %v873_v42 }
 0x65d   :  { %v951_v49 = vpop.f32.mrf.mxu2 }
 0x65e   :  { %v952_v50 = vadd.f32 %v3961_v48, %v951_v49  ;;  %v1032_v48 = vrot.slane %v5006_v43, 7 }
 0x660   :  { %1001 = vrot.lane.b32.xlu2 %v952_v50, %s5776_s16  ;;  %v956_v51 = vrot.slane %v952_v50, 7 }
 0x662   :  { %999 = vrot.lane.b32.xlu0 %v956_v51, %s5776_s16 }
 0x665   :  { %v953_v52 = vpop.f32.mrf.mxu2 }
 0x66b   :  { %v898_v39 = vpop.f32.mrf.mxu1 }
 0x66c   :  { %v907_v54 = vadd.f32 %v898_v39, %v4934_v44  ;;  %v903_v60 = vrot.slane %v898_v39, 7 }
 0x66e   :  { %v960_v55 = vadd.f32 %v952_v50, %v907_v54  ;;  %v906_v61 = vadd.f32 %v903_v60, %v4931_v36 }
 0x670   :  { %v3719_v38 = vmul.f32 -1.442695, %v960_v55  ;;  %v959_v63 = vadd.f32 %v956_v51, %v906_v61  ;;  %v1031_v55 = vrot.slane %v5008_v47, 7 }
 0x672   :  { %3991 = vpow2.f32 %v3719_v38  ;;  %v3718_v4 = vmul.f32 -1.442695, %v959_v63 }
 0x673   :  { %v900_v53 = vpop.f32.mrf.mxu1 }
 0x678   :  { %v3992_v56 = vpop.eup %3991 }
 0x679   :  { %v968_v59 = vadd.f32 1.0, %v3992_v56 }
 0x67b   :  { %3993 = vrcp.f32 %v968_v59  ;;  %v995_v11 = vand.u32 2147483648, %v968_v59  ;;  %vm989_vm4 = vweird.f32 %v968_v59  ;;  %v993_v14 = vand.u32 2147483647, %v968_v59 }
 0x67c   :  { %3995 = vpow2.f32 %v3718_v4 }
 0x67d   :  { %v996_v17 = vor.u32 1.1754944e-38, %v995_v11  ;;  %vm994_vm6 = vcmp.eq.f32.partialorder %v993_v14, 8.507059e+37 }
 0x681   :  { %v3994_v0 = vpop.eup %3993 }
 0x682   :  { %v985_v5 = vmul.f32 %v3994_v0, %v968_v59  ;;  %v3996_v8 = vpop.eup %3995  ;;  %vm990_vm3 = vweird.f32 %v3994_v0 }
 0x683   :  { %v967_v10 = vadd.f32 1.0, %v3996_v8  ;;  %vm991_vm5 = vmor %vm989_vm4, %vm990_vm3 }
 0x684   :  { %v986_v6 = vsub.f32 1.0, %v985_v5 }
 0x685   :  { %3997 = vrcp.f32 %v967_v10  ;;  %v980_v29 = vand.u32 2147483648, %v967_v10  ;;  %vm974_vm8 = vweird.f32 %v967_v10  ;;  %v978_v30 = vand.u32 2147483647, %v967_v10 }
 0x686   :  { %v987_v7 = vmul.f32 %v3994_v0, %v986_v6 }
 0x687   :  { %v981_v32 = vor.u32 1.1754944e-38, %v980_v29  ;;  %vm979_vm10 = vcmp.eq.f32.partialorder %v978_v30, 8.507059e+37 }
 0x688   :  { %v988_v9 = vadd.f32 %v3994_v0, %v987_v7 }
 0x68a   :  { %v992_v15 = vsel %vm991_vm5, %v3994_v0, %v988_v9 }
 0x68b   :  { %v997_v19 = vsel %vm994_vm6, %v996_v17, %v992_v15  ;;  %v3998_v21 = vpop.eup %3997 }
 0x68c   :  { %v970_v22 = vmul.f32 %v3998_v21, %v967_v10  ;;  %vm975_vm7 = vweird.f32 %v3998_v21  ;;  %v1020_v42 = vsub.f32 1.0, %v997_v19  ;;  %v1036_v50 = vmul.f32 %v1032_v48, %v997_v19 }
 0x68d   :  { %vm976_vm9 = vmor %vm974_vm8, %vm975_vm7 }
 0x68e   :  { %v971_v23 = vsub.f32 1.0, %v970_v22  ;;  %v1134_v22 = vld [vmem:[%s5782_s24 + $0x1] sm:$0x1] }
 0x690   :  { %v972_v25 = vmul.f32 %v3998_v21, %v971_v23 }
 0x692   :  { %v973_v28 = vadd.f32 %v3998_v21, %v972_v25 }
 0x694   :  { %v977_v31 = vsel %vm976_vm9, %v3998_v21, %v973_v28 }
 0x695   :  { %v982_v34 = vsel %vm979_vm10, %v981_v32, %v977_v31 }
 0x696   :  { %v1035_v56 = vmul.f32 %v1031_v55, %v982_v34 }
 0x6ba   :  { %v1002_v18 = vpop.permute.xlu2 %1001 }
 0x6bb   :  { %v1006_v20 = vmul.f32 %v1002_v18, %v997_v19 }
 0x6bd   :  { %1011 = vrot.lane.b32.xlu0 %v1006_v20, %s5776_s16  ;;  %v1135_v20 = vld [vmem:[%s5782_s24 + $0x9] sm:$0x1] }
 0x6be   :  { %v1159_v21 = vsub.f32 1.0, %v1135_v20 }
 0x6d4   :  { %v1000_v33 = vpop.permute.xlu0 %999 }
 0x6d5   :  { %v1005_v35 = vmul.f32 %v1000_v33, %v982_v34 }
 0x6d7   :  { %1009 = vrot.lane.b32.xlu1 %v1005_v35, %s5776_s16  ;;  %v1158_v35 = vsub.f32 1.0, %v1134_v22 }
 0x72f   :  { %v1012_v41 = vpop.permute.xlu0 %1011 }
 0x730   :  { %v1016_v24 = vadd.f32 %v1012_v41, %v907_v54  ;;  %v1019_v54 = vsub.f32 1.0, %v982_v34 }
 0x732   :  { %3999 = vtanh.f32 %v1016_v24 }
 0x738   :  { %v4000_v16 = vpop.eup %3999 }
 0x739   :  { %1025 = vrot.lane.b32.xlu0 %v4000_v16, %s4664_s20 }
 0x749   :  { %v1010_v27 = vpop.permute.xlu1 %1009 }
 0x74a   :  { %v1015_v13 = vadd.f32 %v1010_v27, %v906_v61 }
 0x74c   :  { %4001 = vtanh.f32 %v1015_v13 }
 0x752   :  { %v4002_v37 = vpop.eup %4001 }
 0x753   :  { %1023 = vrot.lane.b32.xlu1 %v4002_v37, %s4664_s20 }
 0x7ab   :  { %v1026_v49 = vpop.permute.xlu0 %1025 }
 0x7ac   :  { %v1030_v51 = vmul.f32 %v1026_v49, %v1020_v42 }
 0x7ae   :  { %v5063_v52 = vadd.f32 %v1036_v50, %v1030_v51 }
 0x7b0   :  { %v1040_v39 = vperm.slane %v5063_v52, 1 }
 0x7b2   :  { %v1042_v53 = vmul.f32 %v4955_v45, %v1040_v39 }
 0x7b4   :  { %1047 = vrot.lane.b32.xlu0 %v1042_v53, %s4664_s20 }
 0x7c5   :  { %v1024_v38 = vpop.permute.xlu1 %1023 }
 0x7c6   :  { %v1029_v59 = vmul.f32 %v1024_v38, %v1019_v54 }
 0x7c8   :  { %v5069_v60 = vadd.f32 %v1035_v56, %v1029_v59  ;;  %v1149_v56 = vrot.slane %v5063_v52, 1 }
 0x7ca   :  { %v1039_v61 = vperm.slane %v5069_v60, 1  ;;  %v1148_v59 = vrot.slane %v5069_v60, 1 }
 0x7cc   :  { %v1041_v63 = vmul.f32 %v4957_v46, %v1039_v61  ;;  %v3881_v61 = vld [vmem:[%s5781_s4 + $0x8] sm:$0xff] }
 0x7cd   :  { %1232 = vmatpush.bf16.msrb.mxu3 %v3881_v61 }
 0x7ce   :  { %1045 = vrot.lane.b32.xlu1 %v1041_v63, %s4664_s20  ;;  %v3883_v63 = vld [vmem:[#allocation31 + $0x8] sm:$0xff] }
 0x7cf   :  { %1284 = vmatpush.bf16.msra.mxu0 %v3883_v63 }
 0x826   :  { %v1048_v0 = vpop.permute.xlu0 %1047 }
 0x827   :  { %v1054_v4 = vsel %vm519_vm2, %v1048_v0, 0.0  ;;  %v3880_v0 = vld [vmem:[%s5781_s4] sm:$0xff] }
 0x828   :  { %1055 = vadd.xlane.f32.xlu1 %v1054_v4  ;;  %v3882_v4 = vld [vmem:[#allocation31] sm:$0xff]  ;;  %1233 = vmatpush.bf16.msrb.mxu3 %v3880_v0 }
 0x829   :  { %1285 = vmatpush.bf16.msra.mxu0 %v3882_v4 }
 0x840   :  { %v1046_v5 = vpop.permute.xlu1 %1045 }
 0x841   :  { %v1051_v6 = vsel %vm519_vm2, %v1046_v5, 0.0 }
 0x842   :  { %1052 = vadd.xlane.f32.xlu2 %v1051_v6 }
 0x89b   :  { %v1056_v9 = vpop.xlane.xlu1 %1055 }
 0x89c   :  { %v1058_v10 = vadd.f32 %v1056_v9, %v4971_v62 }
 0x8b5   :  { %v1053_v7 = vpop.xlane.xlu2 %1052 }
 0x8b6   :  { %v1057_v8 = vadd.f32 %v1053_v7, %v4968_v58 }
 0x8b8   :  { %1062 = vperm.xlu0 %3953, %v1057_v8  }
 0x8c0   :  { %1065 = vperm.xlu0 %3953, %v1058_v10  }
 0x92a   :  { %v1063_v11 = vpop.permute.xlu0 %1062 }
 0x92b   :  { %v1067_v15 = vperm.slane %v1063_v11, %v4974_v1 }
 0x932   :  { %v1066_v14 = vpop.permute.xlu0 %1065 }
 0x933   :  { %v1068_v17 = vperm.slane %v1066_v14, %v4974_v1 }
 0x935   :  { %v1069_v18 = vsel %vm724_vm12, %v1068_v17, %v1067_v15 }
 0x936   :  { %v1071_v19 = vsel %vm727_vm13, %v1069_v18, -inf }
 0x937   :  { %1072 = vmax.xlane.f32.xlu0 %v1071_v19 }
 0x94b   :  { %1167 = vperm.xlu0 %3953, %v1159_v21  }
 0x953   :  { %1143 = vperm.xlu0 %3953, %v1135_v20  }
 0x95b   :  { %1138 = vperm.xlu0 %3953, %v1134_v22  }
 0x9aa   :  { %v1073_v23 = vpop.xlane.xlu0 %1072 }
 0x9ab   :  { %v1075_v25 = vperm.slane %v1073_v23, 0  ;;  %v1076_v28 = vperm.slane %v1073_v23, 1 }
 0x9ad   :  { %v1079_v29 = vsub.f32 %v1057_v8, %v1075_v25  ;;  %v1080_v30 = vsub.f32 %v1058_v10, %v1076_v28 }
 0x9af   :  { %v1081_v31 = vmul.f32 1.442695, %v1079_v29  ;;  %v1083_v32 = vmul.f32 1.442695, %v1080_v30 }
 0x9b1   :  { %4003 = vpow2.f32 %v1081_v31 }
 0x9b2   :  { %4005 = vpow2.f32 %v1083_v32 }
 0x9b7   :  { %v4004_v33 = vpop.eup %4003 }
 0x9b8   :  { %v4006_v34 = vpop.eup %4005  ;;  %1088 = vperm.xlu2 %3952, %v4004_v33  }
 0x9b9   :  { %1091 = vperm.xlu1 %3951, %v4006_v34  }
 0x9bd   :  { %v1168_v41 = vpop.permute.xlu0 %1167 }
 0x9be   :  { %v1171_v24 = vmul.f32 %v1168_v41, %v5006_v43  ;;  %v1185_v25 = vmul.f32 %v1168_v41, %v5042_v40 }
 0x9c0   :  { %1176 = vrot.lane.b32.xlu0 %v1171_v24, %s4664_s20 }
 0x9c1   :  { %1162 = vperm.xlu1 %3951, %v1158_v35  }
 0x9c5   :  { %v1144_v5 = vpop.permute.xlu0 %1143 }
 0x9cd   :  { %v1139_v17 = vpop.permute.xlu0 %1138 }
 0xa12   :  { %v1089_v16 = vpop.permute.xlu2 %1088 }
 0xa13   :  { %v1093_v13 = vperm.slane %v1089_v16, %v4974_v1 }
 0xa2b   :  { %v1092_v27 = vpop.permute.xlu1 %1091 }
 0xa2c   :  { %v1094_v37 = vperm.slane %v1092_v27, %v4974_v1 }
 0xa2e   :  { %v1095_v42 = vsel %vm724_vm12, %v1094_v37, %v1093_v13 }
 0xa2f   :  { %v1097_v48 = vsel %vm727_vm13, %v1095_v42, 0.0 }
 0xa30   :  { %1098 = vadd.xlane.f32.xlu2 %v1097_v48 }
 0xa32   :  { %v1177_v32 = vpop.permute.xlu0 %1176 }
 0xa33   :  { %v1163_v49 = vpop.permute.xlu1 %1162 }
 0xa34   :  { %v1170_v50 = vmul.f32 %v1163_v49, %v5008_v47  ;;  %v1184_v27 = vmul.f32 %v1163_v49, %v5040_v12 }
 0xa48   :  { %1174 = vrot.lane.b32.xlu2 %v1170_v50, %s4664_s20 }
 0xaa3   :  { %v1099_v51 = vpop.xlane.xlu2 %1098 }
 0xaa4   :  { %4007 = vrcp.f32 %v1099_v51 }
 0xaaa   :  { %v4008_v39 = vpop.eup %4007 }
 0xaab   :  { %v1103_v53 = vperm.slane %v4008_v39, 1  ;;  %v1102_v55 = vperm.slane %v4008_v39, 0  ;;  %v1175_v48 = vpop.permute.xlu2 %1174 }
 0xaad   :  { %v1107_v54 = vmul.f32 %v4006_v34, %v1103_v53  ;;  %v1106_v38 = vmul.f32 %v4004_v33, %v1102_v55 }
 0xaaf   :  { %1115 = vperm.xlu1 %3951, %v1107_v54  }
 0xab7   :  { %1110 = vperm.xlu1 %3951, %v1106_v38  }
 0xabf   :  { %1152 = vrot.lane.b32.xlu1 %v1149_v56, %s4664_s20 }
 0xac7   :  { %1150 = vrot.lane.b32.xlu1 %v1148_v59, %s4664_s20 }
 0xb21   :  { %v1116_v52 = vpop.permute.xlu1 %1115 }
 0xb22   :  { %v1119_v6 = vmul.f32 %v5024_v3, %v1116_v52  ;;  %v1193_v60 = vperm.slane %v1116_v52, %v4974_v1 }
 0xb24   :  { %v1127_v7 = vsel %vm519_vm2, %v1119_v6, 0.0  ;;  %1197 = vst.msk [vmem:[#allocation36 + $0x9] sm:$0x1] %vm858_vm14, %v1193_v60 }
 0xb25   :  { %v1128_v8 = vrot.slane %v1127_v7, 4 }
 0xb27   :  { %v1129_v9 = vadd.f32 %v1128_v8, %v1127_v7 }
 0xb29   :  { %v1130_v10 = vrot.slane %v1129_v9, 2  ;;  %v1111_v11 = vpop.permute.xlu1 %1110 }
 0xb2a   :  { %v1118_v14 = vmul.f32 %v5022_v2, %v1111_v11  ;;  %v1192_v15 = vperm.slane %v1111_v11, %v4974_v1 }
 0xb2b   :  { %v1131_v18 = vadd.f32 %v1130_v10, %v1129_v9 }
 0xb2c   :  { %v1120_v19 = vsel %vm519_vm2, %v1118_v14, 0.0  ;;  %1196 = vst.msk [vmem:[#allocation36 + $0x1] sm:$0x1] %vm858_vm14, %v1192_v15 }
 0xb2d   :  { %v1132_v20 = vrot.slane %v1131_v18, 1  ;;  %v1121_v21 = vrot.slane %v1120_v19, 4 }
 0xb2f   :  { %v1133_v22 = vadd.f32 %v1132_v20, %v1131_v18  ;;  %v1122_v23 = vadd.f32 %v1121_v21, %v1120_v19 }
 0xb31   :  { %v1183_v28 = vmul.f32 %v1144_v5, %v1133_v22  ;;  %v1123_v29 = vrot.slane %v1122_v23, 2  ;;  %v1153_v30 = vpop.permute.xlu1 %1152 }
 0xb32   :  { %v1157_v31 = vmul.f32 %v1153_v30, %v1144_v5  ;;  %v3962_v5 = vld [vmem:[#allocation32] ss:$0 sm:$0xff] }
 0xb33   :  { %v5115_v33 = vadd.f32 %v1185_v25, %v1183_v28  ;;  %v1124_v34 = vadd.f32 %v1123_v29, %v1122_v23 }
 0xb34   :  { %v5117_v35 = vadd.f32 %v1177_v32, %v1157_v31 }
 0xb35   :  { %1191 = vst.msk [vmem:[#allocation5 + $0x9] sm:$0x1] %vm849_vm15, %v5115_v33  ;;  %v1125_v24 = vrot.slane %v1124_v34, 1  ;;  %v1199_v40 = vpack.c.bf16 %v5115_v33, %v5115_v33 }
 0xb36   :  { %1189 = vst.msk [vmem:[#allocation4 + $0x9] sm:$0x1] %vm849_vm15, %v5117_v35  ;;  %v1247_v41 = vpack.c.bf16 %v5117_v35, %v5117_v35 }
 0xb37   :  { %v1126_v16 = vadd.f32 %v1125_v24, %v1124_v34  ;;  %v1207_v51 = vunpack.c.l.b16 %v1199_v40 }
 0xb38   :  { %v1259_v39 = vunpack.c.l.b16 %v1247_v41 }
 0xb39   :  { %v1182_v13 = vmul.f32 %v1139_v17, %v1126_v16  ;;  %v1151_v37 = vpop.permute.xlu1 %1150  ;;  %v1208_v38 = vrot.slane %v1207_v51, 7 }
 0xb3a   :  { %v1156_v42 = vmul.f32 %v1151_v37, %v1139_v17  ;;  %v1260_v56 = vrot.slane %v1259_v39, 7 }
 0xb3b   :  { %v5128_v50 = vadd.f32 %v1184_v27, %v1182_v13 }
 0xb3c   :  { %v5130_v53 = vadd.f32 %v1175_v48, %v1156_v42 }
 0xb3d   :  { %1190 = vst.msk [vmem:[#allocation5 + $0x1] sm:$0x1] %vm849_vm15, %v5128_v50  ;;  %v1198_v54 = vpack.c.bf16 %v5128_v50, %v5128_v50 }
 0xb3e   :  { %1188 = vst.msk [vmem:[#allocation4 + $0x1] sm:$0x1] %vm849_vm15, %v5130_v53  ;;  %v1246_v12 = vpack.c.bf16 %v5130_v53, %v5130_v53  ;;  %v1370_v49 = vrot.slane %v5130_v53, 6 }
 0xb3f   :  { %v1206_v55 = vunpack.c.l.b16 %v1198_v54 }
 0xb40   :  { %v1258_v59 = vunpack.c.l.b16 %v1246_v12  ;;  %1372 = vrot.lane.b32.xlu2 %v1370_v49, %s4663_s9 }
 0xb41   :  { %v1209_v61 = vsel %vm724_vm12, %v1208_v38, %v1206_v55 }
 0xb42   :  { %v1210_v63 = vpack.c.b16 %v1209_v61, %v1209_v61  ;;  %v1261_v0 = vsel %vm724_vm12, %v1260_v56, %v1258_v59 }
 0xb43   :  { %v1262_v4 = vpack.c.b16 %v1261_v0, %v1261_v0 }
 0xb44   :  { %3728 = vmatmul.msk.bf16.vlgmr.msrb.gmra.mxu3 %vm519_vm2, %v1210_v63 }
 0xb45   :  { %3737 = vmatmul.msk.bf16.vlgmr.msra.gmra.mxu0 %vm519_vm2, %v1262_v4 }
 0xbc2   :  { %v1287_v52 = vpop.f32.mrf.mxu0 }
 0xbc3   :  { %v1288_v6 = vadd.f32 %v3962_v5, %v1287_v52 }
 0xbc5   :  { %v1293_v60 = vrot.slane %v1288_v6, 7  ;;  %v1292_v7 = vrot.slane %v1288_v6, 6 }
 0xbc7   :  { %v1235_v8 = vpop.f32.mrf.mxu3  ;;  %1338 = vrot.lane.b32.xlu0 %v1293_v60, %s5776_s16  ;;  %1336 = vrot.lane.b32.xlu1 %v1292_v7, %s5776_s16 }
 0xbc8   :  { %v1241_v11 = vrot.slane %v1235_v8, 7  ;;  %v1240_v14 = vrot.slane %v1235_v8, 6  ;;  %v1373_v8 = vpop.permute.xlu2 %1372 }
 0xbca   :  { %v1289_v9 = vpop.f32.mrf.mxu0  ;;  %v1245_v15 = vadd.f32 %v1241_v11, %v4934_v44  ;;  %v1244_v17 = vadd.f32 %v1240_v14, %v4931_v36 }
 0xbcc   :  { %v1297_v18 = vadd.f32 %v1293_v60, %v1245_v15  ;;  %v1296_v19 = vadd.f32 %v1292_v7, %v1244_v17  ;;  %v1371_v60 = vrot.slane %v5117_v35, 6 }
 0xbce   :  { %v3739_v20 = vmul.f32 -1.442695, %v1297_v18  ;;  %v3738_v21 = vmul.f32 -1.442695, %v1296_v19 }
 0xbcf   :  { %v1237_v10 = vpop.f32.mrf.mxu3 }
 0xbd0   :  { %4009 = vpow2.f32 %v3739_v20 }
 0xbd1   :  { %4011 = vpow2.f32 %v3738_v21 }
 0xbd6   :  { %v4010_v22 = vpop.eup %4009 }
 0xbd7   :  { %v4012_v23 = vpop.eup %4011  ;;  %v1305_v25 = vadd.f32 1.0, %v4010_v22 }
 0xbd8   :  { %v1304_v28 = vadd.f32 1.0, %v4012_v23 }
 0xbd9   :  { %4013 = vrcp.f32 %v1305_v25  ;;  %vm1326_vm4 = vweird.f32 %v1305_v25  ;;  %v1332_v13 = vand.u32 2147483648, %v1305_v25  ;;  %v1330_v42 = vand.u32 2147483647, %v1305_v25 }
 0xbda   :  { %4015 = vrcp.f32 %v1304_v28  ;;  %v1317_v37 = vand.u32 2147483648, %v1304_v28  ;;  %vm1311_vm6 = vweird.f32 %v1304_v28  ;;  %v1315_v48 = vand.u32 2147483647, %v1304_v28 }
 0xbdb   :  { %v1333_v54 = vor.u32 1.1754944e-38, %v1332_v13  ;;  %vm1331_vm8 = vcmp.eq.f32.partialorder %v1330_v42, 8.507059e+37 }
 0xbdc   :  { %v1318_v12 = vor.u32 1.1754944e-38, %v1317_v37  ;;  %vm1316_vm9 = vcmp.eq.f32.partialorder %v1315_v48, 8.507059e+37 }
 0xbdf   :  { %v4014_v29 = vpop.eup %4013 }
 0xbe0   :  { %v4016_v30 = vpop.eup %4015  ;;  %v1322_v31 = vmul.f32 %v4014_v29, %v1305_v25  ;;  %vm1327_vm11 = vweird.f32 %v4014_v29 }
 0xbe1   :  { %v1307_v32 = vmul.f32 %v4016_v30, %v1304_v28  ;;  %vm1312_vm3 = vweird.f32 %v4016_v30  ;;  %vm1328_vm5 = vmor %vm1326_vm4, %vm1327_vm11 }
 0xbe2   :  { %v1323_v34 = vsub.f32 1.0, %v1322_v31  ;;  %vm1313_vm7 = vmor %vm1311_vm6, %vm1312_vm3 }
 0xbe3   :  { %v1308_v24 = vsub.f32 1.0, %v1307_v32 }
 0xbe4   :  { %v1324_v16 = vmul.f32 %v4014_v29, %v1323_v34 }
 0xbe5   :  { %v1309_v40 = vmul.f32 %v4016_v30, %v1308_v24 }
 0xbe6   :  { %v1325_v41 = vadd.f32 %v4014_v29, %v1324_v16 }
 0xbe7   :  { %v1310_v27 = vadd.f32 %v4016_v30, %v1309_v40 }
 0xbe8   :  { %v1329_v51 = vsel %vm1328_vm5, %v4014_v29, %v1325_v41 }
 0xbe9   :  { %v1314_v39 = vsel %vm1313_vm7, %v4016_v30, %v1310_v27  ;;  %v1334_v55 = vsel %vm1331_vm8, %v1333_v54, %v1329_v51 }
 0xbea   :  { %v1319_v56 = vsel %vm1316_vm9, %v1318_v12, %v1314_v39  ;;  %v1357_v18 = vsub.f32 1.0, %v1334_v55 }
 0xbeb   :  { %v1356_v7 = vsub.f32 1.0, %v1319_v56  ;;  %v1378_v10 = vmul.f32 %v1373_v8, %v1319_v56 }
 0xc39   :  { %v1339_v49 = vpop.permute.xlu0 %1338  ;;  %v1337_v38 = vpop.permute.xlu1 %1336 }
 0xc3a   :  { %v1343_v59 = vmul.f32 %v1339_v49, %v1334_v55  ;;  %v1342_v61 = vmul.f32 %v1337_v38, %v1319_v56 }
 0xc3c   :  { %1348 = vrot.lane.b32.xlu0 %v1343_v59, %s5776_s16  ;;  %1346 = vrot.lane.b32.xlu1 %v1342_v61, %s5776_s16  ;;  %v1478_v61 = vld [vmem:[%s5782_s24 + $0xa] sm:$0x1] }
 0xcae   :  { %v1349_v63 = vpop.permute.xlu0 %1348  ;;  %v1347_v0 = vpop.permute.xlu1 %1346 }
 0xcaf   :  { %v1353_v4 = vadd.f32 %v1349_v63, %v1245_v15  ;;  %v1352_v5 = vadd.f32 %v1347_v0, %v1244_v17  ;;  %v1502_v63 = vsub.f32 1.0, %v1478_v61  ;;  %v1477_v0 = vld [vmem:[%s5782_s24 + $0x2] sm:$0x1] }
 0xcb1   :  { %4017 = vtanh.f32 %v1353_v4 }
 0xcb2   :  { %4019 = vtanh.f32 %v1352_v5 }
 0xcb7   :  { %v4018_v52 = vpop.eup %4017 }
 0xcb8   :  { %v4020_v6 = vpop.eup %4019  ;;  %1362 = vrot.lane.b32.xlu0 %v4018_v52, %s4664_s20 }
 0xcb9   :  { %1360 = vrot.lane.b32.xlu1 %v4020_v6, %s4664_s20 }
 0xcc1   :  { %1374 = vrot.lane.b32.xlu1 %v1371_v60, %s4663_s9 }
 0xd2a   :  { %v1363_v17 = vpop.permute.xlu0 %1362 }
 0xd2b   :  { %v1361_v9 = vpop.permute.xlu1 %1360  ;;  %v1367_v21 = vmul.f32 %v1363_v17, %v1357_v18 }
 0xd2c   :  { %v1366_v11 = vmul.f32 %v1361_v9, %v1356_v7 }
 0xd2e   :  { %v5156_v14 = vadd.f32 %v1378_v10, %v1366_v11 }
 0xd30   :  { %v1382_v15 = vperm.slane %v5156_v14, 2 }
 0xd32   :  { %v1384_v19 = vmul.f32 %v4957_v46, %v1382_v15 }
 0xd33   :  { %v1375_v20 = vpop.permute.xlu1 %1374 }
 0xd34   :  { %v1379_v22 = vmul.f32 %v1375_v20, %v1334_v55  ;;  %1388 = vrot.lane.b32.xlu0 %v1384_v19, %s4664_s20 }
 0xd36   :  { %v1381_v23 = vadd.f32 %v1379_v22, %v1367_v21 }
 0xd38   :  { %v1383_v25 = vperm.slane %v1381_v23, 2  ;;  %v1492_v8 = vrot.slane %v1381_v23, 2  ;;  %v1501_v23 = vsub.f32 1.0, %v1477_v0 }
 0xd3a   :  { %v1385_v28 = vmul.f32 %v4955_v45, %v1383_v25 }
 0xd3c   :  { %1390 = vrot.lane.b32.xlu2 %v1385_v28, %s4664_s20 }
 0xd96   :  { %v1391_v29 = vpop.permute.xlu2 %1390 }
 0xd97   :  { %v1397_v30 = vsel %vm519_vm2, %v1391_v29, 0.0  ;;  %v1491_v29 = vrot.slane %v5156_v14, 2 }
 0xd98   :  { %1398 = vadd.xlane.f32.xlu0 %v1397_v30  ;;  %v3887_v30 = vld [vmem:[#allocation31 + $0x8] sm:$0xff] }
 0xd99   :  { %1619 = vmatpush.bf16.msra.mxu2 %v3887_v30  ;;  %v3963_v30 = vld [vmem:[#allocation32] ss:$0 sm:$0xff] }
 0xda6   :  { %v1389_v31 = vpop.permute.xlu0 %1388 }
 0xda7   :  { %v1394_v32 = vsel %vm519_vm2, %v1389_v31, 0.0  ;;  %v3886_v31 = vld [vmem:[#allocation31] sm:$0xff] }
 0xda8   :  { %1395 = vadd.xlane.f32.xlu1 %v1394_v32  ;;  %1620 = vmatpush.bf16.msra.mxu2 %v3886_v31  ;;  %v3884_v32 = vld [vmem:[%s5781_s4] sm:$0xff] }
 0xe0b   :  { %v1399_v16 = vpop.xlane.xlu0 %1398 }
 0xe0c   :  { %v1401_v40 = vadd.f32 %v1399_v16, %v4971_v62 }
 0xe1b   :  { %v1396_v34 = vpop.xlane.xlu1 %1395 }
 0xe1c   :  { %v1400_v24 = vadd.f32 %v1396_v34, %v4968_v58 }
 0xe1e   :  { %1405 = vperm.xlu2 %3952, %v1400_v24  }
 0xe26   :  { %1408 = vperm.xlu2 %3952, %v1401_v40  }
 0xe78   :  { %v1406_v41 = vpop.permute.xlu2 %1405 }
 0xe79   :  { %v1410_v13 = vperm.slane %v1406_v41, %v4974_v1 }
 0xe80   :  { %v1409_v27 = vpop.permute.xlu2 %1408 }
 0xe81   :  { %v1411_v37 = vperm.slane %v1409_v27, %v4974_v1 }
 0xe83   :  { %v1412_v42 = vsel %vm724_vm12, %v1411_v37, %v1410_v13 }
 0xe84   :  { %v1414_v48 = vsel %vm727_vm13, %v1412_v42, -inf }
 0xe85   :  { %1415 = vmax.xlane.f32.xlu2 %v1414_v48 }
 0xef8   :  { %v1416_v51 = vpop.xlane.xlu2 %1415 }
 0xef9   :  { %v1418_v39 = vperm.slane %v1416_v51, 0  ;;  %v1419_v54 = vperm.slane %v1416_v51, 1 }
 0xefb   :  { %v1422_v12 = vsub.f32 %v1400_v24, %v1418_v39  ;;  %v1423_v49 = vsub.f32 %v1401_v40, %v1419_v54 }
 0xefd   :  { %v1424_v55 = vmul.f32 1.442695, %v1422_v12  ;;  %v1426_v38 = vmul.f32 1.442695, %v1423_v49 }
 0xeff   :  { %4021 = vpow2.f32 %v1424_v55 }
 0xf00   :  { %4023 = vpow2.f32 %v1426_v38 }
 0xf05   :  { %v4022_v56 = vpop.eup %4021 }
 0xf06   :  { %v4024_v59 = vpop.eup %4023  ;;  %1431 = vperm.xlu1 %3951, %v4022_v56  }
 0xf07   :  { %1434 = vperm.xlu0 %3953, %v4024_v59  }
 0xf0e   :  { %1486 = vperm.xlu1 %3951, %v1478_v61  }
 0xf0f   :  { %1510 = vperm.xlu0 %3953, %v1502_v63  }
 0xf17   :  { %1481 = vperm.xlu0 %3953, %v1477_v0  }
 0xf78   :  { %v1432_v4 = vpop.permute.xlu1 %1431 }
 0xf79   :  { %v1435_v5 = vpop.permute.xlu0 %1434  ;;  %v1436_v52 = vperm.slane %v1432_v4, %v4974_v1 }
 0xf7a   :  { %v1437_v6 = vperm.slane %v1435_v5, %v4974_v1 }
 0xf7c   :  { %v1438_v60 = vsel %vm724_vm12, %v1437_v6, %v1436_v52 }
 0xf7d   :  { %v1440_v7 = vsel %vm727_vm13, %v1438_v60, 0.0 }
 0xf7e   :  { %1441 = vadd.xlane.f32.xlu2 %v1440_v7 }
 0xf80   :  { %v1487_v15 = vpop.permute.xlu1 %1486 }
 0xf81   :  { %v1511_v10 = vpop.permute.xlu0 %1510 }
 0xf82   :  { %v1514_v20 = vmul.f32 %v1511_v10, %v5117_v35  ;;  %v3885_v35 = vld [vmem:[%s5781_s4 + $0x8] sm:$0xff] }
 0xf83   :  { %1567 = vmatpush.bf16.msra.mxu1 %v3885_v35 }
 0xf87   :  { %1568 = vmatpush.bf16.msra.mxu1 %v3884_v32 }
 0xf89   :  { %v1482_v34 = vpop.permute.xlu0 %1481 }
 0xf96   :  { %1495 = vrot.lane.b32.xlu2 %v1492_v8, %s4664_s20 }
 0xff1   :  { %v1442_v9 = vpop.xlane.xlu2 %1441 }
 0xff2   :  { %4025 = vrcp.f32 %v1442_v9 }
 0xff8   :  { %v4026_v11 = vpop.eup %4025 }
 0xff9   :  { %v1496_v17 = vpop.permute.xlu2 %1495  ;;  %v1446_v18 = vperm.slane %v4026_v11, 1  ;;  %v1445_v19 = vperm.slane %v4026_v11, 0 }
 0xffa   :  { %v1500_v21 = vmul.f32 %v1496_v17, %v1487_v15 }
 0xffb   :  { %v1450_v22 = vmul.f32 %v4024_v59, %v1446_v18  ;;  %v1449_v25 = vmul.f32 %v4022_v56, %v1445_v19 }
 0xffc   :  { %v5183_v28 = vadd.f32 %v1514_v20, %v1500_v21 }
 0xffd   :  { %1458 = vperm.xlu0 %3953, %v1450_v22   ;;  %1453 = vperm.xlu1 %3951, %v1449_v25  }
 0xffe   :  { %1524 = vst.msk [vmem:[#allocation4 + $0xa] sm:$0x1] %vm849_vm15, %v5183_v28  ;;  %v1582_v54 = vpack.c.bf16 %v5183_v28, %v5183_v28 }
0x1000   :  { %v1594_v0 = vunpack.c.l.b16 %v1582_v54 }
0x1002   :  { %v1595_v8 = vrot.slane %v1594_v0, 7 }
0x1005   :  { %1505 = vperm.xlu0 %3953, %v1501_v23   ;;  %1493 = vrot.lane.b32.xlu1 %v1491_v29, %s4664_s20 }
0x106f   :  { %v1459_v24 = vpop.permute.xlu0 %1458  ;;  %v1454_v14 = vpop.permute.xlu1 %1453 }
0x1070   :  { %v1462_v16 = vmul.f32 %v5024_v3, %v1459_v24  ;;  %v1528_v40 = vperm.slane %v1459_v24, %v4974_v1  ;;  %v1461_v41 = vmul.f32 %v5022_v2, %v1454_v14  ;;  %v1527_v27 = vperm.slane %v1454_v14, %v4974_v1 }
0x1072   :  { %v1470_v13 = vsel %vm519_vm2, %v1462_v16, 0.0  ;;  %1532 = vst.msk [vmem:[#allocation36 + $0xa] sm:$0x1] %vm858_vm14, %v1528_v40  ;;  %v1463_v37 = vsel %vm519_vm2, %v1461_v41, 0.0 }
0x1073   :  { %v1471_v42 = vrot.slane %v1470_v13, 4  ;;  %v1464_v48 = vrot.slane %v1463_v37, 4  ;;  %1531 = vst.msk [vmem:[#allocation36 + $0x2] sm:$0x1] %vm858_vm14, %v1527_v27 }
0x1075   :  { %v1472_v51 = vadd.f32 %v1471_v42, %v1470_v13  ;;  %v1465_v39 = vadd.f32 %v1464_v48, %v1463_v37 }
0x1077   :  { %v1473_v12 = vrot.slane %v1472_v51, 2  ;;  %v1466_v49 = vrot.slane %v1465_v39, 2  ;;  %v1506_v55 = vpop.permute.xlu0 %1505  ;;  %v1494_v38 = vpop.permute.xlu1 %1493 }
0x1078   :  { %v1513_v56 = vmul.f32 %v1506_v55, %v5130_v53  ;;  %v1499_v59 = vmul.f32 %v1494_v38, %v1482_v34  ;;  %v1520_v53 = vmul.f32 %v1511_v10, %v5115_v33  ;;  %v1519_v18 = vmul.f32 %v1506_v55, %v5128_v50 }
0x1079   :  { %v1474_v61 = vadd.f32 %v1473_v12, %v1472_v51  ;;  %v1467_v63 = vadd.f32 %v1466_v49, %v1465_v39 }
0x107a   :  { %v5206_v4 = vadd.f32 %v1513_v56, %v1499_v59 }
0x107b   :  { %v1475_v5 = vrot.slane %v1474_v61, 1  ;;  %v1468_v52 = vrot.slane %v1467_v63, 1 }
0x107c   :  { %1523 = vst.msk [vmem:[#allocation4 + $0x2] sm:$0x1] %vm849_vm15, %v5206_v4  ;;  %v1581_v6 = vpack.c.bf16 %v5206_v4, %v5206_v4 }
0x107d   :  { %v1476_v60 = vadd.f32 %v1475_v5, %v1474_v61  ;;  %v1469_v7 = vadd.f32 %v1468_v52, %v1467_v63 }
0x107e   :  { %v1593_v9 = vunpack.c.l.b16 %v1581_v6 }
0x107f   :  { %v1518_v11 = vmul.f32 %v1487_v15, %v1476_v60  ;;  %v1517_v17 = vmul.f32 %v1482_v34, %v1469_v7 }
0x1080   :  { %v1596_v19 = vsel %vm724_vm12, %v1595_v8, %v1593_v9 }
0x1081   :  { %v5215_v20 = vadd.f32 %v1520_v53, %v1518_v11  ;;  %v5217_v21 = vadd.f32 %v1519_v18, %v1517_v17  ;;  %v1597_v22 = vpack.c.b16 %v1596_v19, %v1596_v19  ;;  %v1705_v53 = vrot.slane %v5206_v4, 5 }
0x1083   :  { %1526 = vst.msk [vmem:[#allocation5 + $0xa] sm:$0x1] %vm849_vm15, %v5215_v20  ;;  %v1534_v25 = vpack.c.bf16 %v5215_v20, %v5215_v20  ;;  %v1533_v33 = vpack.c.bf16 %v5217_v21, %v5217_v21  ;;  %3757 = vmatmul.msk.bf16.vlgmr.msra.gmra.mxu2 %vm519_vm2, %v1597_v22 }
0x1084   :  { %1525 = vst.msk [vmem:[#allocation5 + $0x2] sm:$0x1] %vm849_vm15, %v5217_v21 }
0x1085   :  { %v1542_v50 = vunpack.c.l.b16 %v1534_v25  ;;  %v1541_v10 = vunpack.c.l.b16 %v1533_v33 }
0x1087   :  { %v1543_v15 = vrot.slane %v1542_v50, 7 }
0x1089   :  { %v1544_v23 = vsel %vm724_vm12, %v1543_v15, %v1541_v10 }
0x108a   :  { %v1545_v29 = vpack.c.b16 %v1544_v23, %v1544_v23 }
0x108c   :  { %3748 = vmatmul.msk.bf16.vlgmr.msra.gmra.mxu1 %vm519_vm2, %v1545_v29 }
0x1106   :  { %v1622_v31 = vpop.f32.mrf.mxu2 }
0x1107   :  { %v1623_v35 = vadd.f32 %v3963_v30, %v1622_v31 }
0x1109   :  { %v1570_v32 = vpop.f32.mrf.mxu1  ;;  %v1628_v34 = vrot.slane %v1623_v35, 6  ;;  %v1627_v24 = vrot.slane %v1623_v35, 5 }
0x110a   :  { %v1576_v40 = vrot.slane %v1570_v32, 6  ;;  %v1575_v42 = vrot.slane %v1570_v32, 5 }
0x110b   :  { %1673 = vrot.lane.b32.xlu2 %v1628_v34, %s5776_s16  ;;  %1671 = vrot.lane.b32.xlu1 %v1627_v24, %s5776_s16 }
0x110c   :  { %v1580_v41 = vadd.f32 %v1576_v40, %v4934_v44  ;;  %v1579_v51 = vadd.f32 %v1575_v42, %v4931_v36 }
0x110e   :  { %v1624_v14 = vpop.f32.mrf.mxu2  ;;  %v1632_v27 = vadd.f32 %v1628_v34, %v1580_v41  ;;  %v1631_v39 = vadd.f32 %v1627_v24, %v1579_v51  ;;  %v1706_v34 = vrot.slane %v5183_v28, 5 }
0x1110   :  { %v3759_v13 = vmul.f32 -1.442695, %v1632_v27  ;;  %v3758_v12 = vmul.f32 -1.442695, %v1631_v39 }
0x1111   :  { %v1572_v16 = vpop.f32.mrf.mxu1 }
0x1112   :  { %4027 = vpow2.f32 %v3759_v13 }
0x1118   :  { %v4028_v37 = vpop.eup %4027 }
0x1119   :  { %v1640_v48 = vadd.f32 1.0, %v4028_v37 }
0x111b   :  { %4029 = vrcp.f32 %v1640_v48  ;;  %v1667_v63 = vand.u32 2147483648, %v1640_v48  ;;  %vm1661_vm11 = vweird.f32 %v1640_v48  ;;  %v1665_v0 = vand.u32 2147483647, %v1640_v48 }
0x111c   :  { %4031 = vpow2.f32 %v3758_v12 }
0x111d   :  { %v1668_v52 = vor.u32 1.1754944e-38, %v1667_v63  ;;  %vm1666_vm4 = vcmp.eq.f32.partialorder %v1665_v0, 8.507059e+37 }
0x1121   :  { %v4030_v54 = vpop.eup %4029 }
0x1122   :  { %v1657_v49 = vmul.f32 %v4030_v54, %v1640_v48  ;;  %v4032_v38 = vpop.eup %4031  ;;  %vm1662_vm10 = vweird.f32 %v4030_v54 }
0x1123   :  { %v1639_v59 = vadd.f32 1.0, %v4032_v38  ;;  %vm1663_vm3 = vmor %vm1661_vm11, %vm1662_vm10 }
0x1124   :  { %v1658_v55 = vsub.f32 1.0, %v1657_v49 }
0x1125   :  { %4033 = vrcp.f32 %v1639_v59  ;;  %v1652_v19 = vand.u32 2147483648, %v1639_v59  ;;  %vm1646_vm6 = vweird.f32 %v1639_v59  ;;  %v1650_v22 = vand.u32 2147483647, %v1639_v59 }
0x1126   :  { %v1659_v56 = vmul.f32 %v4030_v54, %v1658_v55 }
0x1127   :  { %v1653_v33 = vor.u32 1.1754944e-38, %v1652_v19  ;;  %vm1651_vm8 = vcmp.eq.f32.partialorder %v1650_v22, 8.507059e+37 }
0x1128   :  { %v1660_v61 = vadd.f32 %v4030_v54, %v1659_v56 }
0x112a   :  { %v1664_v5 = vsel %vm1663_vm3, %v4030_v54, %v1660_v61 }
0x112b   :  { %v1669_v60 = vsel %vm1666_vm4, %v1668_v52, %v1664_v5  ;;  %v4034_v8 = vpop.eup %4033 }
0x112c   :  { %v1642_v9 = vmul.f32 %v4034_v8, %v1639_v59  ;;  %vm1647_vm5 = vweird.f32 %v4034_v8  ;;  %v1692_v42 = vsub.f32 1.0, %v1669_v60 }
0x112d   :  { %vm1648_vm7 = vmor %vm1646_vm6, %vm1647_vm5 }
0x112e   :  { %v1643_v11 = vsub.f32 1.0, %v1642_v9 }
0x1130   :  { %v1644_v17 = vmul.f32 %v4034_v8, %v1643_v11 }
0x1132   :  { %v1645_v18 = vadd.f32 %v4034_v8, %v1644_v17 }
0x1134   :  { %v1649_v25 = vsel %vm1648_vm7, %v4034_v8, %v1645_v18 }
0x1135   :  { %v1654_v10 = vsel %vm1651_vm8, %v1653_v33, %v1649_v25 }
0x1136   :  { %v1691_v14 = vsub.f32 1.0, %v1654_v10 }
0x1165   :  { %v1674_v6 = vpop.permute.xlu2 %1673 }
0x1166   :  { %v1678_v7 = vmul.f32 %v1674_v6, %v1669_v60 }
0x1168   :  { %1683 = vrot.lane.b32.xlu1 %v1678_v7, %s5776_s16 }
0x1170   :  { %1707 = vrot.lane.b32.xlu1 %v1705_v53, %s4663_s9 }
0x117d   :  { %v1672_v50 = vpop.permute.xlu1 %1671 }
0x117e   :  { %v1677_v15 = vmul.f32 %v1672_v50, %v1654_v10 }
0x1180   :  { %1681 = vrot.lane.b32.xlu0 %v1677_v15, %s5776_s16 }
0x11da   :  { %v1684_v23 = vpop.permute.xlu1 %1683 }
0x11db   :  { %v1688_v29 = vadd.f32 %v1684_v23, %v1580_v41 }
0x11dd   :  { %4035 = vtanh.f32 %v1688_v29 }
0x11e2   :  { %v1708_v24 = vpop.permute.xlu1 %1707 }
0x11e3   :  { %v4036_v30 = vpop.eup %4035  ;;  %v1713_v40 = vmul.f32 %v1708_v24, %v1654_v10 }
0x11e4   :  { %1697 = vrot.lane.b32.xlu0 %v4036_v30, %s4664_s20 }
0x11f2   :  { %v1682_v31 = vpop.permute.xlu0 %1681 }
0x11f3   :  { %v1687_v35 = vadd.f32 %v1682_v31, %v1579_v51 }
0x11f5   :  { %4037 = vtanh.f32 %v1687_v35 }
0x11fb   :  { %v4038_v32 = vpop.eup %4037 }
0x11fc   :  { %1695 = vrot.lane.b32.xlu2 %v4038_v32, %s4664_s20 }
0x1204   :  { %1709 = vrot.lane.b32.xlu2 %v1706_v34, %s4663_s9  ;;  %v1813_v34 = vld [vmem:[%s5782_s24 + $0xb] sm:$0x1] }
0x1256   :  { %v1696_v16 = vpop.permute.xlu2 %1695  ;;  %v1698_v37 = vpop.permute.xlu0 %1697 }
0x1257   :  { %v1701_v27 = vmul.f32 %v1696_v16, %v1691_v14  ;;  %v1702_v39 = vmul.f32 %v1698_v37, %v1692_v42  ;;  %v1837_v37 = vsub.f32 1.0, %v1813_v34  ;;  %v1812_v42 = vld [vmem:[%s5782_s24 + $0x3] sm:$0x1] }
0x1259   :  { %v5242_v41 = vadd.f32 %v1713_v40, %v1701_v27 }
0x125b   :  { %v1717_v13 = vperm.slane %v5242_v41, 3 }
0x125d   :  { %v1719_v48 = vmul.f32 %v4957_v46, %v1717_v13 }
0x125e   :  { %v1710_v51 = vpop.permute.xlu2 %1709 }
0x125f   :  { %v1714_v54 = vmul.f32 %v1710_v51, %v1669_v60  ;;  %1723 = vrot.lane.b32.xlu0 %v1719_v48, %s4664_s20  ;;  %v1836_v48 = vsub.f32 1.0, %v1812_v42  ;;  %v1826_v51 = vrot.slane %v5242_v41, 3  ;;  %v3889_v41 = vld [vmem:[%s5781_s4 + $0x8] sm:$0xff] }
0x1260   :  { %1902 = vmatpush.bf16.msra.mxu3 %v3889_v41 }
0x1261   :  { %v1716_v12 = vadd.f32 %v1714_v54, %v1702_v39 }
0x1263   :  { %v1718_v49 = vperm.slane %v1716_v12, 3  ;;  %v1827_v15 = vrot.slane %v1716_v12, 3 }
0x1265   :  { %v1720_v55 = vmul.f32 %v4955_v45, %v1718_v49 }
0x1267   :  { %1725 = vrot.lane.b32.xlu1 %v1720_v55, %s4664_s20 }
0x12d1   :  { %v1724_v38 = vpop.permute.xlu0 %1723 }
0x12d2   :  { %v1729_v56 = vsel %vm519_vm2, %v1724_v38, 0.0 }
0x12d3   :  { %1730 = vadd.xlane.f32.xlu2 %v1729_v56 }
0x12d9   :  { %v1726_v59 = vpop.permute.xlu1 %1725 }
0x12da   :  { %v1732_v61 = vsel %vm519_vm2, %v1726_v59, 0.0 }
0x12db   :  { %1733 = vadd.xlane.f32.xlu0 %v1732_v61  ;;  %v3891_v61 = vld [vmem:[#allocation31 + $0x8] sm:$0xff] }
0x12dc   :  { %1954 = vmatpush.bf16.msrb.mxu0 %v3891_v61 }
0x1346   :  { %v1731_v63 = vpop.xlane.xlu2 %1730 }
0x1347   :  { %v1735_v0 = vadd.f32 %v1731_v63, %v4968_v58 }
0x1349   :  { %1740 = vperm.xlu1 %3951, %v1735_v0  }
0x134e   :  { %v1734_v5 = vpop.xlane.xlu0 %1733 }
0x134f   :  { %v1736_v52 = vadd.f32 %v1734_v5, %v4971_v62  ;;  %v3888_v5 = vld [vmem:[%s5781_s4] sm:$0xff] }
0x1350   :  { %1903 = vmatpush.bf16.msra.mxu3 %v3888_v5 }
0x1351   :  { %1743 = vperm.xlu1 %3951, %v1736_v52  }
0x13bb   :  { %v1741_v6 = vpop.permute.xlu1 %1740 }
0x13bc   :  { %v1745_v7 = vperm.slane %v1741_v6, %v4974_v1 }
0x13c3   :  { %v1744_v60 = vpop.permute.xlu1 %1743 }
0x13c4   :  { %v1746_v8 = vperm.slane %v1744_v60, %v4974_v1 }
0x13c6   :  { %v1747_v9 = vsel %vm724_vm12, %v1746_v8, %v1745_v7 }
0x13c7   :  { %v1749_v53 = vsel %vm727_vm13, %v1747_v9, -inf }
0x13c8   :  { %1750 = vmax.xlane.f32.xlu1 %v1749_v53 }
0x143b   :  { %v1751_v11 = vpop.xlane.xlu1 %1750 }
0x143c   :  { %v1753_v17 = vperm.slane %v1751_v11, 0  ;;  %v1754_v18 = vperm.slane %v1751_v11, 1 }
0x143e   :  { %v1757_v19 = vsub.f32 %v1735_v0, %v1753_v17  ;;  %v1758_v22 = vsub.f32 %v1736_v52, %v1754_v18  ;;  %v3890_v0 = vld [vmem:[#allocation31] sm:$0xff] }
0x143f   :  { %1955 = vmatpush.bf16.msrb.mxu0 %v3890_v0 }
0x1440   :  { %v1759_v25 = vmul.f32 1.442695, %v1757_v19  ;;  %v1761_v33 = vmul.f32 1.442695, %v1758_v22 }
0x1442   :  { %4039 = vpow2.f32 %v1759_v25 }
0x1443   :  { %4041 = vpow2.f32 %v1761_v33 }
0x1448   :  { %v4040_v50 = vpop.eup %4039 }
0x1449   :  { %v4042_v10 = vpop.eup %4041  ;;  %1766 = vperm.xlu2 %3952, %v4040_v50  }
0x144a   :  { %1769 = vperm.xlu0 %3953, %v4042_v10  }
0x1452   :  { %1830 = vrot.lane.b32.xlu0 %v1827_v15, %s4664_s20 }
0x14a3   :  { %v1767_v23 = vpop.permute.xlu2 %1766 }
0x14a4   :  { %v1771_v30 = vperm.slane %v1767_v23, %v4974_v1 }
0x14bc   :  { %v1770_v29 = vpop.permute.xlu0 %1769 }
0x14bd   :  { %v1772_v31 = vperm.slane %v1770_v29, %v4974_v1 }
0x14bf   :  { %v1773_v35 = vsel %vm724_vm12, %v1772_v31, %v1771_v30 }
0x14c0   :  { %v1775_v32 = vsel %vm727_vm13, %v1773_v35, 0.0 }
0x14c1   :  { %1776 = vadd.xlane.f32.xlu1 %v1775_v32 }
0x14c4   :  { %v1831_v49 = vpop.permute.xlu0 %1830 }
0x14da   :  { %1821 = vperm.xlu1 %3951, %v1813_v34  }
0x1534   :  { %v1777_v24 = vpop.xlane.xlu1 %1776 }
0x1535   :  { %4043 = vrcp.f32 %v1777_v24 }
0x153b   :  { %v4044_v14 = vpop.eup %4043 }
0x153c   :  { %v1781_v16 = vperm.slane %v4044_v14, 1  ;;  %v1780_v40 = vperm.slane %v4044_v14, 0 }
0x153e   :  { %v1785_v27 = vmul.f32 %v4042_v10, %v1781_v16  ;;  %v1784_v13 = vmul.f32 %v4040_v50, %v1780_v40 }
0x1540   :  { %1793 = vperm.xlu0 %3953, %v1785_v27   ;;  %1788 = vperm.xlu2 %3952, %v1784_v13  }
0x1548   :  { %1816 = vperm.xlu0 %3953, %v1812_v42   ;;  %1845 = vperm.xlu2 %3952, %v1837_v37  }
0x154c   :  { %v1822_v12 = vpop.permute.xlu1 %1821 }
0x154d   :  { %v1835_v38 = vmul.f32 %v1831_v49, %v1822_v12 }
0x1550   :  { %1840 = vperm.xlu0 %3953, %v1836_v48   ;;  %1828 = vrot.lane.b32.xlu2 %v1826_v51, %s4664_s20 }
0x159a   :  { %v1789_v39 = vpop.permute.xlu2 %1788 }
0x159b   :  { %v1862_v54 = vperm.slane %v1789_v39, %v4974_v1  ;;  %v1796_v63 = vmul.f32 %v5022_v2, %v1789_v39 }
0x159d   :  { %1866 = vst.msk [vmem:[#allocation36 + $0x3] sm:$0x1] %vm858_vm14, %v1862_v54 }
0x15a2   :  { %v1846_v55 = vpop.permute.xlu2 %1845 }
0x15a3   :  { %v1849_v56 = vmul.f32 %v1846_v55, %v5183_v28  ;;  %v1798_v28 = vsel %vm519_vm2, %v1796_v63, 0.0  ;;  %v1855_v29 = vmul.f32 %v1846_v55, %v5215_v20 }
0x15a4   :  { %v1799_v52 = vrot.slane %v1798_v28, 4 }
0x15a5   :  { %v5273_v59 = vadd.f32 %v1849_v56, %v1835_v38  ;;  %v3964_v38 = vld [vmem:[#allocation32] ss:$0 sm:$0xff] }
0x15a6   :  { %v1800_v6 = vadd.f32 %v1799_v52, %v1798_v28 }
0x15a7   :  { %1859 = vst.msk [vmem:[#allocation4 + $0xb] sm:$0x1] %vm849_vm15, %v5273_v59  ;;  %v1917_v15 = vpack.c.bf16 %v5273_v59, %v5273_v59 }
0x15a8   :  { %v1801_v53 = vrot.slane %v1800_v6, 2 }
0x15a9   :  { %v1929_v40 = vunpack.c.l.b16 %v1917_v15 }
0x15aa   :  { %v1802_v18 = vadd.f32 %v1801_v53, %v1800_v6  ;;  %v1829_v30 = vpop.permute.xlu2 %1828 }
0x15ab   :  { %v1930_v42 = vrot.slane %v1929_v40, 7 }
0x15ac   :  { %v1803_v33 = vrot.slane %v1802_v18, 1 }
0x15ae   :  { %v1804_v23 = vadd.f32 %v1803_v33, %v1802_v18 }
0x15b2   :  { %v1794_v60 = vpop.permute.xlu0 %1793 }
0x15b3   :  { %v1797_v7 = vmul.f32 %v5024_v3, %v1794_v60  ;;  %v1863_v8 = vperm.slane %v1794_v60, %v4974_v1 }
0x15b5   :  { %v1805_v9 = vsel %vm519_vm2, %v1797_v7, 0.0  ;;  %1867 = vst.msk [vmem:[#allocation36 + $0xb] sm:$0x1] %vm858_vm14, %v1863_v8 }
0x15b6   :  { %v1806_v11 = vrot.slane %v1805_v9, 4 }
0x15b8   :  { %v1807_v17 = vadd.f32 %v1806_v11, %v1805_v9 }
0x15ba   :  { %v1808_v19 = vrot.slane %v1807_v17, 2  ;;  %v1817_v22 = vpop.permute.xlu0 %1816 }
0x15bb   :  { %v1834_v32 = vmul.f32 %v1829_v30, %v1817_v22  ;;  %v1852_v34 = vmul.f32 %v1817_v22, %v1804_v23 }
0x15bc   :  { %v1809_v25 = vadd.f32 %v1808_v19, %v1807_v17 }
0x15be   :  { %v1810_v50 = vrot.slane %v1809_v25, 1 }
0x15c0   :  { %v1811_v10 = vadd.f32 %v1810_v50, %v1809_v25 }
0x15c2   :  { %v1853_v31 = vmul.f32 %v1822_v12, %v1811_v10  ;;  %v1841_v35 = vpop.permute.xlu0 %1840 }
0x15c3   :  { %v1848_v24 = vmul.f32 %v1841_v35, %v5206_v4  ;;  %v1854_v14 = vmul.f32 %v1841_v35, %v5217_v21 }
0x15c4   :  { %v5294_v16 = vadd.f32 %v1855_v29, %v1853_v31 }
0x15c5   :  { %v5296_v27 = vadd.f32 %v1848_v24, %v1834_v32  ;;  %v5298_v13 = vadd.f32 %v1854_v14, %v1852_v34 }
0x15c6   :  { %1861 = vst.msk [vmem:[#allocation5 + $0xb] sm:$0x1] %vm849_vm15, %v5294_v16  ;;  %v1869_v20 = vpack.c.bf16 %v5294_v16, %v5294_v16 }
0x15c7   :  { %1858 = vst.msk [vmem:[#allocation4 + $0x3] sm:$0x1] %vm849_vm15, %v5296_v27  ;;  %v1868_v4 = vpack.c.bf16 %v5298_v13, %v5298_v13  ;;  %v1916_v21 = vpack.c.bf16 %v5296_v27, %v5296_v27 }
0x15c8   :  { %1860 = vst.msk [vmem:[#allocation5 + $0x3] sm:$0x1] %vm849_vm15, %v5298_v13  ;;  %v1877_v37 = vunpack.c.l.b16 %v1869_v20 }
0x15c9   :  { %v1876_v48 = vunpack.c.l.b16 %v1868_v4  ;;  %v1928_v51 = vunpack.c.l.b16 %v1916_v21 }
0x15ca   :  { %v1878_v39 = vrot.slane %v1877_v37, 7 }
0x15cb   :  { %v1931_v54 = vsel %vm724_vm12, %v1930_v42, %v1928_v51 }
0x15cc   :  { %v1932_v12 = vpack.c.b16 %v1931_v54, %v1931_v54  ;;  %v1879_v49 = vsel %vm724_vm12, %v1878_v39, %v1876_v48 }
0x15cd   :  { %v1880_v55 = vpack.c.b16 %v1879_v49, %v1879_v49 }
0x15ce   :  { %3777 = vmatmul.msk.bf16.vlgmr.msrb.gmra.mxu0 %vm519_vm2, %v1932_v12  ;;  %v2040_v12 = vrot.slane %v5296_v27, 4 }
0x15cf   :  { %3768 = vmatmul.msk.bf16.vlgmr.msra.gmra.mxu3 %vm519_vm2, %v1880_v55 }
0x164b   :  { %v1957_v56 = vpop.f32.mrf.mxu0 }
0x164c   :  { %v1958_v61 = vadd.f32 %v3964_v38, %v1957_v56 }
0x164e   :  { %v1963_v63 = vrot.slane %v1958_v61, 5  ;;  %v1962_v41 = vrot.slane %v1958_v61, 4 }
0x1650   :  { %2008 = vrot.lane.b32.xlu0 %v1963_v63, %s5776_s16  ;;  %2006 = vrot.lane.b32.xlu2 %v1962_v41, %s5776_s16 }
0x1652   :  { %v1905_v0 = vpop.f32.mrf.mxu3 }
0x1653   :  { %v1959_v5 = vpop.f32.mrf.mxu0  ;;  %v1910_v52 = vrot.slane %v1905_v0, 4  ;;  %v1911_v9 = vrot.slane %v1905_v0, 5 }
0x1655   :  { %v1914_v6 = vadd.f32 %v1910_v52, %v4931_v36  ;;  %v1915_v11 = vadd.f32 %v1911_v9, %v4934_v44 }
0x1657   :  { %v1966_v60 = vadd.f32 %v1962_v41, %v1914_v6  ;;  %v1967_v17 = vadd.f32 %v1963_v63, %v1915_v11  ;;  %v2041_v41 = vrot.slane %v5273_v59, 4 }
0x1659   :  { %v3778_v7 = vmul.f32 -1.442695, %v1966_v60  ;;  %v3779_v19 = vmul.f32 -1.442695, %v1967_v17 }
0x165a   :  { %v1907_v28 = vpop.f32.mrf.mxu3 }
0x165b   :  { %4045 = vpow2.f32 %v3778_v7 }
0x1661   :  { %v4046_v8 = vpop.eup %4045 }
0x1662   :  { %v1974_v53 = vadd.f32 1.0, %v4046_v8 }
0x1664   :  { %4047 = vrcp.f32 %v1974_v53  ;;  %v1987_v23 = vand.u32 2147483648, %v1974_v53  ;;  %vm1981_vm10 = vweird.f32 %v1974_v53  ;;  %v1985_v29 = vand.u32 2147483647, %v1974_v53 }
0x1665   :  { %4049 = vpow2.f32 %v3779_v19 }
0x1666   :  { %v1988_v31 = vor.u32 1.1754944e-38, %v1987_v23  ;;  %vm1986_vm3 = vcmp.eq.f32.partialorder %v1985_v29, 8.507059e+37 }
0x166a   :  { %v4048_v18 = vpop.eup %4047 }
0x166b   :  { %v1977_v22 = vmul.f32 %v4048_v18, %v1974_v53  ;;  %v4050_v33 = vpop.eup %4049  ;;  %vm1982_vm9 = vweird.f32 %v4048_v18 }
0x166c   :  { %v1975_v10 = vadd.f32 1.0, %v4050_v33  ;;  %vm1983_vm11 = vmor %vm1981_vm10, %vm1982_vm9 }
0x166d   :  { %v1978_v25 = vsub.f32 1.0, %v1977_v22 }
0x166e   :  { %4051 = vrcp.f32 %v1975_v10  ;;  %v2002_v21 = vand.u32 2147483648, %v1975_v10  ;;  %vm1996_vm5 = vweird.f32 %v1975_v10  ;;  %v2000_v37 = vand.u32 2147483647, %v1975_v10 }
0x166f   :  { %v1979_v50 = vmul.f32 %v4048_v18, %v1978_v25 }
0x1670   :  { %v2003_v48 = vor.u32 1.1754944e-38, %v2002_v21  ;;  %vm2001_vm7 = vcmp.eq.f32.partialorder %v2000_v37, 8.507059e+37 }
0x1671   :  { %v1980_v15 = vadd.f32 %v4048_v18, %v1979_v50 }
0x1673   :  { %v1984_v30 = vsel %vm1983_vm11, %v4048_v18, %v1980_v15 }
0x1674   :  { %v1989_v32 = vsel %vm1986_vm3, %v1988_v31, %v1984_v30  ;;  %v4052_v24 = vpop.eup %4051 }
0x1675   :  { %v1992_v14 = vmul.f32 %v4052_v24, %v1975_v10  ;;  %vm1997_vm4 = vweird.f32 %v4052_v24  ;;  %v2026_v5 = vsub.f32 1.0, %v1989_v32 }
0x1676   :  { %vm1998_vm6 = vmor %vm1996_vm5, %vm1997_vm4 }
0x1677   :  { %v1993_v40 = vsub.f32 1.0, %v1992_v14 }
0x1679   :  { %v1994_v20 = vmul.f32 %v4052_v24, %v1993_v40 }
0x167b   :  { %v1995_v4 = vadd.f32 %v4052_v24, %v1994_v20 }
0x167d   :  { %v1999_v42 = vsel %vm1998_vm6, %v4052_v24, %v1995_v4 }
0x167e   :  { %v2004_v39 = vsel %vm2001_vm7, %v2003_v48, %v1999_v42 }
0x167f   :  { %v2027_v9 = vsub.f32 1.0, %v2004_v39 }
0x16aa   :  { %v2007_v35 = vpop.permute.xlu2 %2006 }
0x16ab   :  { %v2012_v34 = vmul.f32 %v2007_v35, %v1989_v32 }
0x16ad   :  { %2016 = vrot.lane.b32.xlu1 %v2012_v34, %s5776_s16 }
0x16c2   :  { %v2009_v51 = vpop.permute.xlu0 %2008 }
0x16c3   :  { %v2013_v54 = vmul.f32 %v2009_v51, %v2004_v39 }
0x16c5   :  { %2018 = vrot.lane.b32.xlu2 %v2013_v54, %s5776_s16 }
0x16cd   :  { %2042 = vrot.lane.b32.xlu2 %v2040_v12, %s4663_s9  ;;  %v2148_v12 = vld [vmem:[%s5782_s24 + $0xc] sm:$0x1] }
0x171f   :  { %v2019_v49 = vpop.permute.xlu2 %2018  ;;  %v2017_v55 = vpop.permute.xlu1 %2016 }
0x1720   :  { %v2023_v38 = vadd.f32 %v2019_v49, %v1915_v11  ;;  %v2022_v56 = vadd.f32 %v2017_v55, %v1914_v6  ;;  %v2172_v49 = vsub.f32 1.0, %v2148_v12  ;;  %v2147_v55 = vld [vmem:[%s5782_s24 + $0x4] sm:$0x1] }
0x1722   :  { %4053 = vtanh.f32 %v2023_v38 }
0x1723   :  { %4055 = vtanh.f32 %v2022_v56 }
0x1727   :  { %v2043_v0 = vpop.permute.xlu2 %2042 }
0x1728   :  { %v4054_v61 = vpop.eup %4053  ;;  %v2048_v52 = vmul.f32 %v2043_v0, %v1989_v32 }
0x1729   :  { %v4056_v63 = vpop.eup %4055  ;;  %2032 = vrot.lane.b32.xlu1 %v4054_v61, %s4664_s20 }
0x172a   :  { %2030 = vrot.lane.b32.xlu0 %v4056_v63, %s4664_s20 }
0x1732   :  { %2044 = vrot.lane.b32.xlu0 %v2041_v41, %s4663_s9 }
0x179b   :  { %v2033_v8 = vpop.permute.xlu1 %2032 }
0x179c   :  { %v2031_v28 = vpop.permute.xlu0 %2030  ;;  %v2037_v17 = vmul.f32 %v2033_v8, %v2027_v9 }
0x179d   :  { %v2036_v60 = vmul.f32 %v2031_v28, %v2026_v5 }
0x179f   :  { %v5328_v7 = vadd.f32 %v2048_v52, %v2036_v60 }
0x17a1   :  { %v2052_v6 = vperm.slane %v5328_v7, 4 }
0x17a3   :  { %v2054_v53 = vmul.f32 %v4957_v46, %v2052_v6 }
0x17a4   :  { %v2045_v11 = vpop.permute.xlu0 %2044 }
0x17a5   :  { %v2049_v18 = vmul.f32 %v2045_v11, %v2004_v39  ;;  %2058 = vrot.lane.b32.xlu1 %v2054_v53, %s4664_s20 }
0x17a7   :  { %v2051_v19 = vadd.f32 %v2049_v18, %v2037_v17 }
0x17a9   :  { %v2053_v22 = vperm.slane %v2051_v19, 4  ;;  %v2162_v5 = vrot.slane %v2051_v19, 4  ;;  %v2171_v19 = vsub.f32 1.0, %v2147_v55 }
0x17ab   :  { %v2055_v25 = vmul.f32 %v4955_v45, %v2053_v22 }
0x17ad   :  { %2060 = vrot.lane.b32.xlu2 %v2055_v25, %s4664_s20 }
0x1807   :  { %v2061_v33 = vpop.permute.xlu2 %2060 }
0x1808   :  { %v2067_v50 = vsel %vm519_vm2, %v2061_v33, 0.0  ;;  %v2161_v33 = vrot.slane %v5328_v7, 4 }
0x1809   :  { %2068 = vadd.xlane.f32.xlu1 %v2067_v50  ;;  %v3895_v50 = vld [vmem:[#allocation31 + $0x8] sm:$0xff] }
0x180a   :  { %2289 = vmatpush.bf16.msrb.mxu2 %v3895_v50  ;;  %v3965_v50 = vld [vmem:[#allocation32] ss:$0 sm:$0xff] }
0x1817   :  { %v2059_v10 = vpop.permute.xlu1 %2058 }
0x1818   :  { %v2064_v15 = vsel %vm519_vm2, %v2059_v10, 0.0  ;;  %v3894_v10 = vld [vmem:[#allocation31] sm:$0xff] }
0x1819   :  { %2065 = vadd.xlane.f32.xlu0 %v2064_v15  ;;  %2290 = vmatpush.bf16.msrb.mxu2 %v3894_v10  ;;  %v3892_v15 = vld [vmem:[%s5781_s4] sm:$0xff] }
0x187c   :  { %v2069_v30 = vpop.xlane.xlu1 %2068 }
0x187d   :  { %v2071_v31 = vadd.f32 %v2069_v30, %v4971_v62 }
0x188c   :  { %v2066_v23 = vpop.xlane.xlu0 %2065 }
0x188d   :  { %v2070_v29 = vadd.f32 %v2066_v23, %v4968_v58 }
0x188f   :  { %2075 = vperm.xlu2 %3952, %v2070_v29  }
0x1897   :  { %2078 = vperm.xlu2 %3952, %v2071_v31  }
0x18e9   :  { %v2076_v35 = vpop.permute.xlu2 %2075 }
0x18ea   :  { %v2080_v34 = vperm.slane %v2076_v35, %v4974_v1 }
0x18f1   :  { %v2079_v32 = vpop.permute.xlu2 %2078 }
0x18f2   :  { %v2081_v24 = vperm.slane %v2079_v32, %v4974_v1 }
0x18f4   :  { %v2082_v14 = vsel %vm724_vm12, %v2081_v24, %v2080_v34 }
0x18f5   :  { %v2084_v40 = vsel %vm727_vm13, %v2082_v14, -inf }
0x18f6   :  { %2085 = vmax.xlane.f32.xlu2 %v2084_v40 }
0x1969   :  { %v2086_v20 = vpop.xlane.xlu2 %2085 }
0x196a   :  { %v2088_v4 = vperm.slane %v2086_v20, 0  ;;  %v2089_v21 = vperm.slane %v2086_v20, 1 }
0x196c   :  { %v2092_v37 = vsub.f32 %v2070_v29, %v2088_v4  ;;  %v2093_v42 = vsub.f32 %v2071_v31, %v2089_v21 }
0x196e   :  { %v2094_v48 = vmul.f32 1.442695, %v2092_v37  ;;  %v2096_v51 = vmul.f32 1.442695, %v2093_v42 }
0x1970   :  { %4057 = vpow2.f32 %v2094_v48 }
0x1971   :  { %4059 = vpow2.f32 %v2096_v51 }
0x1976   :  { %v4058_v39 = vpop.eup %4057 }
0x1977   :  { %v4060_v54 = vpop.eup %4059  ;;  %2101 = vperm.xlu0 %3953, %v4058_v39  }
0x1978   :  { %2104 = vperm.xlu1 %3951, %v4060_v54  }
0x197f   :  { %2180 = vperm.xlu0 %3953, %v2172_v49  }
0x1980   :  { %2156 = vperm.xlu1 %3951, %v2148_v12  }
0x1987   :  { %2151 = vperm.xlu0 %3953, %v2147_v55  }
0x19e9   :  { %v2102_v38 = vpop.permute.xlu0 %2101 }
0x19ea   :  { %v2105_v56 = vpop.permute.xlu1 %2104  ;;  %v2106_v61 = vperm.slane %v2102_v38, %v4974_v1 }
0x19eb   :  { %v2107_v63 = vperm.slane %v2105_v56, %v4974_v1 }
0x19ed   :  { %v2108_v41 = vsel %vm724_vm12, %v2107_v63, %v2106_v61 }
0x19ee   :  { %v2110_v0 = vsel %vm727_vm13, %v2108_v41, 0.0 }
0x19ef   :  { %2111 = vadd.xlane.f32.xlu2 %v2110_v0 }
0x19f1   :  { %v2181_v52 = vpop.permute.xlu0 %2180 }
0x19f2   :  { %v2157_v6 = vpop.permute.xlu1 %2156  ;;  %v2184_v11 = vmul.f32 %v2181_v52, %v5273_v59  ;;  %v3893_v59 = vld [vmem:[%s5781_s4 + $0x8] sm:$0xff] }
0x19f3   :  { %2237 = vmatpush.bf16.msrb.mxu1 %v3893_v59 }
0x19f7   :  { %2238 = vmatpush.bf16.msrb.mxu1 %v3892_v15 }
0x19f9   :  { %v2152_v23 = vpop.permute.xlu0 %2151 }
0x1a07   :  { %2165 = vrot.lane.b32.xlu2 %v2162_v5, %s4664_s20 }
0x1a62   :  { %v2112_v28 = vpop.xlane.xlu2 %2111 }
0x1a63   :  { %4061 = vrcp.f32 %v2112_v28 }
0x1a69   :  { %v4062_v60 = vpop.eup %4061 }
0x1a6a   :  { %v2166_v8 = vpop.permute.xlu2 %2165  ;;  %v2116_v9 = vperm.slane %v4062_v60, 1  ;;  %v2115_v53 = vperm.slane %v4062_v60, 0  ;;  %v2190_v60 = vmul.f32 %v2181_v52, %v5294_v16 }
0x1a6b   :  { %v2170_v17 = vmul.f32 %v2166_v8, %v2157_v6 }
0x1a6c   :  { %v2120_v18 = vmul.f32 %v4060_v54, %v2116_v9  ;;  %v2119_v22 = vmul.f32 %v4058_v39, %v2115_v53 }
0x1a6d   :  { %v5355_v25 = vadd.f32 %v2184_v11, %v2170_v17 }
0x1a6e   :  { %2128 = vperm.xlu0 %3953, %v2120_v18   ;;  %2123 = vperm.xlu1 %3951, %v2119_v22  }
0x1a6f   :  { %2194 = vst.msk [vmem:[#allocation4 + $0xc] sm:$0x1] %vm849_vm15, %v5355_v25  ;;  %v2252_v21 = vpack.c.bf16 %v5355_v25, %v5355_v25 }
0x1a71   :  { %v2264_v55 = vunpack.c.l.b16 %v2252_v21 }
0x1a73   :  { %v2265_v5 = vrot.slane %v2264_v55, 7 }
0x1a76   :  { %2175 = vperm.xlu0 %3953, %v2171_v19   ;;  %2163 = vrot.lane.b32.xlu1 %v2161_v33, %s4664_s20 }
0x1ae0   :  { %v2124_v29 = vpop.permute.xlu1 %2123  ;;  %v2129_v7 = vpop.permute.xlu0 %2128 }
0x1ae1   :  { %v2131_v30 = vmul.f32 %v5022_v2, %v2124_v29  ;;  %v2197_v31 = vperm.slane %v2124_v29, %v4974_v1  ;;  %v2132_v35 = vmul.f32 %v5024_v3, %v2129_v7  ;;  %v2198_v32 = vperm.slane %v2129_v7, %v4974_v1 }
0x1ae3   :  { %v2133_v34 = vsel %vm519_vm2, %v2131_v30, 0.0  ;;  %2201 = vst.msk [vmem:[#allocation36 + $0x4] sm:$0x1] %vm858_vm14, %v2197_v31  ;;  %v2140_v24 = vsel %vm519_vm2, %v2132_v35, 0.0 }
0x1ae4   :  { %v2134_v14 = vrot.slane %v2133_v34, 4  ;;  %v2141_v40 = vrot.slane %v2140_v24, 4  ;;  %2202 = vst.msk [vmem:[#allocation36 + $0xc] sm:$0x1] %vm858_vm14, %v2198_v32 }
0x1ae6   :  { %v2135_v20 = vadd.f32 %v2134_v14, %v2133_v34  ;;  %v2142_v4 = vadd.f32 %v2141_v40, %v2140_v24 }
0x1ae8   :  { %v2136_v37 = vrot.slane %v2135_v20, 2  ;;  %v2143_v42 = vrot.slane %v2142_v4, 2  ;;  %v2164_v48 = vpop.permute.xlu1 %2163  ;;  %v2176_v51 = vpop.permute.xlu0 %2175 }
0x1ae9   :  { %v2169_v39 = vmul.f32 %v2164_v48, %v2152_v23  ;;  %v2183_v54 = vmul.f32 %v2176_v51, %v5296_v27  ;;  %v2189_v9 = vmul.f32 %v2176_v51, %v5298_v13 }
0x1aea   :  { %v2137_v12 = vadd.f32 %v2136_v37, %v2135_v20  ;;  %v2144_v49 = vadd.f32 %v2143_v42, %v2142_v4 }
0x1aeb   :  { %v5378_v38 = vadd.f32 %v2183_v54, %v2169_v39 }
0x1aec   :  { %v2138_v56 = vrot.slane %v2137_v12, 1  ;;  %v2145_v61 = vrot.slane %v2144_v49, 1 }
0x1aed   :  { %2193 = vst.msk [vmem:[#allocation4 + $0x4] sm:$0x1] %vm849_vm15, %v5378_v38  ;;  %v2251_v63 = vpack.c.bf16 %v5378_v38, %v5378_v38 }
0x1aee   :  { %v2146_v41 = vadd.f32 %v2145_v61, %v2144_v49  ;;  %v2139_v0 = vadd.f32 %v2138_v56, %v2137_v12 }
0x1aef   :  { %v2263_v28 = vunpack.c.l.b16 %v2251_v63 }
0x1af0   :  { %v2188_v27 = vmul.f32 %v2157_v6, %v2146_v41  ;;  %v2187_v8 = vmul.f32 %v2152_v23, %v2139_v0 }
0x1af1   :  { %v2266_v53 = vsel %vm724_vm12, %v2265_v5, %v2263_v28 }
0x1af2   :  { %v5387_v11 = vadd.f32 %v2190_v60, %v2188_v27  ;;  %v5389_v17 = vadd.f32 %v2189_v9, %v2187_v8  ;;  %v2267_v18 = vpack.c.b16 %v2266_v53, %v2266_v53  ;;  %v2375_v60 = vrot.slane %v5378_v38, 3 }
0x1af4   :  { %2196 = vst.msk [vmem:[#allocation5 + $0xc] sm:$0x1] %vm849_vm15, %v5387_v11  ;;  %v2204_v22 = vpack.c.bf16 %v5387_v11, %v5387_v11  ;;  %v2203_v16 = vpack.c.bf16 %v5389_v17, %v5389_v17  ;;  %3797 = vmatmul.msk.bf16.vlgmr.msrb.gmra.mxu2 %vm519_vm2, %v2267_v18 }
0x1af5   :  { %2195 = vst.msk [vmem:[#allocation5 + $0x4] sm:$0x1] %vm849_vm15, %v5389_v17 }
0x1af6   :  { %v2212_v13 = vunpack.c.l.b16 %v2204_v22  ;;  %v2211_v52 = vunpack.c.l.b16 %v2203_v16 }
0x1af8   :  { %v2213_v6 = vrot.slane %v2212_v13, 7 }
0x1afa   :  { %v2214_v19 = vsel %vm724_vm12, %v2213_v6, %v2211_v52 }
0x1afb   :  { %v2215_v33 = vpack.c.b16 %v2214_v19, %v2214_v19 }
0x1afd   :  { %3788 = vmatmul.msk.bf16.vlgmr.msrb.gmra.mxu1 %vm519_vm2, %v2215_v33 }
0x1b77   :  { %v2292_v10 = vpop.f32.mrf.mxu2 }
0x1b78   :  { %v2293_v59 = vadd.f32 %v3965_v50, %v2292_v10 }
0x1b7a   :  { %v2240_v15 = vpop.f32.mrf.mxu1  ;;  %v2298_v23 = vrot.slane %v2293_v59, 4  ;;  %v2297_v29 = vrot.slane %v2293_v59, 3 }
0x1b7b   :  { %v2246_v31 = vrot.slane %v2240_v15, 4  ;;  %v2245_v14 = vrot.slane %v2240_v15, 3 }
0x1b7c   :  { %2343 = vrot.lane.b32.xlu2 %v2298_v23, %s5776_s16  ;;  %2341 = vrot.lane.b32.xlu1 %v2297_v29, %s5776_s16 }
0x1b7d   :  { %v2250_v35 = vadd.f32 %v2246_v31, %v4934_v44  ;;  %v2249_v20 = vadd.f32 %v2245_v14, %v4931_v36 }
0x1b7f   :  { %v2294_v7 = vpop.f32.mrf.mxu2  ;;  %v2302_v32 = vadd.f32 %v2298_v23, %v2250_v35  ;;  %v2301_v4 = vadd.f32 %v2297_v29, %v2249_v20  ;;  %v2376_v23 = vrot.slane %v5355_v25, 3 }
0x1b81   :  { %v3799_v34 = vmul.f32 -1.442695, %v2302_v32  ;;  %v3798_v37 = vmul.f32 -1.442695, %v2301_v4 }
0x1b82   :  { %v2242_v30 = vpop.f32.mrf.mxu1 }
0x1b83   :  { %4063 = vpow2.f32 %v3799_v34 }
0x1b89   :  { %v4064_v24 = vpop.eup %4063 }
0x1b8a   :  { %v2310_v40 = vadd.f32 1.0, %v4064_v24 }
0x1b8c   :  { %4065 = vrcp.f32 %v2310_v40  ;;  %v2337_v49 = vand.u32 2147483648, %v2310_v40  ;;  %vm2331_vm9 = vweird.f32 %v2310_v40  ;;  %v2335_v55 = vand.u32 2147483647, %v2310_v40 }
0x1b8d   :  { %4067 = vpow2.f32 %v3798_v37 }
0x1b8e   :  { %v2338_v61 = vor.u32 1.1754944e-38, %v2337_v49  ;;  %vm2336_vm11 = vcmp.eq.f32.partialorder %v2335_v55, 8.507059e+37 }
0x1b92   :  { %v4066_v21 = vpop.eup %4065 }
0x1b93   :  { %v2327_v42 = vmul.f32 %v4066_v21, %v2310_v40  ;;  %v4068_v51 = vpop.eup %4067  ;;  %vm2332_vm8 = vweird.f32 %v4066_v21 }
0x1b94   :  { %v2309_v54 = vadd.f32 1.0, %v4068_v51  ;;  %vm2333_vm10 = vmor %vm2331_vm9, %vm2332_vm8 }
0x1b95   :  { %v2328_v48 = vsub.f32 1.0, %v2327_v42 }
0x1b96   :  { %4069 = vrcp.f32 %v2309_v54  ;;  %v2322_v53 = vand.u32 2147483648, %v2309_v54  ;;  %vm2316_vm4 = vweird.f32 %v2309_v54  ;;  %v2320_v18 = vand.u32 2147483647, %v2309_v54 }
0x1b97   :  { %v2329_v39 = vmul.f32 %v4066_v21, %v2328_v48 }
0x1b98   :  { %v2323_v16 = vor.u32 1.1754944e-38, %v2322_v53  ;;  %vm2321_vm6 = vcmp.eq.f32.partialorder %v2320_v18, 8.507059e+37 }
0x1b99   :  { %v2330_v12 = vadd.f32 %v4066_v21, %v2329_v39 }
0x1b9b   :  { %v2334_v56 = vsel %vm2333_vm10, %v4066_v21, %v2330_v12 }
0x1b9c   :  { %v2339_v41 = vsel %vm2336_vm11, %v2338_v61, %v2334_v56  ;;  %v4070_v5 = vpop.eup %4069 }
0x1b9d   :  { %v2312_v28 = vmul.f32 %v4070_v5, %v2309_v54  ;;  %vm2317_vm3 = vweird.f32 %v4070_v5  ;;  %v2362_v40 = vsub.f32 1.0, %v2339_v41 }
0x1b9e   :  { %vm2318_vm5 = vmor %vm2316_vm4, %vm2317_vm3 }
0x1b9f   :  { %v2313_v27 = vsub.f32 1.0, %v2312_v28 }
0x1ba1   :  { %v2314_v8 = vmul.f32 %v4070_v5, %v2313_v27 }
0x1ba3   :  { %v2315_v9 = vadd.f32 %v4070_v5, %v2314_v8 }
0x1ba5   :  { %v2319_v22 = vsel %vm2318_vm5, %v4070_v5, %v2315_v9 }
0x1ba6   :  { %v2324_v52 = vsel %vm2321_vm6, %v2323_v16, %v2319_v22 }
0x1ba7   :  { %v2361_v7 = vsub.f32 1.0, %v2324_v52 }
0x1bd6   :  { %v2344_v63 = vpop.permute.xlu2 %2343 }
0x1bd7   :  { %v2348_v0 = vmul.f32 %v2344_v63, %v2339_v41 }
0x1bd9   :  { %2353 = vrot.lane.b32.xlu1 %v2348_v0, %s5776_s16 }
0x1be1   :  { %2377 = vrot.lane.b32.xlu1 %v2375_v60, %s4663_s9 }
0x1bee   :  { %v2342_v13 = vpop.permute.xlu1 %2341 }
0x1bef   :  { %v2347_v6 = vmul.f32 %v2342_v13, %v2324_v52 }
0x1bf1   :  { %2351 = vrot.lane.b32.xlu0 %v2347_v6, %s5776_s16  ;;  %v2483_v6 = vld [vmem:[%s5782_s24 + $0xd] sm:$0x1] }
0x1c4b   :  { %v2354_v19 = vpop.permute.xlu1 %2353 }
0x1c4c   :  { %v2358_v33 = vadd.f32 %v2354_v19, %v2250_v35 }
0x1c4e   :  { %4071 = vtanh.f32 %v2358_v33 }
0x1c53   :  { %v2378_v29 = vpop.permute.xlu1 %2377 }
0x1c54   :  { %v4072_v50 = vpop.eup %4071  ;;  %v2383_v31 = vmul.f32 %v2378_v29, %v2324_v52 }
0x1c55   :  { %2367 = vrot.lane.b32.xlu0 %v4072_v50, %s4664_s20 }
0x1c63   :  { %v2352_v10 = vpop.permute.xlu0 %2351 }
0x1c64   :  { %v2357_v59 = vadd.f32 %v2352_v10, %v2249_v20 }
0x1c66   :  { %4073 = vtanh.f32 %v2357_v59 }
0x1c6c   :  { %v4074_v15 = vpop.eup %4073 }
0x1c6d   :  { %2365 = vrot.lane.b32.xlu2 %v4074_v15, %s4664_s20 }
0x1c75   :  { %2379 = vrot.lane.b32.xlu2 %v2376_v23, %s4663_s9 }
0x1cc7   :  { %v2366_v30 = vpop.permute.xlu2 %2365  ;;  %v2368_v24 = vpop.permute.xlu0 %2367 }
0x1cc8   :  { %v2371_v32 = vmul.f32 %v2366_v30, %v2361_v7  ;;  %v2372_v4 = vmul.f32 %v2368_v24, %v2362_v40  ;;  %v2507_v24 = vsub.f32 1.0, %v2483_v6 }
0x1cca   :  { %v5414_v35 = vadd.f32 %v2383_v31, %v2371_v32 }
0x1ccc   :  { %v2387_v34 = vperm.slane %v5414_v35, 5 }
0x1cce   :  { %v2389_v14 = vmul.f32 %v4957_v46, %v2387_v34 }
0x1ccf   :  { %v2380_v20 = vpop.permute.xlu2 %2379 }
0x1cd0   :  { %v2384_v21 = vmul.f32 %v2380_v20, %v2339_v41  ;;  %2393 = vrot.lane.b32.xlu0 %v2389_v14, %s4664_s20  ;;  %v2482_v14 = vld [vmem:[%s5782_s24 + $0x5] sm:$0x1]  ;;  %v2496_v20 = vrot.slane %v5414_v35, 5 }
0x1cd1   :  { %v2506_v40 = vsub.f32 1.0, %v2482_v14 }
0x1cd2   :  { %v2386_v37 = vadd.f32 %v2384_v21, %v2372_v4 }
0x1cd4   :  { %v2388_v42 = vperm.slane %v2386_v37, 5  ;;  %v2497_v19 = vrot.slane %v2386_v37, 5 }
0x1cd6   :  { %v2390_v48 = vmul.f32 %v4955_v45, %v2388_v42 }
0x1cd8   :  { %2395 = vrot.lane.b32.xlu1 %v2390_v48, %s4664_s20 }
0x1d42   :  { %v2394_v51 = vpop.permute.xlu0 %2393 }
0x1d43   :  { %v2399_v39 = vsel %vm519_vm2, %v2394_v51, 0.0 }
0x1d44   :  { %2400 = vadd.xlane.f32.xlu2 %v2399_v39 }
0x1d4a   :  { %v2396_v54 = vpop.permute.xlu1 %2395 }
0x1d4b   :  { %v2402_v12 = vsel %vm519_vm2, %v2396_v54, 0.0 }
0x1d4c   :  { %2403 = vadd.xlane.f32.xlu0 %v2402_v12 }
0x1db7   :  { %v2401_v49 = vpop.xlane.xlu2 %2400 }
0x1db8   :  { %v2405_v55 = vadd.f32 %v2401_v49, %v4968_v58 }
0x1dba   :  { %2410 = vperm.xlu1 %3951, %v2405_v55  }
0x1dbf   :  { %v2404_v56 = vpop.xlane.xlu0 %2403 }
0x1dc0   :  { %v2406_v61 = vadd.f32 %v2404_v56, %v4971_v62 }
0x1dc2   :  { %2413 = vperm.xlu1 %3951, %v2406_v61  }
0x1e2c   :  { %v2411_v63 = vpop.permute.xlu1 %2410 }
0x1e2d   :  { %v2415_v0 = vperm.slane %v2411_v63, %v4974_v1 }
0x1e34   :  { %v2414_v41 = vpop.permute.xlu1 %2413 }
0x1e35   :  { %v2416_v5 = vperm.slane %v2414_v41, %v4974_v1 }
0x1e37   :  { %v2417_v28 = vsel %vm724_vm12, %v2416_v5, %v2415_v0  ;;  %v3897_v0 = vld [vmem:[%s5781_s4 + $0x8] sm:$0xff] }
0x1e38   :  { %v2419_v60 = vsel %vm727_vm13, %v2417_v28, -inf  ;;  %2572 = vmatpush.bf16.msrb.mxu3 %v3897_v0  ;;  %v3898_v28 = vld [vmem:[#allocation31] sm:$0xff] }
0x1e39   :  { %2420 = vmax.xlane.f32.xlu1 %v2419_v60  ;;  %v3896_v60 = vld [vmem:[%s5781_s4] sm:$0xff] }
0x1e3c   :  { %2573 = vmatpush.bf16.msrb.mxu3 %v3896_v60 }
0x1eac   :  { %v2421_v27 = vpop.xlane.xlu1 %2420 }
0x1ead   :  { %v2423_v8 = vperm.slane %v2421_v27, 0  ;;  %v2424_v9 = vperm.slane %v2421_v27, 1 }
0x1eaf   :  { %v2427_v53 = vsub.f32 %v2405_v55, %v2423_v8  ;;  %v2428_v18 = vsub.f32 %v2406_v61, %v2424_v9  ;;  %v3899_v55 = vld [vmem:[#allocation31 + $0x8] sm:$0xff] }
0x1eb0   :  { %2624 = vmatpush.bf16.msra.mxu0 %v3899_v55 }
0x1eb1   :  { %v2429_v22 = vmul.f32 1.442695, %v2427_v53  ;;  %v2431_v16 = vmul.f32 1.442695, %v2428_v18 }
0x1eb3   :  { %4075 = vpow2.f32 %v2429_v22 }
0x1eb4   :  { %4077 = vpow2.f32 %v2431_v16  ;;  %2625 = vmatpush.bf16.msra.mxu0 %v3898_v28 }
0x1eb9   :  { %v4076_v13 = vpop.eup %4075 }
0x1eba   :  { %v4078_v52 = vpop.eup %4077  ;;  %2436 = vperm.xlu2 %3952, %v4076_v13  }
0x1ebb   :  { %2439 = vperm.xlu0 %3953, %v4078_v52  }
0x1ec2   :  { %2491 = vperm.xlu2 %3952, %v2483_v6  }
0x1eca   :  { %2500 = vrot.lane.b32.xlu2 %v2497_v19, %s4664_s20 }
0x1f14   :  { %v2437_v33 = vpop.permute.xlu2 %2436 }
0x1f15   :  { %v2441_v10 = vperm.slane %v2437_v33, %v4974_v1 }
0x1f1c   :  { %v2492_v4 = vpop.permute.xlu2 %2491 }
0x1f24   :  { %v2501_v21 = vpop.permute.xlu2 %2500 }
0x1f25   :  { %v2505_v35 = vmul.f32 %v2501_v21, %v2492_v4 }
0x1f2d   :  { %v2440_v50 = vpop.permute.xlu0 %2439 }
0x1f2e   :  { %v2442_v59 = vperm.slane %v2440_v50, %v4974_v1 }
0x1f30   :  { %v2443_v15 = vsel %vm724_vm12, %v2442_v59, %v2441_v10 }
0x1f31   :  { %v2445_v23 = vsel %vm727_vm13, %v2443_v15, 0.0 }
0x1f32   :  { %2446 = vadd.xlane.f32.xlu0 %v2445_v23 }
0x1fa5   :  { %v2447_v29 = vpop.xlane.xlu0 %2446 }
0x1fa6   :  { %4079 = vrcp.f32 %v2447_v29 }
0x1fac   :  { %v4080_v7 = vpop.eup %4079 }
0x1fad   :  { %v2450_v30 = vperm.slane %v4080_v7, 0  ;;  %v2451_v31 = vperm.slane %v4080_v7, 1 }
0x1faf   :  { %v2455_v32 = vmul.f32 %v4078_v52, %v2451_v31  ;;  %v2454_v34 = vmul.f32 %v4076_v13, %v2450_v30 }
0x1fb1   :  { %2463 = vperm.xlu2 %3952, %v2455_v32   ;;  %2458 = vperm.xlu1 %3951, %v2454_v34  }
0x1fb9   :  { %2515 = vperm.xlu2 %3952, %v2507_v24   ;;  %2486 = vperm.xlu1 %3951, %v2482_v14  }
0x1fc1   :  { %2498 = vrot.lane.b32.xlu2 %v2496_v20, %s4664_s20  ;;  %2510 = vperm.xlu1 %3951, %v2506_v40  }
0x200b   :  { %v2464_v37 = vpop.permute.xlu2 %2463 }
0x200c   :  { %v2467_v42 = vmul.f32 %v5024_v3, %v2464_v37  ;;  %v2533_v48 = vperm.slane %v2464_v37, %v4974_v1 }
0x200e   :  { %v2475_v51 = vsel %vm519_vm2, %v2467_v42, 0.0  ;;  %2537 = vst.msk [vmem:[#allocation36 + $0xd] sm:$0x1] %vm858_vm14, %v2533_v48 }
0x200f   :  { %v2476_v39 = vrot.slane %v2475_v51, 4 }
0x2011   :  { %v2477_v54 = vadd.f32 %v2476_v39, %v2475_v51  ;;  %v3966_v51 = vld [vmem:[#allocation32] ss:$0 sm:$0xff] }
0x2013   :  { %v2478_v12 = vrot.slane %v2477_v54, 2  ;;  %v2516_v49 = vpop.permute.xlu2 %2515 }
0x2014   :  { %v2519_v56 = vmul.f32 %v2516_v49, %v5355_v25  ;;  %v2525_v27 = vmul.f32 %v2516_v49, %v5387_v11 }
0x2015   :  { %v2479_v61 = vadd.f32 %v2478_v12, %v2477_v54 }
0x2016   :  { %v5447_v63 = vadd.f32 %v2519_v56, %v2505_v35 }
0x2017   :  { %v2480_v41 = vrot.slane %v2479_v61, 1 }
0x2018   :  { %2529 = vst.msk [vmem:[#allocation4 + $0xd] sm:$0x1] %vm849_vm15, %v5447_v63  ;;  %v2587_v10 = vpack.c.bf16 %v5447_v63, %v5447_v63  ;;  %v2711_v56 = vrot.slane %v5447_v63, 2 }
0x2019   :  { %v2481_v5 = vadd.f32 %v2480_v41, %v2479_v61 }
0x201a   :  { %v2599_v32 = vunpack.c.l.b16 %v2587_v10 }
0x201b   :  { %v2523_v25 = vmul.f32 %v2492_v4, %v2481_v5  ;;  %v2499_v59 = vpop.permute.xlu2 %2498 }
0x201d   :  { %v5458_v8 = vadd.f32 %v2525_v27, %v2523_v25 }
0x201f   :  { %2531 = vst.msk [vmem:[#allocation5 + $0xd] sm:$0x1] %vm849_vm15, %v5458_v8  ;;  %v2539_v50 = vpack.c.bf16 %v5458_v8, %v5458_v8 }
0x2021   :  { %v2547_v31 = vunpack.c.l.b16 %v2539_v50 }
0x2023   :  { %v2459_v9 = vpop.permute.xlu1 %2458 }
0x2024   :  { %v2466_v53 = vmul.f32 %v5022_v2, %v2459_v9  ;;  %v2532_v18 = vperm.slane %v2459_v9, %v4974_v1 }
0x2026   :  { %v2468_v22 = vsel %vm519_vm2, %v2466_v53, 0.0  ;;  %2536 = vst.msk [vmem:[#allocation36 + $0x5] sm:$0x1] %vm858_vm14, %v2532_v18 }
0x2027   :  { %v2469_v16 = vrot.slane %v2468_v22, 4 }
0x2029   :  { %v2470_v13 = vadd.f32 %v2469_v16, %v2468_v22 }
0x202b   :  { %v2471_v52 = vrot.slane %v2470_v13, 2  ;;  %v2487_v11 = vpop.permute.xlu1 %2486 }
0x202c   :  { %v2504_v29 = vmul.f32 %v2499_v59, %v2487_v11 }
0x202d   :  { %v2472_v6 = vadd.f32 %v2471_v52, %v2470_v13 }
0x202f   :  { %v2473_v19 = vrot.slane %v2472_v6, 1 }
0x2031   :  { %v2474_v33 = vadd.f32 %v2473_v19, %v2472_v6 }
0x2033   :  { %v2522_v15 = vmul.f32 %v2487_v11, %v2474_v33  ;;  %v2511_v23 = vpop.permute.xlu1 %2510 }
0x2034   :  { %v2518_v7 = vmul.f32 %v2511_v23, %v5378_v38  ;;  %v2524_v30 = vmul.f32 %v2511_v23, %v5389_v17  ;;  %v2548_v38 = vrot.slane %v2547_v31, 7  ;;  %v2600_v17 = vrot.slane %v2599_v32, 7 }
0x2036   :  { %v5472_v34 = vadd.f32 %v2518_v7, %v2504_v29  ;;  %v5474_v24 = vadd.f32 %v2524_v30, %v2522_v15 }
0x2038   :  { %2528 = vst.msk [vmem:[#allocation4 + $0x5] sm:$0x1] %vm849_vm15, %v5472_v34  ;;  %v2538_v14 = vpack.c.bf16 %v5474_v24, %v5474_v24  ;;  %v2586_v40 = vpack.c.bf16 %v5472_v34, %v5472_v34 }
0x2039   :  { %2530 = vst.msk [vmem:[#allocation5 + $0x5] sm:$0x1] %vm849_vm15, %v5474_v24 }
0x203a   :  { %v2546_v20 = vunpack.c.l.b16 %v2538_v14  ;;  %v2598_v4 = vunpack.c.l.b16 %v2586_v40 }
0x203c   :  { %v2549_v21 = vsel %vm724_vm12, %v2548_v38, %v2546_v20  ;;  %v2601_v37 = vsel %vm724_vm12, %v2600_v17, %v2598_v4 }
0x203d   :  { %v2550_v42 = vpack.c.b16 %v2549_v21, %v2549_v21  ;;  %v2602_v48 = vpack.c.b16 %v2601_v37, %v2601_v37 }
0x203f   :  { %3808 = vmatmul.msk.bf16.vlgmr.msrb.gmra.mxu3 %vm519_vm2, %v2550_v42  ;;  %3817 = vmatmul.msk.bf16.vlgmr.msra.gmra.mxu0 %vm519_vm2, %v2602_v48 }
0x20bc   :  { %v2627_v39 = vpop.f32.mrf.mxu0 }
0x20bd   :  { %v2628_v54 = vadd.f32 %v3966_v51, %v2627_v39 }
0x20bf   :  { %v2633_v12 = vrot.slane %v2628_v54, 3  ;;  %v2632_v49 = vrot.slane %v2628_v54, 2 }
0x20c1   :  { %2678 = vrot.lane.b32.xlu0 %v2633_v12, %s5776_s16  ;;  %2676 = vrot.lane.b32.xlu2 %v2632_v49, %s5776_s16 }
0x20c2   :  { %v2575_v55 = vpop.f32.mrf.mxu3 }
0x20c3   :  { %v2580_v41 = vrot.slane %v2575_v55, 2  ;;  %v2581_v25 = vrot.slane %v2575_v55, 3 }
0x20c4   :  { %v2629_v35 = vpop.f32.mrf.mxu0 }
0x20c5   :  { %v2584_v0 = vadd.f32 %v2580_v41, %v4931_v36  ;;  %v2585_v9 = vadd.f32 %v2581_v25, %v4934_v44 }
0x20c7   :  { %v2636_v5 = vadd.f32 %v2632_v49, %v2584_v0  ;;  %v2637_v53 = vadd.f32 %v2633_v12, %v2585_v9  ;;  %v2710_v49 = vrot.slane %v5472_v34, 2 }
0x20c9   :  { %2714 = vrot.lane.b32.xlu0 %v2711_v56, %s4663_s9  ;;  %v3818_v28 = vmul.f32 -1.442695, %v2636_v5  ;;  %v3819_v22 = vmul.f32 -1.442695, %v2637_v53 }
0x20ca   :  { %v2577_v61 = vpop.f32.mrf.mxu3 }
0x20cb   :  { %4081 = vpow2.f32 %v3818_v28 }
0x20d1   :  { %v4082_v60 = vpop.eup %4081 }
0x20d2   :  { %v2644_v27 = vadd.f32 1.0, %v4082_v60 }
0x20d4   :  { %4083 = vrcp.f32 %v2644_v27  ;;  %v2657_v33 = vand.u32 2147483648, %v2644_v27  ;;  %vm2651_vm8 = vweird.f32 %v2644_v27  ;;  %v2655_v50 = vand.u32 2147483647, %v2644_v27 }
0x20d5   :  { %4085 = vpow2.f32 %v3819_v22 }
0x20d6   :  { %v2658_v59 = vor.u32 1.1754944e-38, %v2657_v33  ;;  %vm2656_vm10 = vcmp.eq.f32.partialorder %v2655_v50, 8.507059e+37 }
0x20da   :  { %v4084_v18 = vpop.eup %4083 }
0x20db   :  { %v2647_v16 = vmul.f32 %v4084_v18, %v2644_v27  ;;  %v4086_v52 = vpop.eup %4085  ;;  %vm2652_vm7 = vweird.f32 %v4084_v18 }
0x20dc   :  { %v2645_v6 = vadd.f32 1.0, %v4086_v52  ;;  %vm2653_vm9 = vmor %vm2651_vm8, %vm2652_vm7 }
0x20dd   :  { %v2648_v13 = vsub.f32 1.0, %v2647_v16 }
0x20de   :  { %4087 = vrcp.f32 %v2645_v6  ;;  %v2672_v40 = vand.u32 2147483648, %v2645_v6  ;;  %vm2666_vm3 = vweird.f32 %v2645_v6  ;;  %v2670_v38 = vand.u32 2147483647, %v2645_v6 }
0x20df   :  { %v2649_v11 = vmul.f32 %v4084_v18, %v2648_v13 }
0x20e0   :  { %v2673_v20 = vor.u32 1.1754944e-38, %v2672_v40  ;;  %vm2671_vm5 = vcmp.eq.f32.partialorder %v2670_v38, 8.507059e+37 }
0x20e1   :  { %v2650_v19 = vadd.f32 %v4084_v18, %v2649_v11 }
0x20e3   :  { %v2654_v10 = vsel %vm2653_vm9, %v4084_v18, %v2650_v19 }
0x20e4   :  { %v2659_v23 = vsel %vm2656_vm10, %v2658_v59, %v2654_v10  ;;  %v4088_v7 = vpop.eup %4087 }
0x20e5   :  { %v2662_v30 = vmul.f32 %v4088_v7, %v2645_v6  ;;  %vm2667_vm11 = vweird.f32 %v4088_v7  ;;  %v2696_v25 = vsub.f32 1.0, %v2659_v23 }
0x20e6   :  { %vm2668_vm4 = vmor %vm2666_vm3, %vm2667_vm11 }
0x20e7   :  { %v2663_v31 = vsub.f32 1.0, %v2662_v30 }
0x20e9   :  { %v2664_v32 = vmul.f32 %v4088_v7, %v2663_v31 }
0x20eb   :  { %v2665_v14 = vadd.f32 %v4088_v7, %v2664_v32 }
0x20ed   :  { %v2669_v17 = vsel %vm2668_vm4, %v4088_v7, %v2665_v14 }
0x20ee   :  { %v2674_v21 = vsel %vm2671_vm5, %v2673_v20, %v2669_v17  ;;  %vm3475_vm5 = vcmask 64512  }
0x20ef   :  { %v2697_v35 = vsub.f32 1.0, %v2674_v21 }
0x211b   :  { %v2677_v15 = vpop.permute.xlu2 %2676 }
0x211c   :  { %v2682_v29 = vmul.f32 %v2677_v15, %v2659_v23 }
0x211e   :  { %2686 = vrot.lane.b32.xlu1 %v2682_v29, %s5776_s16 }
0x2133   :  { %v2679_v4 = vpop.permute.xlu0 %2678 }
0x2134   :  { %v2683_v37 = vmul.f32 %v2679_v4, %v2674_v21 }
0x2136   :  { %2688 = vrot.lane.b32.xlu2 %v2683_v37, %s5776_s16  ;;  %v2818_v37 = vld [vmem:[%s5782_s24 + $0xe] sm:$0x1] }
0x213b   :  { %v2715_v55 = vpop.permute.xlu0 %2714 }
0x213c   :  { %v2719_v61 = vmul.f32 %v2715_v55, %v2674_v21 }
0x2190   :  { %v2689_v42 = vpop.permute.xlu2 %2688  ;;  %v2687_v48 = vpop.permute.xlu1 %2686 }
0x2191   :  { %v2693_v51 = vadd.f32 %v2689_v42, %v2585_v9  ;;  %v2692_v39 = vadd.f32 %v2687_v48, %v2584_v0  ;;  %v2842_v48 = vsub.f32 1.0, %v2818_v37 }
0x2193   :  { %4089 = vtanh.f32 %v2693_v51  ;;  %v2817_v51 = vld [vmem:[%s5782_s24 + $0x6] sm:$0x1] }
0x2194   :  { %4091 = vtanh.f32 %v2692_v39  ;;  %v2841_v39 = vsub.f32 1.0, %v2817_v51 }
0x2199   :  { %v4090_v54 = vpop.eup %4089 }
0x219a   :  { %v4092_v12 = vpop.eup %4091  ;;  %2702 = vrot.lane.b32.xlu2 %v4090_v54, %s4664_s20 }
0x219b   :  { %2700 = vrot.lane.b32.xlu1 %v4092_v12, %s4664_s20 }
0x21a3   :  { %2712 = vrot.lane.b32.xlu1 %v2710_v49, %s4663_s9 }
0x21f4   :  { %v2703_v56 = vpop.permute.xlu2 %2702 }
0x21f5   :  { %v2707_v41 = vmul.f32 %v2703_v56, %v2697_v35 }
0x21f7   :  { %v2721_v5 = vadd.f32 %v2719_v61, %v2707_v41 }
0x21f9   :  { %v2723_v28 = vperm.slane %v2721_v5, 6  ;;  %v2832_v42 = vrot.slane %v2721_v5, 6 }
0x21fb   :  { %v2725_v0 = vmul.f32 %v4955_v45, %v2723_v28 }
0x21fd   :  { %2730 = vrot.lane.b32.xlu1 %v2725_v0, %s4664_s20 }
0x220d   :  { %v2701_v60 = vpop.permute.xlu1 %2700 }
0x220e   :  { %v2706_v9 = vmul.f32 %v2701_v60, %v2696_v25 }
0x2215   :  { %v2713_v27 = vpop.permute.xlu1 %2712 }
0x2216   :  { %v2718_v53 = vmul.f32 %v2713_v27, %v2659_v23 }
0x2218   :  { %v5502_v18 = vadd.f32 %v2718_v53, %v2706_v9 }
0x221a   :  { %v2722_v22 = vperm.slane %v5502_v18, 6 }
0x221c   :  { %v2724_v16 = vmul.f32 %v4957_v46, %v2722_v22 }
0x221e   :  { %2728 = vrot.lane.b32.xlu2 %v2724_v16, %s4664_s20 }
0x226f   :  { %v2731_v13 = vpop.permute.xlu1 %2730 }
0x2270   :  { %v2737_v52 = vsel %vm519_vm2, %v2731_v13, 0.0  ;;  %v3903_v13 = vld [vmem:[#allocation31 + $0x8] sm:$0xff] }
0x2271   :  { %2738 = vadd.xlane.f32.xlu2 %v2737_v52  ;;  %2959 = vmatpush.bf16.msra.mxu2 %v3903_v13  ;;  %v3902_v52 = vld [vmem:[#allocation31] sm:$0xff]  ;;  %v3967_v13 = vld [vmem:[#allocation32] ss:$0 sm:$0xff] }
0x2275   :  { %2960 = vmatpush.bf16.msra.mxu2 %v3902_v52 }
0x2278   :  { %v2729_v11 = vpop.permute.xlu2 %2728 }
0x2279   :  { %v2734_v6 = vsel %vm519_vm2, %v2729_v11, 0.0  ;;  %v3901_v11 = vld [vmem:[%s5781_s4 + $0x8] sm:$0xff] }
0x227a   :  { %2735 = vadd.xlane.f32.xlu0 %v2734_v6  ;;  %2907 = vmatpush.bf16.msra.mxu1 %v3901_v11  ;;  %v3900_v6 = vld [vmem:[%s5781_s4] sm:$0xff] }
0x227e   :  { %2908 = vmatpush.bf16.msra.mxu1 %v3900_v6 }
0x22e4   :  { %v2739_v50 = vpop.xlane.xlu2 %2738 }
0x22e5   :  { %v2741_v10 = vadd.f32 %v2739_v50, %v4971_v62 }
0x22ed   :  { %v2736_v19 = vpop.xlane.xlu0 %2735 }
0x22ee   :  { %v2740_v33 = vadd.f32 %v2736_v19, %v4968_v58 }
0x22f0   :  { %2745 = vperm.xlu1 %3951, %v2740_v33  }
0x22f8   :  { %2748 = vperm.xlu1 %3951, %v2741_v10  }
0x2362   :  { %v2746_v59 = vpop.permute.xlu1 %2745 }
0x2363   :  { %v2750_v23 = vperm.slane %v2746_v59, %v4974_v1 }
0x236a   :  { %v2749_v15 = vpop.permute.xlu1 %2748 }
0x236b   :  { %v2751_v29 = vperm.slane %v2749_v15, %v4974_v1 }
0x236d   :  { %v2752_v7 = vsel %vm724_vm12, %v2751_v29, %v2750_v23 }
0x236e   :  { %v2754_v30 = vsel %vm727_vm13, %v2752_v7, -inf }
0x236f   :  { %2755 = vmax.xlane.f32.xlu1 %v2754_v30 }
0x23e2   :  { %v2756_v31 = vpop.xlane.xlu1 %2755 }
0x23e3   :  { %v2758_v32 = vperm.slane %v2756_v31, 0  ;;  %v2759_v14 = vperm.slane %v2756_v31, 1 }
0x23e5   :  { %v2762_v40 = vsub.f32 %v2740_v33, %v2758_v32  ;;  %v2763_v38 = vsub.f32 %v2741_v10, %v2759_v14 }
0x23e7   :  { %v2764_v17 = vmul.f32 1.442695, %v2762_v40  ;;  %v2766_v20 = vmul.f32 1.442695, %v2763_v38 }
0x23e9   :  { %4093 = vpow2.f32 %v2764_v17 }
0x23ea   :  { %4095 = vpow2.f32 %v2766_v20 }
0x23ef   :  { %v4094_v4 = vpop.eup %4093 }
0x23f0   :  { %v4096_v21 = vpop.eup %4095  ;;  %2771 = vperm.xlu0 %3953, %v4094_v4  }
0x23f1   :  { %2774 = vperm.xlu2 %3952, %v4096_v21  }
0x23f9   :  { %2826 = vperm.xlu2 %3952, %v2818_v37  }
0x2401   :  { %2835 = vrot.lane.b32.xlu2 %v2832_v42, %s4664_s20 }
0x2409   :  { %2850 = vperm.xlu2 %3952, %v2842_v48  }
0x2411   :  { %2821 = vperm.xlu2 %3952, %v2817_v51  }
0x2419   :  { %2845 = vperm.xlu2 %3952, %v2841_v39  }
0x244b   :  { %v2775_v54 = vpop.permute.xlu2 %2774 }
0x244c   :  { %v2777_v35 = vperm.slane %v2775_v54, %v4974_v1 }
0x2453   :  { %v2827_v12 = vpop.permute.xlu2 %2826 }
0x245b   :  { %v2836_v49 = vpop.permute.xlu2 %2835 }
0x245c   :  { %v2840_v41 = vmul.f32 %v2836_v49, %v2827_v12 }
0x2462   :  { %v2772_v55 = vpop.permute.xlu0 %2771 }
0x2463   :  { %v2851_v56 = vpop.permute.xlu2 %2850  ;;  %v2776_v61 = vperm.slane %v2772_v55, %v4974_v1 }
0x2464   :  { %v2854_v5 = vmul.f32 %v2851_v56, %v5447_v63  ;;  %v2831_v63 = vrot.slane %v5502_v18, 6 }
0x2465   :  { %v2778_v28 = vsel %vm724_vm12, %v2777_v35, %v2776_v61 }
0x2466   :  { %v5526_v0 = vadd.f32 %v2854_v5, %v2840_v41  ;;  %v2780_v60 = vsel %vm727_vm13, %v2778_v28, 0.0 }
0x2467   :  { %2781 = vadd.xlane.f32.xlu0 %v2780_v60 }
0x2468   :  { %2864 = vst.msk [vmem:[#allocation4 + $0xe] sm:$0x1] %vm849_vm15, %v5526_v0 }
0x246b   :  { %v2822_v10 = vpop.permute.xlu2 %2821 }
0x2473   :  { %v2846_v38 = vpop.permute.xlu2 %2845 }
0x2474   :  { %v2853_v51 = vmul.f32 %v2846_v38, %v5472_v34  ;;  %v2859_v5 = vmul.f32 %v2846_v38, %v5474_v24 }
0x24da   :  { %v2782_v25 = vpop.xlane.xlu0 %2781 }
0x24db   :  { %4097 = vrcp.f32 %v2782_v25 }
0x24e1   :  { %v4098_v27 = vpop.eup %4097 }
0x24e2   :  { %v2786_v9 = vperm.slane %v4098_v27, 1  ;;  %v2785_v22 = vperm.slane %v4098_v27, 0 }
0x24e4   :  { %v2790_v53 = vmul.f32 %v4096_v21, %v2786_v9  ;;  %v2789_v16 = vmul.f32 %v4094_v4, %v2785_v22  ;;  %v2922_v4 = vpack.c.bf16 %v5526_v0, %v5526_v0  ;;  %v2860_v21 = vmul.f32 %v2851_v56, %v5458_v8 }
0x24e6   :  { %2798 = vperm.xlu1 %3951, %v2790_v53   ;;  %v2934_v55 = vunpack.c.l.b16 %v2922_v4 }
0x24e8   :  { %v2935_v56 = vrot.slane %v2934_v55, 7 }
0x24ee   :  { %2793 = vperm.xlu1 %3951, %v2789_v16  }
0x24f6   :  { %2833 = vrot.lane.b32.xlu1 %v2831_v63, %s4664_s20 }
0x2558   :  { %v2799_v19 = vpop.permute.xlu1 %2798 }
0x2559   :  { %v2802_v33 = vmul.f32 %v5024_v3, %v2799_v19  ;;  %v2868_v18 = vperm.slane %v2799_v19, %v4974_v1 }
0x255b   :  { %v2810_v50 = vsel %vm519_vm2, %v2802_v33, 0.0  ;;  %2872 = vst.msk [vmem:[#allocation36 + $0xe] sm:$0x1] %vm858_vm14, %v2868_v18 }
0x255c   :  { %v2811_v59 = vrot.slane %v2810_v50, 4 }
0x255e   :  { %v2812_v15 = vadd.f32 %v2811_v59, %v2810_v50 }
0x2560   :  { %v2813_v23 = vrot.slane %v2812_v15, 2  ;;  %v2794_v29 = vpop.permute.xlu1 %2793 }
0x2561   :  { %v2801_v7 = vmul.f32 %v5022_v2, %v2794_v29  ;;  %v2867_v30 = vperm.slane %v2794_v29, %v4974_v1 }
0x2562   :  { %v2814_v31 = vadd.f32 %v2813_v23, %v2812_v15 }
0x2563   :  { %v2803_v32 = vsel %vm519_vm2, %v2801_v7, 0.0  ;;  %2871 = vst.msk [vmem:[#allocation36 + $0x6] sm:$0x1] %vm858_vm14, %v2867_v30 }
0x2564   :  { %v2815_v14 = vrot.slane %v2814_v31, 1  ;;  %v2804_v40 = vrot.slane %v2803_v32, 4 }
0x2566   :  { %v2816_v17 = vadd.f32 %v2815_v14, %v2814_v31  ;;  %v2805_v20 = vadd.f32 %v2804_v40, %v2803_v32 }
0x2568   :  { %v2858_v37 = vmul.f32 %v2827_v12, %v2816_v17  ;;  %v2806_v42 = vrot.slane %v2805_v20, 2  ;;  %v2834_v48 = vpop.permute.xlu1 %2833 }
0x2569   :  { %v2839_v39 = vmul.f32 %v2834_v48, %v2822_v10 }
0x256a   :  { %v5551_v54 = vadd.f32 %v2860_v21, %v2858_v37  ;;  %v2807_v49 = vadd.f32 %v2806_v42, %v2805_v20 }
0x256b   :  { %v5553_v35 = vadd.f32 %v2853_v51, %v2839_v39 }
0x256c   :  { %2866 = vst.msk [vmem:[#allocation5 + $0xe] sm:$0x1] %vm849_vm15, %v5551_v54  ;;  %v2808_v61 = vrot.slane %v2807_v49, 1  ;;  %v2874_v34 = vpack.c.bf16 %v5551_v54, %v5551_v54 }
0x256d   :  { %2863 = vst.msk [vmem:[#allocation4 + $0x6] sm:$0x1] %vm849_vm15, %v5553_v35  ;;  %v2921_v8 = vpack.c.bf16 %v5553_v35, %v5553_v35 }
0x256e   :  { %v2809_v12 = vadd.f32 %v2808_v61, %v2807_v49  ;;  %v2882_v9 = vunpack.c.l.b16 %v2874_v34 }
0x256f   :  { %v2933_v41 = vunpack.c.l.b16 %v2921_v8 }
0x2570   :  { %v2857_v28 = vmul.f32 %v2822_v10, %v2809_v12  ;;  %v2883_v16 = vrot.slane %v2882_v9, 7  ;;  %v3046_v10 = vrot.slane %v5526_v0, 1 }
0x2571   :  { %v2936_v60 = vsel %vm724_vm12, %v2935_v56, %v2933_v41 }
0x2572   :  { %v5565_v25 = vadd.f32 %v2859_v5, %v2857_v28  ;;  %v2937_v27 = vpack.c.b16 %v2936_v60, %v2936_v60 }
0x2574   :  { %2865 = vst.msk [vmem:[#allocation5 + $0x6] sm:$0x1] %vm849_vm15, %v5565_v25  ;;  %3837 = vmatmul.msk.bf16.vlgmr.msra.gmra.mxu2 %vm519_vm2, %v2937_v27  ;;  %v2873_v53 = vpack.c.bf16 %v5565_v25, %v5565_v25 }
0x2576   :  { %v2881_v22 = vunpack.c.l.b16 %v2873_v53 }
0x2578   :  { %v2884_v63 = vsel %vm724_vm12, %v2883_v16, %v2881_v22 }
0x2579   :  { %v2885_v24 = vpack.c.b16 %v2884_v63, %v2884_v63 }
0x257b   :  { %3828 = vmatmul.msk.bf16.vlgmr.msra.gmra.mxu1 %vm519_vm2, %v2885_v24  ;;  %v3045_v24 = vrot.slane %v5553_v35, 1 }
0x25f7   :  { %v2962_v52 = vpop.f32.mrf.mxu2 }
0x25f8   :  { %v2963_v11 = vadd.f32 %v3967_v13, %v2962_v52  ;;  %v2910_v6 = vpop.f32.mrf.mxu1 }
0x25f9   :  { %v2915_v59 = vrot.slane %v2910_v6, 1  ;;  %v2916_v15 = vrot.slane %v2910_v6, 2 }
0x25fa   :  { %v2967_v19 = vrot.slane %v2963_v11, 1  ;;  %v2968_v33 = vrot.slane %v2963_v11, 2 }
0x25fb   :  { %v2919_v23 = vadd.f32 %v2915_v59, %v4931_v36  ;;  %v2920_v29 = vadd.f32 %v2916_v15, %v4934_v44 }
0x25fc   :  { %3013 = vrot.lane.b32.xlu0 %v2968_v33, %s5776_s16  ;;  %3011 = vrot.lane.b32.xlu1 %v2967_v19, %s5776_s16 }
0x25fd   :  { %v2971_v7 = vadd.f32 %v2967_v19, %v2919_v23  ;;  %v2972_v30 = vadd.f32 %v2968_v33, %v2920_v29 }
0x25ff   :  { %v2964_v18 = vpop.f32.mrf.mxu2  ;;  %v3838_v31 = vmul.f32 -1.442695, %v2971_v7  ;;  %v3839_v32 = vmul.f32 -1.442695, %v2972_v30 }
0x2600   :  { %v2912_v50 = vpop.f32.mrf.mxu1 }
0x2601   :  { %4099 = vpow2.f32 %v3838_v31 }
0x2602   :  { %4101 = vpow2.f32 %v3839_v32 }
0x2604   :  { %3049 = vrot.lane.b32.xlu0 %v3046_v10, %s4663_s9 }
0x2607   :  { %v4100_v14 = vpop.eup %4099 }
0x2608   :  { %v4102_v40 = vpop.eup %4101  ;;  %v2979_v38 = vadd.f32 1.0, %v4100_v14 }
0x2609   :  { %v2980_v17 = vadd.f32 1.0, %v4102_v40 }
0x260a   :  { %4103 = vrcp.f32 %v2979_v38  ;;  %vm2986_vm8 = vweird.f32 %v2979_v38  ;;  %v2992_v55 = vand.u32 2147483648, %v2979_v38  ;;  %v2990_v8 = vand.u32 2147483647, %v2979_v38 }
0x260b   :  { %4105 = vrcp.f32 %v2980_v17  ;;  %v3007_v49 = vand.u32 2147483648, %v2980_v17  ;;  %vm3001_vm9 = vweird.f32 %v2980_v17  ;;  %v3005_v61 = vand.u32 2147483647, %v2980_v17 }
0x260c   :  { %v2993_v41 = vor.u32 1.1754944e-38, %v2992_v55  ;;  %vm2991_vm4 = vcmp.eq.f32.partialorder %v2990_v8, 8.507059e+37 }
0x260d   :  { %v3008_v56 = vor.u32 1.1754944e-38, %v3007_v49  ;;  %vm3006_vm3 = vcmp.eq.f32.partialorder %v3005_v61, 8.507059e+37 }
0x2610   :  { %v4104_v20 = vpop.eup %4103 }
0x2611   :  { %v4106_v4 = vpop.eup %4105  ;;  %v2982_v37 = vmul.f32 %v4104_v20, %v2979_v38  ;;  %vm2987_vm6 = vweird.f32 %v4104_v20 }
0x2612   :  { %v2997_v21 = vmul.f32 %v4106_v4, %v2980_v17  ;;  %vm3002_vm7 = vweird.f32 %v4106_v4  ;;  %vm2988_vm10 = vmor %vm2986_vm8, %vm2987_vm6 }
0x2613   :  { %v2983_v36 = vsub.f32 1.0, %v2982_v37  ;;  %vm3003_vm11 = vmor %vm3001_vm9, %vm3002_vm7 }
0x2614   :  { %v2998_v42 = vsub.f32 1.0, %v2997_v21 }
0x2615   :  { %v2984_v44 = vmul.f32 %v4104_v20, %v2983_v36 }
0x2616   :  { %v2999_v48 = vmul.f32 %v4106_v4, %v2998_v42 }
0x2617   :  { %v2985_v39 = vadd.f32 %v4104_v20, %v2984_v44 }
0x2618   :  { %v3000_v51 = vadd.f32 %v4106_v4, %v2999_v48 }
0x2619   :  { %v2989_v12 = vsel %vm2988_vm10, %v4104_v20, %v2985_v39 }
0x261a   :  { %v3004_v34 = vsel %vm3003_vm11, %v4106_v4, %v3000_v51  ;;  %v2994_v27 = vsel %vm2991_vm4, %v2993_v41, %v2989_v12  ;;  %v3152_v41 = vld [vmem:[%s5782_s24 + $0x7] sm:$0x1] }
0x261b   :  { %v3009_v28 = vsel %vm3006_vm3, %v3008_v56, %v3004_v34  ;;  %v3031_v19 = vsub.f32 1.0, %v2994_v27 }
0x261c   :  { %v3032_v7 = vsub.f32 1.0, %v3009_v28 }
0x266e   :  { %v3014_v5 = vpop.permute.xlu0 %3013  ;;  %v3012_v60 = vpop.permute.xlu1 %3011 }
0x266f   :  { %v3018_v9 = vmul.f32 %v3014_v5, %v3009_v28  ;;  %v3017_v53 = vmul.f32 %v3012_v60, %v2994_v27 }
0x2671   :  { %3023 = vrot.lane.b32.xlu1 %v3018_v9, %s5776_s16  ;;  %3021 = vrot.lane.b32.xlu2 %v3017_v53, %s5776_s16  ;;  %s3594_s16 = sshll.u32 %s4672_s23, 4  ;;  %s3595_s16 = int_to_ptr.vmem [resolvable:$true] %s3594_s16 }
0x26cb   :  { %v3022_v22 = vpop.permute.xlu2 %3021 }
0x26cc   :  { %v3027_v16 = vadd.f32 %v3022_v22, %v2919_v23  ;;  %v3050_v23 = vpop.permute.xlu0 %3049 }
0x26cd   :  { %v3054_v30 = vmul.f32 %v3050_v23, %v3009_v28 }
0x26ce   :  { %4107 = vtanh.f32 %v3027_v16 }
0x26d4   :  { %v4108_v63 = vpop.eup %4107 }
0x26d5   :  { %3035 = vrot.lane.b32.xlu2 %v4108_v63, %s4664_s20 }
0x26dd   :  { %3047 = vrot.lane.b32.xlu2 %v3045_v24, %s4663_s9  ;;  %s5783_s9 = sld [smem:[#allocation74_spill]] }
0x26e3   :  { %v3024_v13 = vpop.permute.xlu1 %3023  ;;  %s3556_s14 = sshll.u32 %s5783_s9, 4  ;;  %s3557_s14 = int_to_ptr.hbm [resolvable:$true] %s3556_s14 }
0x26e4   :  { %v3028_v52 = vadd.f32 %v3024_v13, %v2920_v29 }
0x26e6   :  { %4109 = vtanh.f32 %v3028_v52 }
0x26ec   :  { %v4110_v11 = vpop.eup %4109 }
0x26ed   :  { %3037 = vrot.lane.b32.xlu1 %v4110_v11, %s4664_s20  ;;  %v3176_v11 = vsub.f32 1.0, %v3152_v41 }
0x272f   :  { %v3036_v6 = vpop.permute.xlu2 %3035 }
0x2730   :  { %v3041_v18 = vmul.f32 %v3036_v6, %v3031_v19  ;;  %v3153_v6 = vld [vmem:[%s5782_s24 + $0xf] sm:$0x1] }
0x2737   :  { %v3048_v33 = vpop.permute.xlu2 %3047 }
0x2738   :  { %v3053_v50 = vmul.f32 %v3048_v33, %v2994_v27 }
0x273a   :  { %v5586_v10 = vadd.f32 %v3053_v50, %v3041_v18  ;;  %v3318_v50 = vld [vmem:[#allocation22] sm:$0x3] }
0x273c   :  { %v3057_v59 = vperm.slane %v5586_v10, 7  ;;  %v3166_v33 = vrot.slane %v5586_v10, 7 }
0x273e   :  { %v3059_v15 = vmul.f32 %v4957_v46, %v3057_v59  ;;  %v3453_v59 = vperm.slane %v3318_v50, 0 }
0x2740   :  { %3063 = vrot.lane.b32.xlu1 %v3059_v15, %s4664_s20  ;;  %v3460_v15 = vperm.slane %v3318_v50, 1 }
0x275f   :  { %v3038_v29 = vpop.permute.xlu1 %3037 }
0x2760   :  { %v3042_v31 = vmul.f32 %v3038_v29, %v3032_v7 }
0x2762   :  { %v5591_v32 = vadd.f32 %v3054_v30, %v3042_v31 }
0x2764   :  { %v3058_v14 = vperm.slane %v5591_v32, 7  ;;  %v3167_v18 = vrot.slane %v5591_v32, 7 }
0x2766   :  { %v3060_v40 = vmul.f32 %v4955_v45, %v3058_v14 }
0x2768   :  { %3065 = vrot.lane.b32.xlu2 %v3060_v40, %s4664_s20 }
0x27b2   :  { %v3064_v38 = vpop.permute.xlu1 %3063 }
0x27b3   :  { %v3069_v17 = vsel %vm519_vm2, %v3064_v38, 0.0 }
0x27b4   :  { %3070 = vadd.xlane.f32.xlu0 %v3069_v17  ;;  %v3907_v17 = vld [vmem:[#allocation7 + $0x8] sm:$0xff] }
0x27b5   :  { %3352 = vmatpush.bf16.msra.mxu3 %v3907_v17 }
0x27c2   :  { %v3066_v46 = vpop.permute.xlu2 %3065 }
0x27c3   :  { %v3072_v20 = vsel %vm519_vm2, %v3066_v46, 0.0 }
0x27c4   :  { %3073 = vadd.xlane.f32.xlu1 %v3072_v20 }
0x2827   :  { %v3071_v4 = vpop.xlane.xlu0 %3070 }
0x2828   :  { %v3075_v21 = vadd.f32 %v3071_v4, %v4968_v58 }
0x282a   :  { %3080 = vperm.xlu2 %3952, %v3075_v21  }
0x2837   :  { %v3074_v37 = vpop.xlane.xlu1 %3073 }
0x2838   :  { %v3076_v42 = vadd.f32 %v3074_v37, %v4971_v62 }
0x283a   :  { %3083 = vperm.xlu2 %3952, %v3076_v42  }
0x2884   :  { %v3081_v36 = vpop.permute.xlu2 %3080 }
0x2885   :  { %v3085_v48 = vperm.slane %v3081_v36, %v4974_v1  ;;  %v3906_v36 = vld [vmem:[#allocation7] sm:$0xff] }
0x2886   :  { %3353 = vmatpush.bf16.msra.mxu3 %v3906_v36 }
0x2894   :  { %v3084_v45 = vpop.permute.xlu2 %3083 }
0x2895   :  { %v3086_v44 = vperm.slane %v3084_v45, %v4974_v1 }
0x2897   :  { %v3087_v51 = vsel %vm724_vm12, %v3086_v44, %v3085_v48 }
0x2898   :  { %v3089_v39 = vsel %vm727_vm13, %v3087_v51, -inf  ;;  %v5647_v51 = vld [vmem:[%s5740_s18] ss:$0 sm:$0xff] }
0x2899   :  { %3090 = vmax.xlane.f32.xlu2 %v3089_v39  ;;  %v3904_v39 = vld [vmem:[#allocation6] sm:$0xff] }
0x290c   :  { %v3091_v49 = vpop.xlane.xlu2 %3090 }
0x290d   :  { %v3093_v55 = vperm.slane %v3091_v49, 0  ;;  %v3094_v61 = vperm.slane %v3091_v49, 1 }
0x290f   :  { %v3097_v58 = vsub.f32 %v3075_v21, %v3093_v55  ;;  %v3098_v8 = vsub.f32 %v3076_v42, %v3094_v61 }
0x2911   :  { %v3099_v34 = vmul.f32 1.442695, %v3097_v58  ;;  %v3101_v12 = vmul.f32 1.442695, %v3098_v8 }
0x2913   :  { %4111 = vpow2.f32 %v3099_v34 }
0x2914   :  { %4113 = vpow2.f32 %v3101_v12 }
0x2919   :  { %v4112_v62 = vpop.eup %4111 }
0x291a   :  { %v4114_v56 = vpop.eup %4113  ;;  %3106 = vperm.xlu0 %3953, %v4112_v62  }
0x291b   :  { %3109 = vperm.xlu1 %3951, %v4114_v56  }
0x2923   :  { %3156 = vperm.xlu1 %3951, %v3152_v41  }
0x298c   :  { %v3107_v5 = vpop.permute.xlu0 %3106 }
0x298d   :  { %v3110_v28 = vpop.permute.xlu1 %3109  ;;  %v3111_v60 = vperm.slane %v3107_v5, %v4974_v1 }
0x298e   :  { %v3112_v27 = vperm.slane %v3110_v28, %v4974_v1 }
0x2990   :  { %v3113_v9 = vsel %vm724_vm12, %v3112_v27, %v3111_v60  ;;  %v4667_v60 = vmov 0.0  }
0x2991   :  { %v3115_v53 = vsel %vm727_vm13, %v3113_v9, 0.0 }
0x2992   :  { %3116 = vadd.xlane.f32.xlu0 %v3115_v53 }
0x2995   :  { %v3157_v38 = vpop.permute.xlu1 %3156 }
0x29a6   :  { %843 = vrot.lane.b32.xlu0 %v5008_v47, %s4664_s20  ;;  %v3177_v47 = vsub.f32 1.0, %v3153_v6 }
0x2a05   :  { %v3117_v22 = vpop.xlane.xlu0 %3116 }
0x2a06   :  { %4115 = vrcp.f32 %v3117_v22 }
0x2a0c   :  { %v4116_v16 = vpop.eup %4115 }
0x2a0d   :  { %v3120_v63 = vperm.slane %v4116_v16, 0  ;;  %v3121_v24 = vperm.slane %v4116_v16, 1 }
0x2a0f   :  { %v3125_v13 = vmul.f32 %v4114_v56, %v3121_v24  ;;  %v3124_v52 = vmul.f32 %v4112_v62, %v3120_v63 }
0x2a11   :  { %3133 = vperm.xlu1 %3951, %v3125_v13   ;;  %3128 = vperm.xlu2 %3952, %v3124_v52  }
0x2a18   :  { %v844_v19 = vpop.permute.xlu0 %843 }
0x2a19   :  { %850 = vst.msk [vmem:[#allocation4] sm:$0x1] %vm849_vm15, %v844_v19  ;;  %3161 = vperm.xlu1 %3951, %v3153_v6   ;;  %3180 = vperm.xlu2 %3952, %v3176_v11  }
0x2a21   :  { %3185 = vperm.xlu1 %3951, %v3177_v47   ;;  %3168 = vrot.lane.b32.xlu2 %v3166_v33, %s4664_s20 }
0x2a22   :  { %3955 = vset.pattern.permute.xlu2 %v4946_v26 }
0x2a29   :  { %3954 = vset.pattern.permute.xlu1 %v4946_v26  ;;  %845 = vrot.lane.b32.xlu2 %v5006_v43, %s4664_s20 }
0x2a2a   :  { %3170 = vrot.lane.b32.xlu1 %v3167_v18, %s4664_s20 }
0x2a31   :  { %3458 = vperm.xlu2 %3955, %v3453_v59   ;;  %v388_v59 = vld [vmem:[#allocation11] sm:$0xff]  }
0x2a32   :  { %3465 = vperm.xlu1 %3954, %v3460_v15  }
0x2a39   :  { %3956 = vset.pattern.permute.xlu2 %v4666_v57 }
0x2a3a   :  { %3957 = vset.pattern.permute.xlu1 %v4666_v57 }
0x2a6b   :  { %v3129_v10 = vpop.permute.xlu2 %3128 }
0x2a6c   :  { %v3136_v23 = vmul.f32 %v5022_v2, %v3129_v10  ;;  %v3202_v7 = vperm.slane %v3129_v10, %v4974_v1  ;;  %v3905_v2 = vld [vmem:[#allocation6 + $0x8] sm:$0xff] }
0x2a6d   :  { %3381 = vmatpush.bf16.msrb.mxu0 %v3905_v2 }
0x2a6e   :  { %v3138_v26 = vsel %vm519_vm2, %v3136_v23, 0.0  ;;  %3206 = vst.msk [vmem:[#allocation36 + $0x7] sm:$0x1] %vm858_vm14, %v3202_v7 }
0x2a6f   :  { %v3139_v43 = vrot.slane %v3138_v26, 4 }
0x2a71   :  { %v3140_v29 = vadd.f32 %v3139_v43, %v3138_v26  ;;  %3382 = vmatpush.bf16.msrb.mxu0 %v3904_v39  ;;  %v3970_v26 = vld [vmem:[#allocation34] ss:$0 sm:$0xff] }
0x2a73   :  { %v3141_v30 = vrot.slane %v3140_v29, 2  ;;  %v3181_v31 = vpop.permute.xlu2 %3180 }
0x2a74   :  { %v3194_v57 = vmul.f32 %v3181_v31, %v5565_v25  ;;  %v3188_v4 = vmul.f32 %v3181_v31, %v5553_v35  ;;  %v3968_v25 = vld [vmem:[%s5741_s19] ss:$0 sm:$0xff] }
0x2a75   :  { %v3142_v32 = vadd.f32 %v3141_v30, %v3140_v29  ;;  %v3319_v22 = vld [vmem:[#allocation36] sm:$0xff] }
0x2a76   :  { %v3321_v24 = vpack.c.bf16 %v3319_v22, %v3319_v22 }
0x2a77   :  { %v3143_v14 = vrot.slane %v3142_v32, 1 }
0x2a79   :  { %v3144_v40 = vadd.f32 %v3143_v14, %v3142_v32 }
0x2a7b   :  { %v3192_v46 = vmul.f32 %v3157_v38, %v3144_v40  ;;  %v3169_v20 = vpop.permute.xlu2 %3168 }
0x2a7c   :  { %v3174_v21 = vmul.f32 %v3169_v20, %v3157_v38 }
0x2a7d   :  { %v3196_v37 = vadd.f32 %v3194_v57, %v3192_v46 }
0x2a7e   :  { %v5633_v42 = vadd.f32 %v3188_v4, %v3174_v21 }
0x2a7f   :  { %3200 = vst.msk [vmem:[#allocation5 + $0x7] sm:$0x1] %vm849_vm15, %v3196_v37 }
0x2a80   :  { %3198 = vst.msk [vmem:[#allocation4 + $0x7] sm:$0x1] %vm849_vm15, %v5633_v42 }
0x2a83   :  { %v3134_v45 = vpop.permute.xlu1 %3133  ;;  %v846_v48 = vpop.permute.xlu2 %845 }
0x2a84   :  { %v3137_v35 = vmul.f32 %v5024_v3, %v3134_v45  ;;  %v3203_v44 = vperm.slane %v3134_v45, %v4974_v1  ;;  %851 = vst.msk [vmem:[#allocation4 + $0x8] sm:$0x1] %vm849_vm15, %v846_v48 }
0x2a86   :  { %v3145_v49 = vsel %vm519_vm2, %v3137_v35, 0.0  ;;  %3207 = vst.msk [vmem:[#allocation36 + $0xf] sm:$0x1] %vm858_vm14, %v3203_v44  ;;  %v3223_v55 = vld [vmem:[#allocation5] sm:$0xff]  ;;  %vm3479_vm14 = vcmask 1043456  }
0x2a87   :  { %v3146_v61 = vrot.slane %v3145_v49, 4  ;;  %v3243_v58 = vmul.f32 %v3968_v25, %v3223_v55  ;;  %v5651_v8 = vld [vmem:[#allocation4] sm:$0xff]  ;;  %3577 = dma.vmem_to_hbm [thread:$0]  %s3570_s13, 256, %s3572_s12, [#allocation37], %s4669_s3, %s4669_s3, %s4670_s30  }
0x2a88   :  { %v3231_v3 = vmul.f32 %v5647_v51, %v5651_v8  ;;  %v3971_v35 = vld [vmem:[#allocation10] ss:$0 sm:$0xff] }
0x2a89   :  { %v3147_v34 = vadd.f32 %v3146_v61, %v3145_v49  ;;  %v3245_v12 = vsel %vm519_vm2, %v3243_v58, 0.0  ;;  %v3972_v61 = vld [vmem:[#allocation8] ss:$0 sm:$0xff] }
0x2a8a   :  { %3246 = vadd.xlane.f32.xlu0 %v3245_v12  ;;  %v3233_v62 = vsel %vm519_vm2, %v3231_v3, 0.0  ;;  %v3254_v3 = vunpack.c.h.bf16 %v388_v59 }
0x2a8b   :  { %v3148_v56 = vrot.slane %v3147_v34, 2  ;;  %v3162_v41 = vpop.permute.xlu1 %3161  ;;  %v3459_v5 = vpop.permute.xlu2 %3458  ;;  %3234 = vadd.xlane.f32.xlu1 %v3233_v62 }
0x2a8c   :  { %vm3467_vm13 = vcmp.eq.s32.totalorder %v3459_v5, %v4974_v1 }
0x2a8d   :  { %v3149_v28 = vadd.f32 %v3148_v56, %v3147_v34  ;;  %v3860_v27 = vsel %vm3467_vm13, 1.0, %v4667_v60  ;;  %v3320_v46 = vld [vmem:[#allocation36 + $0x8] sm:$0xff]  ;;  %v3260_v56 = vmul.f32 %v3970_v26, %v3254_v3 }
0x2a8e   :  { %v3473_v9 = vpack.c.bf16 %v3860_v27, %v3860_v27  ;;  %v3322_v21 = vpack.c.bf16 %v3320_v46, %v3320_v46 }
0x2a8f   :  { %v3150_v53 = vrot.slane %v3149_v28, 1  ;;  %v3264_v27 = vsel %vm409_vm1, %v3260_v56, 0.0 }
0x2a90   :  { %v3481_v16 = vsel %vm3479_vm14, %v3473_v9, 0 }
0x2a91   :  { %v3151_v63 = vadd.f32 %v3150_v53, %v3149_v28  ;;  %3490 = vmatpush.bf16.msrb.mxu1 %v3481_v16 }
0x2a93   :  { %v3193_v13 = vmul.f32 %v3162_v41, %v3151_v63  ;;  %v3186_v52 = vpop.permute.xlu1 %3185 }
0x2a94   :  { %v3195_v11 = vmul.f32 %v3186_v52, %v5551_v54  ;;  %3862 = vmatmul.msk.bf16.vlgmr.msrb.gmra.mxu1 %vm3475_vm5, %v3321_v24  ;;  %v3189_v18 = vmul.f32 %v3186_v52, %v5526_v0  ;;  %v3253_v54 = vunpack.c.l.bf16 %v388_v59 }
0x2a96   :  { %v3197_v6 = vadd.f32 %v3195_v11, %v3193_v13  ;;  %v3259_v32 = vmul.f32 %v3970_v26, %v3253_v54 }
0x2a98   :  { %3201 = vst.msk [vmem:[#allocation5 + $0xf] sm:$0x1] %vm849_vm15, %v3197_v6  ;;  %v3217_v19 = vrot.slane %v3197_v6, 7  ;;  %v3261_v17 = vsel %vm409_vm1, %v3259_v32, 0.0 }
0x2a9a   :  { %v3218_v47 = vsel %vm724_vm12, %v3217_v19, %v3196_v37 }
0x2a9b   :  { %3220 = vst.msk [vmem:[#allocation3] sm:$0x3] %vm384_vm0, %v3218_v47 }
0x2a9c   :  { %v3171_v33 = vpop.permute.xlu1 %3170 }
0x2a9d   :  { %v3175_v50 = vmul.f32 %v3171_v33, %v3162_v41 }
0x2a9f   :  { %v3191_v15 = vadd.f32 %v3189_v18, %v3175_v50  ;;  %v3224_v10 = vld [vmem:[#allocation5 + $0x8] sm:$0xff] }
0x2aa0   :  { %v3226_v23 = vpack.c.bf16 %v3224_v10, %v3223_v55  ;;  %v3244_v7 = vmul.f32 %v3968_v25, %v3224_v10 }
0x2aa1   :  { %3199 = vst.msk [vmem:[#allocation4 + $0xf] sm:$0x1] %vm849_vm15, %v3191_v15  ;;  %v3210_v43 = vrot.slane %v3191_v15, 7  ;;  %vm3315_vm15 = vcmask 7168  }
0x2aa2   :  { %3850 = vmatmul.msk.bf16.vlgmr.msra.gmra.mxu3 %vm519_vm2, %v3226_v23  ;;  %v3248_v29 = vsel %vm519_vm2, %v3244_v7, 0.0  ;;  %v3548_v30 = vld [vmem:[#allocation3] sm:$0x3] }
0x2aa3   :  { %v3211_v31 = vsel %vm724_vm12, %v3210_v43, %v5633_v42  ;;  %3249 = vadd.xlane.f32.xlu1 %v3248_v29  ;;  %3549 = vst.msk [vmem:[#allocation39] sm:$0x3] %vm384_vm0, %v3548_v30 }
0x2aa4   :  { %3214 = vst.msk [vmem:[#allocation2] sm:$0x3] %vm384_vm0, %v3211_v31  ;;  %v3466_v0 = vpop.permute.xlu1 %3465  ;;  %3599 = dma.vmem_to_hbm [thread:$0]  %s3595_s16, 32, %s3597_s22, [#allocation40]  }
0x2aa5   :  { %vm3468_vm6 = vcmp.eq.s32.totalorder %v3466_v0, %v4974_v1 }
0x2aa6   :  { %v3861_v14 = vsel %vm3468_vm6, 1.0, %v4667_v60 }
0x2aa7   :  { %v3474_v40 = vpack.c.bf16 %v3861_v14, %v3861_v14 }
0x2aa8   :  { %v3222_v38 = vld [vmem:[#allocation4 + $0x8] sm:$0xff] }
0x2aa9   :  { %v3500_v57 = vsel %vm3479_vm14, %v3474_v40, 0  ;;  %v3225_v20 = vpack.c.bf16 %v3222_v38, %v5651_v8  ;;  %v3232_v2 = vmul.f32 %v5647_v51, %v3222_v38 }
0x2aaa   :  { %3509 = vmatpush.bf16.msrb.mxu2 %v3500_v57 }
0x2aab   :  { %3859 = vmatmul.msk.bf16.vlgmr.msrb.gmra.mxu0 %vm519_vm2, %v3225_v20  ;;  %3262 = vadd.xlane.f32.xlu1 %v3261_v17  ;;  %v3236_v4 = vsel %vm519_vm2, %v3232_v2, 0.0  ;;  %v3546_v1 = vld [vmem:[#allocation2] sm:$0x3] }
0x2aac   :  { %3237 = vadd.xlane.f32.xlu2 %v3236_v4  ;;  %3547 = vst.msk [vmem:[#allocation38] sm:$0x3] %vm384_vm0, %v3546_v1 }
0x2aad   :  { %3863 = vmatmul.msk.bf16.vlgmr.msrb.gmra.mxu2 %vm3475_vm5, %v3322_v21  ;;  %3588 = dma.vmem_to_hbm [thread:$0]  %s3584_s11, 32, %s3586_s5, [#allocation37]  }
0x2afd   :  { %v3247_v48 = vpop.xlane.xlu0 %3246 }
0x2afe   :  { %v3235_v37 = vpop.xlane.xlu1 %3234 }
0x2aff   :  { %v3251_v25 = vadd.f32 %v3247_v48, %v3235_v37 }
0x2b11   :  { %v5681_v42 = vpop.f32.mrf.mxu1 }
0x2b16   :  { %v3250_v36 = vpop.xlane.xlu1 %3249 }
0x2b19   :  { %v3494_v45 = vpop.f32.mrf.mxu1 }
0x2b1e   :  { %v3263_v44 = vpop.xlane.xlu1 %3262 }
0x2b1f   :  { %v3267_v51 = vadd.f32 %v3263_v44, %v3251_v25  ;;  %v3238_v18 = vpop.xlane.xlu2 %3237 }
0x2b20   :  { %v3252_v23 = vadd.f32 %v3250_v36, %v3238_v18 }
0x2b21   :  { %v3273_v39 = vadd.f32 %v3971_v35, %v3267_v51 }
0x2b23   :  { %v3840_v49 = vmul.f32 -1.442695, %v3273_v39 }
0x2b25   :  { %4117 = vpow2.f32 %v3840_v49  ;;  %v3355_v55 = vpop.f32.mrf.mxu3 }
0x2b28   :  { %v3384_v58 = vpop.f32.mrf.mxu0 }
0x2b29   :  { %v3385_v8 = vadd.f32 %v3384_v58, %v3355_v55 }
0x2b2b   :  { %v4118_v34 = vpop.eup %4117  ;;  %v3393_v12 = vadd.f32 %v3972_v61, %v3385_v8 }
0x2b2c   :  { %v3281_v62 = vadd.f32 1.0, %v4118_v34 }
0x2b2d   :  { %3395 = vmax.xlane.f32.xlu2 %v3393_v12  ;;  %v3357_v41 = vpop.f32.mrf.mxu3 }
0x2b2e   :  { %4119 = vrcp.f32 %v3281_v62  ;;  %v3294_v24 = vand.u32 2147483648, %v3281_v62  ;;  %v3292_v52 = vand.u32 2147483647, %v3281_v62  ;;  %vm3288_vm2 = vweird.f32 %v3281_v62 }
0x2b30   :  { %v3386_v5 = vpop.f32.mrf.mxu0  ;;  %v5683_v28 = vpop.f32.mrf.mxu2  ;;  %v3295_v6 = vor.u32 1.1754944e-38, %v3294_v24  ;;  %vm3293_vm7 = vcmp.eq.f32.partialorder %v3292_v52, 8.507059e+37 }
0x2b31   :  { %v3387_v60 = vadd.f32 %v3386_v5, %v3357_v41 }
0x2b33   :  { %v3394_v9 = vadd.f32 %v3972_v61, %v3387_v60 }
0x2b34   :  { %v4120_v53 = vpop.eup %4119 }
0x2b35   :  { %v3284_v22 = vmul.f32 %v4120_v53, %v3281_v62  ;;  %3397 = vmax.xlane.f32.xlu0 %v3394_v9  ;;  %3265 = vadd.xlane.f32.xlu2 %v3264_v27  ;;  %vm3289_vm0 = vweird.f32 %v4120_v53 }
0x2b36   :  { %vm3290_vm12 = vmor %vm3288_vm2, %vm3289_vm0 }
0x2b37   :  { %v3285_v16 = vsub.f32 1.0, %v3284_v22 }
0x2b38   :  { %v3513_v63 = vpop.f32.mrf.mxu2 }
0x2b39   :  { %v3286_v13 = vmul.f32 %v4120_v53, %v3285_v16 }
0x2b3b   :  { %v3287_v11 = vadd.f32 %v4120_v53, %v3286_v13 }
0x2b3d   :  { %v3291_v19 = vsel %vm3290_vm12, %v4120_v53, %v3287_v11 }
0x2b3e   :  { %v3296_v47 = vsel %vm3293_vm7, %v3295_v6, %v3291_v19 }
0x2b3f   :  { %3316 = vst.msk [vmem:[%s5747_s25] sm:$0xff] %vm3315_vm15, %v3296_v47  ;;  %v3313_v33 = vsub.f32 1.0, %v3296_v47 }
0x2b4d   :  { %3517 = vperm.xlu2 %3956, %v3313_v33  }
0x2ba0   :  { %v3396_v50 = vpop.xlane.xlu2 %3395 }
0x2ba1   :  { %v3399_v59 = vmax.f32 %v3396_v50, -1e+30 }
0x2ba3   :  { %v3409_v15 = vsub.f32 %v3393_v12, %v3399_v59  ;;  %v3401_v48 = vsub.f32 -1e+30, %v3399_v59 }
0x2ba5   :  { %v3411_v10 = vmul.f32 1.442695, %v3409_v15  ;;  %v3403_v25 = vmul.f32 1.442695, %v3401_v48 }
0x2ba7   :  { %4121 = vpow2.f32 %v3411_v10 }
0x2ba8   :  { %v3398_v7 = vpop.xlane.xlu0 %3397  ;;  %v3266_v54 = vpop.xlane.xlu2 %3265 }
0x2ba9   :  { %v3400_v26 = vmax.f32 %v3398_v7, -1e+30  ;;  %v3268_v43 = vadd.f32 %v3266_v54, %v3252_v23 }
0x2bab   :  { %v3410_v29 = vsub.f32 %v3394_v9, %v3400_v26  ;;  %v3274_v30 = vadd.f32 %v3971_v35, %v3268_v43  ;;  %v3402_v35 = vsub.f32 -1e+30, %v3400_v26 }
0x2bad   :  { %v3413_v31 = vmul.f32 1.442695, %v3410_v29  ;;  %v3841_v0 = vmul.f32 -1.442695, %v3274_v30  ;;  %v5690_v32 = vpop.eup %4121  ;;  %v3405_v44 = vmul.f32 1.442695, %v3402_v35 }
0x2bae   :  { %3415 = vadd.xlane.f32.xlu0 %v5690_v32 }
0x2baf   :  { %4123 = vpow2.f32 %v3413_v31 }
0x2bb0   :  { %4125 = vpow2.f32 %v3841_v0  ;;  %v3518_v60 = vpop.permute.xlu2 %3517 }
0x2bb5   :  { %v5693_v14 = vpop.eup %4123 }
0x2bb6   :  { %v4126_v40 = vpop.eup %4125  ;;  %3417 = vadd.xlane.f32.xlu1 %v5693_v14 }
0x2bb7   :  { %v3282_v38 = vadd.f32 1.0, %v4126_v40 }
0x2bb9   :  { %4127 = vrcp.f32 %v3282_v38  ;;  %v3309_v20 = vand.u32 2147483648, %v3282_v38  ;;  %v3307_v4 = vand.u32 2147483647, %v3282_v38  ;;  %vm3303_vm8 = vweird.f32 %v3282_v38 }
0x2bba   :  { %4129 = vpow2.f32 %v3403_v25 }
0x2bbb   :  { %v3310_v1 = vor.u32 1.1754944e-38, %v3309_v20  ;;  %vm3308_vm10 = vcmp.eq.f32.partialorder %v3307_v4, 8.507059e+37  ;;  %4131 = vpow2.f32 %v3405_v44 }
0x2bbf   :  { %v4128_v17 = vpop.eup %4127 }
0x2bc0   :  { %v3299_v46 = vmul.f32 %v4128_v17, %v3282_v38  ;;  %vm3304_vm1 = vweird.f32 %v4128_v17  ;;  %v4130_v51 = vpop.eup %4129 }
0x2bc1   :  { %vm3305_vm9 = vmor %vm3303_vm8, %vm3304_vm1  ;;  %v3407_v39 = vmul.f32 0.0, %v4130_v51  ;;  %v4132_v61 = vpop.eup %4131 }
0x2bc2   :  { %v3300_v57 = vsub.f32 1.0, %v3299_v46  ;;  %v3408_v58 = vmul.f32 0.0, %v4132_v61 }
0x2bc4   :  { %v3301_v2 = vmul.f32 %v4128_v17, %v3300_v57 }
0x2bc6   :  { %v3302_v21 = vadd.f32 %v4128_v17, %v3301_v2 }
0x2bc8   :  { %v3306_v37 = vsel %vm3305_vm9, %v4128_v17, %v3302_v21 }
0x2bc9   :  { %v3311_v36 = vsel %vm3308_vm10, %v3310_v1, %v3306_v37 }
0x2bca   :  { %3534 = vperm.xlu2 %3956, %v3311_v36   ;;  %v3314_v45 = vsub.f32 1.0, %v3311_v36  ;;  %3317 = vst.msk [vmem:[%s5747_s25 + $0x8] sm:$0xff] %vm3315_vm15, %v3311_v36  ;;  %s4673_s25 = smov [#allocation35]  }
0x2bcb   :  { %s3554_s27 = sshll.u32 %s4673_s25, 4  ;;  %s3555_s27 = int_to_ptr.vmem [resolvable:$true] %s3554_s27 }
0x2bcc   :  { %3522 = vperm.xlu0 %3953, %v3314_v45  }
0x2bcf   :  { %3529 = vperm.xlu1 %3957, %v3296_v47  }
0x2c21   :  { %v3416_v49 = vpop.xlane.xlu0 %3415 }
0x2c22   :  { %v3419_v55 = vadd.f32 %v3416_v49, %v3407_v39 }
0x2c24   :  { %4133 = vrcp.f32 %v3419_v55  ;;  %v3432_v53 = vand.u32 2147483648, %v3419_v55  ;;  %vm3426_vm3 = vweird.f32 %v3419_v55  ;;  %v3430_v16 = vand.u32 2147483647, %v3419_v55  ;;  %v3535_v33 = vpop.permute.xlu2 %3534 }
0x2c25   :  { %v3538_v10 = vmul.f32 %v3535_v33, %v5683_v28 }
0x2c26   :  { %v3433_v11 = vor.u32 1.1754944e-38, %v3432_v53  ;;  %vm3431_vm6 = vcmp.eq.f32.partialorder %v3430_v16, 8.507059e+37 }
0x2c29   :  { %v3418_v8 = vpop.xlane.xlu1 %3417 }
0x2c2a   :  { %v4134_v3 = vpop.eup %4133  ;;  %v3420_v34 = vadd.f32 %v3418_v8, %v3408_v58 }
0x2c2b   :  { %v3422_v12 = vmul.f32 %v4134_v3, %v3419_v55  ;;  %vm3427_vm11 = vweird.f32 %v4134_v3 }
0x2c2c   :  { %4135 = vrcp.f32 %v3420_v34  ;;  %v3447_v22 = vand.u32 2147483648, %v3420_v34  ;;  %v3445_v24 = vand.u32 2147483647, %v3420_v34  ;;  %vm3428_vm13 = vmor %vm3426_vm3, %vm3427_vm11  ;;  %vm3441_vm14 = vweird.f32 %v3420_v34 }
0x2c2d   :  { %v3423_v62 = vsub.f32 1.0, %v3422_v12 }
0x2c2e   :  { %v3448_v6 = vor.u32 1.1754944e-38, %v3447_v22  ;;  %vm3446_vm0 = vcmp.eq.f32.partialorder %v3445_v24, 8.507059e+37 }
0x2c2f   :  { %v3424_v56 = vmul.f32 %v4134_v3, %v3423_v62 }
0x2c31   :  { %v3425_v27 = vadd.f32 %v4134_v3, %v3424_v56 }
0x2c32   :  { %v4136_v41 = vpop.eup %4135 }
0x2c33   :  { %v3437_v5 = vmul.f32 %v4136_v41, %v3420_v34  ;;  %vm3442_vm4 = vweird.f32 %v4136_v41  ;;  %v3429_v13 = vsel %vm3428_vm13, %v4134_v3, %v3425_v27 }
0x2c34   :  { %vm3443_vm5 = vmor %vm3441_vm14, %vm3442_vm4  ;;  %v3434_v47 = vsel %vm3431_vm6, %v3433_v11, %v3429_v13 }
0x2c35   :  { %v3438_v9 = vsub.f32 1.0, %v3437_v5  ;;  %v3451_v15 = vmul.f32 %v5690_v32, %v3434_v47 }
0x2c37   :  { %v3439_v63 = vmul.f32 %v4136_v41, %v3438_v9  ;;  %v3525_v26 = vmul.f32 %v3518_v60, %v3451_v15 }
0x2c39   :  { %v3440_v52 = vadd.f32 %v4136_v41, %v3439_v63 }
0x2c3b   :  { %v3444_v19 = vsel %vm3443_vm5, %v4136_v41, %v3440_v52 }
0x2c3c   :  { %v3449_v18 = vsel %vm3446_vm0, %v3448_v6, %v3444_v19 }
0x2c3d   :  { %v3452_v50 = vmul.f32 %v5693_v14, %v3449_v18 }
0x2c3e   :  { %v3523_v59 = vpop.permute.xlu0 %3522 }
0x2c3f   :  { %v3526_v23 = vmul.f32 %v3523_v59, %v3452_v50 }
0x2c41   :  { %v3540_v7 = vadd.f32 %v3538_v10, %v3526_v23  ;;  %v3530_v54 = vpop.permute.xlu1 %3529 }
0x2c42   :  { %v3537_v43 = vmul.f32 %v3530_v54, %v5681_v42 }
0x2c43   :  { %3542 = vst [vmem:[#allocation35 + $0x8] sm:$0xff] %v3540_v7 }
0x2c44   :  { %v3539_v29 = vadd.f32 %v3537_v43, %v3525_v26 }
0x2c46   :  { %3541 = vst [vmem:[#allocation35] sm:$0xff] %v3539_v29 }
0x2c47   :  { %3562 = dma.vmem_to_hbm [thread:$0]  %s3555_s27, 256, %s3557_s14, [#allocation13], %s4669_s3, %s4669_s3, %s4670_s30  }
0x2c48   :  { %4639 = dma.done.wait [#allocation13], 256  }
0x2c49   :  { %4640 = vsyncadd [#allocation13], 4294967040 }
0x2c4a   :  { %4641 = dma.done.wait [#allocation37], 288  }
0x2c4b   :  { %4642 = vsyncadd [#allocation37], 4294967008 }
0x2c4c   :  { %4643 = dma.done.wait [#allocation40], 32  }
0x2c4d   :  { %4644 = vsyncadd [#allocation40], 4294967264 }
0x2c4e   :  { %3618 = vsyncpa [#allocation12], 1 }
0x2c4f   :  { %3619 = vsyncpa [#allocation15], 1 }
0x2c50   :  { %3620 = vsyncpa [#allocation18], 1 }
0x2c51   :  { %3621 = vsyncpa [#allocation21], 1 }
0x2c52   :  { %3622 = vsyncpa [#allocation24], 1 }
0x2c53   :  { %3623 = vsyncpa [#allocation27], 1 }
0x2c54   :  { %3624 = vsyncpa [#allocation30], 1 }
0x2c55   :  { %3625 = vsyncpa [#allocation33], 1 }
0x2c56   :  { %3626 = vsyncpa [#allocation13], 1 }
0x2c57   :  { %3627 = vsyncpa [#allocation37], 1 }
0x2c58   :  { %3628 = vsyncpa [#allocation40], 1 }
0x2c59   :  { %3629 = vsyncmov [#allocation9] }
0x2c5c   :  { %s3630_s20 = vpop.sfrf %3629 }
0x2c5d   :  { %p3864_p0 = scmp.ne.s32.totalorder %s3630_s20, 0 }
0x2c5f   :  { %3634 = shalt.err (%p3864_p0)  }
0x2c60   :  { %3636 = vsyncmov [#allocation9 + $0x1] }
0x2c63   :  { %s3637_s24 = vpop.sfrf %3636 }
0x2c64   :  { %p3865_p1 = scmp.ne.s32.totalorder %s3637_s24, 0 }
0x2c66   :  { %3641 = shalt.err (%p3865_p1)  }
0x2c67   :  { %3643 = vsyncmov [#allocation9 + $0x2] }
0x2c6a   :  { %s3644_s2 = vpop.sfrf %3643 }
0x2c6b   :  { %p3866_p2 = scmp.ne.s32.totalorder %s3644_s2, 0 }
0x2c6d   :  { %3648 = shalt.err (%p3866_p2)  }

</bundles_post_ra>
